<compile_context>
chip_gen: v5e
topology: v5e:2x2
jax: 0.10.0
libtpu: 0.0.40
codegen_flags: <defaults>
</compile_context>

<pallas_src>
import functools

import jax
import jax.numpy as jnp
from jax.experimental import pallas as pl
from jax.experimental.pallas import tpu as pltpu

LANE = 128


def _round_up(x, m):
    return (x + m - 1) // m * m


# -----------------------------------------------------------------------------
# Pallas kernels
# -----------------------------------------------------------------------------
def _gemm_bias_act_kernel(x_ref, w_ref, shift_ref, o_ref, *, apply_swish):
    """im2col conv GEMM (bf16 x bf16 -> f32 acc) + per-channel shift + optional Swish."""
    acc = jnp.dot(x_ref[...], w_ref[...], preferred_element_type=jnp.float32)
    acc = acc + shift_ref[...]
    if apply_swish:
        acc = acc * jax.nn.sigmoid(acc)
    o_ref[...] = acc.astype(o_ref.dtype)


def _conv_gemm(cols, w_mat, shift, apply_swish):
    """Tiled (M, KC) x (KC, N) GEMM; grid (M tiles, N tiles), both parallel.

    Tile sizes are kept modest (<= 512 x 256 f32 output, bf16 operands) so the
    double-buffered working set stays well inside v7x's 64 MiB VMEM as well as
    v5e/v6e defaults; the full KC reduction lives in a single block.
    """
    M, KC = cols.shape
    N = w_mat.shape[1]                       # multiple of 128 by construction
    TM = min(512, _round_up(M, 8))
    M_pad = _round_up(M, TM)
    if M_pad != M:
        cols = jnp.pad(cols, ((0, M_pad - M), (0, 0)))
    TN = 256 if (N % 256 == 0) else 128
    grid = (M_pad // TM, N // TN)

    out = pl.pallas_call(
        functools.partial(_gemm_bias_act_kernel, apply_swish=apply_swish),
        out_shape=jax.ShapeDtypeStruct((M_pad, N), jnp.float32),
        grid=grid,
        in_specs=[
            pl.BlockSpec((TM, KC), lambda i, j: (i, 0)),
            pl.BlockSpec((KC, TN), lambda i, j: (0, j)),
            pl.BlockSpec((1, TN), lambda i, j: (0, j)),
        ],
        out_specs=pl.BlockSpec((TM, TN), lambda i, j: (i, j)),
        compiler_params=pltpu.CompilerParams(
            dimension_semantics=("parallel", "parallel")),
    )(cols, w_mat, shift)
    return out[:M]


def _se_gate_kernel(x_ref, len_ref, w1_ref, b1_ref, w2_ref, b2_ref,
                    gate_ref, acc_ref):
    """Time-tiled SE: accumulate pooled sum over L tiles, finalize gate on last tile."""
    l = pl.program_id(1)

    @pl.when(l == 0)
    def _():
        acc_ref[...] = jnp.zeros_like(acc_ref)

    acc_ref[...] += jnp.sum(x_ref[...], axis=1)               # (1, C)

    @pl.when(l == pl.num_programs(1) - 1)
    def _():
        # TODO(synk): matches the reference ContextNet SE module (sum over all frames
        # divided by the true length); padded frames are not explicitly masked.
        pooled = acc_ref[...] / len_ref[0]                    # (1, C)
        h = jnp.dot(pooled, w1_ref[...],
                    preferred_element_type=jnp.float32) + b1_ref[...]
        h = h * jax.nn.sigmoid(h)                             # Swish
        g = jnp.dot(h, w2_ref[...],
                    preferred_element_type=jnp.float32) + b2_ref[...]
        gate_ref[...] = jax.nn.sigmoid(g)[:, None, :]         # (1, 1, C)


def _se_apply_kernel(x_ref, gate_ref, *rest, has_residual):
    """Time-tiled SE gate apply + optional residual add + block-level Swish."""
    if has_residual:
        res_ref, o_ref = rest
    else:
        (o_ref,) = rest
    out = x_ref[...] * gate_ref[...]                          # (1,TL,C) * (1,1,C)
    if has_residual:
        out = out + res_ref[...]
    o_ref[...] = out * jax.nn.sigmoid(out)


# -----------------------------------------------------------------------------
# Module application (thin JAX glue around the kernels; all under one jit)
# -----------------------------------------------------------------------------
def conv_module_apply(x, lengths, w_mat, shift, ksz, stride, apply_swish):
    """ConvModule: Conv1d('same'-style pad) + folded BN + optional Swish."""
    B, L, c_in_pad = x.shape
    c_out_pad = w_mat.shape[1]
    pad = (ksz - 1) // 2
    L_out = (L + 2 * pad - ksz) // stride + 1

    # im2col as fused XLA glue under the single jit; GEMM operands cast to bf16.
    # TODO(synk): an in-kernel windowed conv (manual DMA of overlapping input windows)
    # would cut HBM traffic another ~K x; im2col is kept for robustness.
    x_pad = jnp.pad(x, ((0, 0), (pad, pad), (0, 0)))
    cols = jnp.stack(
        [x_pad[:, k: k + stride * L_out: stride, :] for k in range(ksz)], axis=2
    ).reshape(B * L_out, ksz * c_in_pad).astype(jnp.bfloat16)

    out = _conv_gemm(cols, w_mat, shift, apply_swish).reshape(B, L_out, c_out_pad)
    out_lengths = (lengths + 2 * pad - ksz) // stride + 1
    return out, out_lengths


def se_block_apply(x, lengths, se_params, residual):
    w1, b1, w2, b2 = se_params              # (C,R), (1,R), (R,C), (1,C)  (padded)
    B, L, C = x.shape
    R = w1.shape[1]
    TL = min(512, _round_up(L, 8))
    L_pad = _round_up(L, TL)
    if L_pad != L:
        x = jnp.pad(x, ((0, 0), (0, L_pad - L), (0, 0)))
        if residual is not None:
            residual = jnp.pad(residual, ((0, 0), (0, L_pad - L), (0, 0)))
    len_f = lengths.astype(jnp.float32).reshape(B, 1, 1)

    gate = pl.pallas_call(
        _se_gate_kernel,
        out_shape=jax.ShapeDtypeStruct((B, 1, C), jnp.float32),
        grid=(B, L_pad // TL),
        in_specs=[
            pl.BlockSpec((1, TL, C), lambda b, l: (b, l, 0)),
            pl.BlockSpec((1, 1, 1), lambda b, l: (b, 0, 0)),
            pl.BlockSpec((C, R), lambda b, l: (0, 0)),
            pl.BlockSpec((1, R), lambda b, l: (0, 0)),
            pl.BlockSpec((R, C), lambda b, l: (0, 0)),
            pl.BlockSpec((1, C), lambda b, l: (0, 0)),
        ],
        out_specs=pl.BlockSpec((1, 1, C), lambda b, l: (b, 0, 0)),
        scratch_shapes=[pltpu.VMEM((1, C), jnp.float32)],
        compiler_params=pltpu.CompilerParams(
            dimension_semantics=("parallel", "arbitrary")),
    )(x, len_f, w1, b1, w2, b2)

    has_res = residual is not None
    args = [x, gate]
    in_specs = [
        pl.BlockSpec((1, TL, C), lambda b, l: (b, l, 0)),
        pl.BlockSpec((1, 1, C), lambda b, l: (b, 0, 0)),
    ]
    if has_res:
        args.append(residual)
        in_specs.append(pl.BlockSpec((1, TL, C), lambda b, l: (b, l, 0)))

    out = pl.pallas_call(
        functools.partial(_se_apply_kernel, has_residual=has_res),
        out_shape=jax.ShapeDtypeStruct((B, L_pad, C), jnp.float32),
        grid=(B, L_pad // TL),
        in_specs=in_specs,
        out_specs=pl.BlockSpec((1, TL, C), lambda b, l: (b, l, 0)),
        compiler_params=pltpu.CompilerParams(
            dimension_semantics=("parallel", "parallel")),
    )(*args)
    return out[:, :L, :]


def conv_block_forward(x, lengths, cfg, p):
    ksz = cfg["kernel_size"]
    out, out_len = x, lengths
    for (w_mat, shift), stride in zip(p["layers"], cfg["strides"]):
        out, out_len = conv_module_apply(out, out_len, w_mat, shift, ksz, stride, True)
    if p["residual"] is not None:
        rw, rshift = p["residual"]
        res, _ = conv_module_apply(x, lengths, rw, rshift, ksz,
                                   cfg["residual_stride"], False)
    else:
        res = None
    out = se_block_apply(out, out_len, p["se"], res)
    return out, out_len


def build_encoder_forward(config, output_dim):
    """Single jitted forward over all 23 blocks (one dispatch, ~70 fused pallas_calls)."""

    def forward(inputs, input_lengths, params):
        d = inputs.shape[-1]
        d_pad = _round_up(d, LANE)
        x = jnp.pad(inputs.astype(jnp.float32), ((0, 0), (0, 0), (0, d_pad - d)))
        lengths = input_lengths
        for cfg, p in zip(config, params):
            x, lengths = conv_block_forward(x, lengths, cfg, p)
        return x[:, :, :output_dim], lengths

    return jax.jit(forward)


# -----------------------------------------------------------------------------
# Deterministic raw parameters (PyTorch layout) + host-side preprocessing
# -----------------------------------------------------------------------------
def _init_conv_module(key, c_in, c_out, kernel_size):
    k = jax.random.split(key, 6)
    w = 0.1 * jax.random.normal(k[0], (c_out, c_in, kernel_size), jnp.float32)
    b = 0.05 * jax.random.normal(k[1], (c_out,), jnp.float32)
    gamma = 1.0 + 0.05 * jax.random.normal(k[2], (c_out,), jnp.float32)
    beta = 0.05 * jax.random.normal(k[3], (c_out,), jnp.float32)
    mean = 0.05 * jax.random.normal(k[4], (c_out,), jnp.float32)
    var = 1.0 + 0.1 * jnp.abs(jax.random.normal(k[5], (c_out,), jnp.float32))
    return (w, b, gamma, beta, mean, var)


def _init_se(key, dim, reduction_ratio=8):
    r = max(dim // reduction_ratio, 1)
    k = jax.random.split(key, 4)
    w1 = 0.1 * jax.random.normal(k[0], (dim, r), jnp.float32)
    b1 = 0.05 * jax.random.normal(k[1], (r,), jnp.float32)
    w2 = 0.1 * jax.random.normal(k[2], (r, dim), jnp.float32)
    b2 = 0.05 * jax.random.normal(k[3], (dim,), jnp.float32)
    return (w1, b1, w2, b2)


def _init_block(key, c_in, c_out, num_layers, kernel_size, stride, residual):
    keys = jax.random.split(key, num_layers + 2)
    layers = []
    cur = c_in
    for i in range(num_layers):
        s = stride if i == num_layers - 1 else 1        # stride on last layer
        layers.append((_init_conv_module(keys[i], cur, c_out, kernel_size), s))
        cur = c_out
    se = _init_se(keys[num_layers], c_out)
    res = (
        (_init_conv_module(keys[num_layers + 1], c_in, c_out, kernel_size), stride)
        if residual else None
    )
    return {"layers": layers, "se": se, "residual": res}


def make_encoder_params(key, input_dim, num_layers, kernel_size, num_channels, output_dim):
    # 23-block ContextNet encoder configuration (C0 .. C22)
    C, C2 = num_channels, num_channels * 2
    cfgs = []
    cfgs.append((input_dim, C, 1, 1, False))                    # C0
    cfgs += [(C, C, num_layers, 1, True)] * 2                   # C1-C2
    cfgs.append((C, C, num_layers, 2, True))                    # C3
    cfgs += [(C, C, num_layers, 1, True)] * 3                   # C4-C6
    cfgs.append((C, C, num_layers, 2, True))                    # C7
    cfgs += [(C, C, num_layers, 1, True)] * 3                   # C8-C10
    cfgs.append((C, C2, num_layers, 1, True))                   # C11
    cfgs += [(C2, C2, num_layers, 1, True)] * 2                 # C12-C13
    cfgs.append((C2, C2, num_layers, 2, True))                  # C14
    cfgs += [(C2, C2, num_layers, 1, True)] * 7                 # C15-C21
    cfgs.append((C2, output_dim, 1, 1, False))                  # C22
    assert len(cfgs) == 23

    keys = jax.random.split(key, len(cfgs))
    blocks = []
    for k, (ci, co, nl, st, res) in zip(keys, cfgs):
        blocks.append(_init_block(k, ci, co, nl, kernel_size, st, res))
    return blocks


def _prep_conv_module(raw, c_in_pad):
    """Fold BN into weights, pad channels to LANE multiples, (K*Cin_pad, Cout_pad) bf16."""
    w, b, gamma, beta, mean, var = raw               # w: (C_out, C_in, K)
    c_out, c_in, ksz = w.shape
    c_out_pad = _round_up(c_out, LANE)
    inv_std = 1.0 / jnp.sqrt(var + 1e-5)
    scale = gamma * inv_std
    shift = (b - mean) * scale + beta
    w_scaled = w * scale[:, None, None]
    w_t = jnp.transpose(w_scaled, (2, 1, 0))         # (K, C_in, C_out)
    w_t = jnp.pad(w_t, ((0, 0), (0, c_in_pad - c_in), (0, c_out_pad - c_out)))
    w_mat = w_t.reshape(ksz * c_in_pad, c_out_pad).astype(jnp.bfloat16)
    shift_p = jnp.pad(shift, (0, c_out_pad - c_out)).reshape(1, c_out_pad)
    return (w_mat, shift_p.astype(jnp.float32)), c_out_pad


def _prep_se(raw, c_pad):
    w1, b1, w2, b2 = raw
    c, r = w1.shape
    r_pad = _round_up(r, LANE)
    w1p = jnp.pad(w1, ((0, c_pad - c), (0, r_pad - r)))
    b1p = jnp.pad(b1, (0, r_pad - r)).reshape(1, r_pad)
    w2p = jnp.pad(w2, ((0, r_pad - r), (0, c_pad - c)))
    b2p = jnp.pad(b2, (0, c_pad - c)).reshape(1, c_pad)
    return (w1p.astype(jnp.float32), b1p.astype(jnp.float32),
            w2p.astype(jnp.float32), b2p.astype(jnp.float32))


def prepare_encoder(raw_blocks, input_dim, kernel_size):
    config, params = [], []
    c_in_pad = _round_up(input_dim, LANE)
    for blk in raw_blocks:
        block_in_pad = c_in_pad
        layer_p, strides = [], []
        cur = block_in_pad
        for mod_raw, stride in blk["layers"]:
            p, cur = _prep_conv_module(mod_raw, cur)
            layer_p.append(p)
            strides.append(stride)
        se_p = _prep_se(blk["se"], cur)
        if blk["residual"] is not None:
            res_raw, res_stride = blk["residual"]
            res_p, _ = _prep_conv_module(res_raw, block_in_pad)
        else:
            res_p, res_stride = None, None
        params.append({"layers": tuple(layer_p), "se": se_p, "residual": res_p})
        config.append({"strides": tuple(strides), "residual_stride": res_stride,
                       "kernel_size": kernel_size})
        c_in_pad = cur
    return tuple(config), tuple(params)


# -----------------------------------------------------------------------------
if __name__ == "__main__":
    # small, shape-consistent configuration (channel dims divisible by SE ratio 8)
    batch, seq_len, input_dim = 2, 32, 8
    num_layers, kernel_size, num_channels, output_dim = 2, 5, 16, 16

    key = jax.random.PRNGKey(0)
    k_x, k_p = jax.random.split(key)
    inputs = jax.random.normal(k_x, (batch, seq_len, input_dim), jnp.float32)
    input_lengths = jnp.array([seq_len, seq_len - 7], dtype=jnp.int32)

    raw_blocks = make_encoder_params(
        k_p, input_dim, num_layers, kernel_size, num_channels, output_dim
    )
    config, params = prepare_encoder(raw_blocks, input_dim, kernel_size)
    encoder = build_encoder_forward(config, output_dim)

    output, output_lengths = encoder(inputs, input_lengths, params)
    jax.block_until_ready(output)
    jax.block_until_ready(output_lengths)

    # three stride-2 blocks (C3, C7, C14): seq 32 -> 4
    assert output.shape == (batch, seq_len // 8, output_dim), output.shape
    assert output_lengths.shape == (batch,)
    assert bool(jnp.all(jnp.isfinite(output)))
    print("KERNEL_OK")
</pallas_src>

<mosaic_0001>
module attributes {stable_mosaic.version = 11 : i64} {
  func.func @_gemm_bias_act_kernel(%arg0: i32, %arg1: i32, %arg2: memref<64x640xbf16, #tpu.memory_space<vmem>>, %arg3: memref<640x128xbf16, #tpu.memory_space<vmem>>, %arg4: memref<1x128xf32, #tpu.memory_space<vmem>>, %arg5: memref<64x128xf32, #tpu.memory_space<vmem>>) attributes {dimension_semantics = [#tpu.dimension_semantics<parallel>, #tpu.dimension_semantics<parallel>], iteration_bounds = array<i64: 1, 1>, scalar_prefetch = 0 : i64, scratch_operands = 0 : i64, tpu.core_type = #tpu.core_type<tc>, window_params = [{transform_indices = @transform_0, window_bounds = array<i64: 64, 640>}, {transform_indices = @transform_1, window_bounds = array<i64: 640, 128>}, {transform_indices = @transform_2, window_bounds = array<i64: 1, 128>}, {transform_indices = @transform_3, window_bounds = array<i64: 64, 128>}]} {
    %c0 = arith.constant 0 : index
    %c0_0 = arith.constant 0 : index
    %0 = vector.load %arg2[%c0, %c0_0] : memref<64x640xbf16, #tpu.memory_space<vmem>>, vector<64x640xbf16>
    %c0_1 = arith.constant 0 : index
    %c0_2 = arith.constant 0 : index
    %1 = vector.load %arg3[%c0_1, %c0_2] : memref<640x128xbf16, #tpu.memory_space<vmem>>, vector<640x128xbf16>
    %cst = arith.constant dense<0.000000e+00> : vector<64x128xf32>
    %2 = tpu.matmul %0, %1, %cst {dimension_numbers = #tpu.dot_dimension_numbers<[1], [0], [0], [1], [0, 0, 1, 1], [], []>} : vector<64x640xbf16>, vector<640x128xbf16>, vector<64x128xf32> -> vector<64x128xf32>
    %c0_3 = arith.constant 0 : index
    %c0_4 = arith.constant 0 : index
    %3 = vector.load %arg4[%c0_3, %c0_4] : memref<1x128xf32, #tpu.memory_space<vmem>>, vector<1x128xf32>
    %4 = vector.broadcast %3 : vector<1x128xf32> to vector<64x128xf32>
    %5 = arith.addf %2, %4 : vector<64x128xf32>
    %6 = arith.negf %5 : vector<64x128xf32>
    %7 = math.exp %6 : vector<64x128xf32>
    %cst_5 = arith.constant 1.000000e+00 : f32
    %8 = vector.broadcast %cst_5 : f32 to vector<64x128xf32>
    %9 = arith.addf %8, %7 : vector<64x128xf32>
    %10 = arith.divf %8, %9 : vector<64x128xf32>
    %11 = arith.mulf %5, %10 : vector<64x128xf32>
    %c0_6 = arith.constant 0 : index
    %c0_7 = arith.constant 0 : index
    %12 = vector.load %arg5[%c0_6, %c0_7] : memref<64x128xf32, #tpu.memory_space<vmem>>, vector<64x128xf32>
    tpu.vector_store %arg5[%c0_6, %c0_7], %11 {strides = array<i32>} : memref<64x128xf32, #tpu.memory_space<vmem>>, vector<64x128xf32>,
    return
  }
  func.func @transform_0(%arg0: i32, %arg1: i32) -> (i32, i32) {
    %c0_i32 = arith.constant 0 : i32
    %c0_i32_0 = arith.constant 0 : i32
    return %arg0, %c0_i32 : i32, i32
  }
  func.func @transform_1(%arg0: i32, %arg1: i32) -> (i32, i32) {
    %c0_i32 = arith.constant 0 : i32
    %c0_i32_0 = arith.constant 0 : i32
    return %c0_i32, %arg1 : i32, i32
  }
  func.func @transform_2(%arg0: i32, %arg1: i32) -> (i32, i32) {
    %c0_i32 = arith.constant 0 : i32
    %c0_i32_0 = arith.constant 0 : i32
    return %c0_i32, %arg1 : i32, i32
  }
  func.func @transform_3(%arg0: i32, %arg1: i32) -> (i32, i32) {
    %c0_i32 = arith.constant 0 : i32
    return %arg0, %arg1 : i32, i32
  }
}

module attributes {stable_mosaic.version = 11 : i64} {
  func.func @_se_gate_kernel(%arg0: i32, %arg1: i32, %arg2: memref<1x32x128xf32, #tpu.memory_space<vmem>>, %arg3: memref<1x1x1xf32, #tpu.memory_space<vmem>>, %arg4: memref<128x128xf32, #tpu.memory_space<vmem>>, %arg5: memref<1x128xf32, #tpu.memory_space<vmem>>, %arg6: memref<128x128xf32, #tpu.memory_space<vmem>>, %arg7: memref<1x128xf32, #tpu.memory_space<vmem>>, %arg8: memref<1x1x128xf32, #tpu.memory_space<vmem>>, %arg9: memref<1x128xf32, #tpu.memory_space<vmem>>) attributes {dimension_semantics = [#tpu.dimension_semantics<parallel>, #tpu.dimension_semantics<arbitrary>], iteration_bounds = array<i64: 2, 1>, scalar_prefetch = 0 : i64, scratch_operands = 1 : i64, tpu.core_type = #tpu.core_type<tc>, window_params = [{transform_indices = @transform_0, window_bounds = array<i64: 1, 32, 128>}, {transform_indices = @transform_1, window_bounds = array<i64: 1, 1, 1>}, {pipeline_mode = #tpu.pipeline_mode<synchronous>, transform_indices = @transform_2, window_bounds = array<i64: 128, 128>}, {pipeline_mode = #tpu.pipeline_mode<synchronous>, transform_indices = @transform_3, window_bounds = array<i64: 1, 128>}, {pipeline_mode = #tpu.pipeline_mode<synchronous>, transform_indices = @transform_4, window_bounds = array<i64: 128, 128>}, {pipeline_mode = #tpu.pipeline_mode<synchronous>, transform_indices = @transform_5, window_bounds = array<i64: 1, 128>}, {transform_indices = @transform_6, window_bounds = array<i64: 1, 1, 128>}]} {
    %c0_i32 = arith.constant 0 : i32
    %0 = arith.cmpi eq, %arg1, %c0_i32 : i32
    %1 = arith.extui %0 : i1 to i32
    %c0_i32_0 = arith.constant 0 : i32
    %2 = arith.cmpi ne, %1, %c0_i32_0 : i32
    scf.if %2 {
      %cst_9 = arith.constant 0.000000e+00 : f32
      %11 = vector.broadcast %cst_9 : f32 to vector<1x128xf32>
      %c0_10 = arith.constant 0 : index
      %c0_11 = arith.constant 0 : index
      %12 = vector.load %arg9[%c0_10, %c0_11] : memref<1x128xf32, #tpu.memory_space<vmem>>, vector<1x128xf32>
      tpu.vector_store %arg9[%c0_10, %c0_11], %11 {strides = array<i32>} : memref<1x128xf32, #tpu.memory_space<vmem>>, vector<1x128xf32>,
    } else {
    }
    %c0 = arith.constant 0 : index
    %c0_1 = arith.constant 0 : index
    %3 = vector.load %arg9[%c0, %c0_1] : memref<1x128xf32, #tpu.memory_space<vmem>>, vector<1x128xf32>
    %c0_2 = arith.constant 0 : index
    %c0_3 = arith.constant 0 : index
    %c0_4 = arith.constant 0 : index
    %4 = vector.load %arg2[%c0_2, %c0_3, %c0_4] : memref<1x32x128xf32, #tpu.memory_space<vmem>>, vector<1x32x128xf32>
    %cst = arith.constant dense<0.000000e+00> : vector<1x128xf32>
    %5 = vector.multi_reduction <add>, %4, %cst [1] : vector<1x32x128xf32> to vector<1x128xf32>
    %6 = arith.addf %3, %5 : vector<1x128xf32>
    %c0_5 = arith.constant 0 : index
    %c0_6 = arith.constant 0 : index
    %7 = vector.load %arg9[%c0_5, %c0_6] : memref<1x128xf32, #tpu.memory_space<vmem>>, vector<1x128xf32>
    tpu.vector_store %arg9[%c0_5, %c0_6], %6 {strides = array<i32>} : memref<1x128xf32, #tpu.memory_space<vmem>>, vector<1x128xf32>,
    %c0_i32_7 = arith.constant 0 : i32
    %8 = arith.cmpi eq, %arg1, %c0_i32_7 : i32
    %9 = arith.extui %8 : i1 to i32
    %c0_i32_8 = arith.constant 0 : i32
    %10 = arith.cmpi ne, %9, %c0_i32_8 : i32
    scf.if %10 {
      %c0_9 = arith.constant 0 : index
      %c0_10 = arith.constant 0 : index
      %11 = vector.load %arg9[%c0_9, %c0_10] : memref<1x128xf32, #tpu.memory_space<vmem>>, vector<1x128xf32>
      %c0_11 = arith.constant 0 : index
      %c0_12 = arith.constant 0 : index
      %c0_13 = arith.constant 0 : index
      %12 = vector.load %arg3[%c0_11, %c0_12, %c0_13] : memref<1x1x1xf32, #tpu.memory_space<vmem>>, vector<1x1x1xf32>
      %13 = vector.shape_cast %12 : vector<1x1x1xf32> to vector<1x1xf32>
      %14 = vector.broadcast %13 : vector<1x1xf32> to vector<1x128xf32>
      %15 = arith.divf %11, %14 : vector<1x128xf32>
      %c0_14 = arith.constant 0 : index
      %c0_15 = arith.constant 0 : index
      %16 = vector.load %arg4[%c0_14, %c0_15] : memref<128x128xf32, #tpu.memory_space<vmem>>, vector<128x128xf32>
      %cst_16 = arith.constant dense<0.000000e+00> : vector<1x128xf32>
      %17 = tpu.matmul %15, %16, %cst_16 {dimension_numbers = #tpu.dot_dimension_numbers<[1], [0], [0], [1], [0, 0, 1, 1], [], []>} : vector<1x128xf32>, vector<128x128xf32>, vector<1x128xf32> -> vector<1x128xf32>
      %c0_17 = arith.constant 0 : index
      %c0_18 = arith.constant 0 : index
      %18 = vector.load %arg5[%c0_17, %c0_18] : memref<1x128xf32, #tpu.memory_space<vmem>>, vector<1x128xf32>
      %19 = arith.addf %17, %18 : vector<1x128xf32>
      %20 = arith.negf %19 : vector<1x128xf32>
      %21 = math.exp %20 : vector<1x128xf32>
      %cst_19 = arith.constant 1.000000e+00 : f32
      %22 = vector.broadcast %cst_19 : f32 to vector<1x128xf32>
      %23 = arith.addf %22, %21 : vector<1x128xf32>
      %24 = arith.divf %22, %23 : vector<1x128xf32>
      %25 = arith.mulf %19, %24 : vector<1x128xf32>
      %c0_20 = arith.constant 0 : index
      %c0_21 = arith.constant 0 : index
      %26 = vector.load %arg6[%c0_20, %c0_21] : memref<128x128xf32, #tpu.memory_space<vmem>>, vector<128x128xf32>
      %cst_22 = arith.constant dense<0.000000e+00> : vector<1x128xf32>
      %27 = tpu.matmul %25, %26, %cst_22 {dimension_numbers = #tpu.dot_dimension_numbers<[1], [0], [0], [1], [0, 0, 1, 1], [], []>} : vector<1x128xf32>, vector<128x128xf32>, vector<1x128xf32> -> vector<1x128xf32>
      %c0_23 = arith.constant 0 : index
      %c0_24 = arith.constant 0 : index
      %28 = vector.load %arg7[%c0_23, %c0_24] : memref<1x128xf32, #tpu.memory_space<vmem>>, vector<1x128xf32>
      %29 = arith.addf %27, %28 : vector<1x128xf32>
      %30 = arith.negf %29 : vector<1x128xf32>
      %31 = math.exp %30 : vector<1x128xf32>
      %cst_25 = arith.constant 1.000000e+00 : f32
      %32 = vector.broadcast %cst_25 : f32 to vector<1x128xf32>
      %33 = arith.addf %32, %31 : vector<1x128xf32>
      %34 = arith.divf %32, %33 : vector<1x128xf32>
      %35 = vector.shape_cast %34 : vector<1x128xf32> to vector<1x1x128xf32>
      %c0_26 = arith.constant 0 : index
      %c0_27 = arith.constant 0 : index
      %c0_28 = arith.constant 0 : index
      %36 = vector.load %arg8[%c0_26, %c0_27, %c0_28] : memref<1x1x128xf32, #tpu.memory_space<vmem>>, vector<1x1x128xf32>
      tpu.vector_store %arg8[%c0_26, %c0_27, %c0_28], %35 {strides = array<i32>} : memref<1x1x128xf32, #tpu.memory_space<vmem>>, vector<1x1x128xf32>,
    } else {
    }
    return
  }
  func.func @transform_0(%arg0: i32, %arg1: i32) -> (i32, i32, i32) {
    %c0_i32 = arith.constant 0 : i32
    %c0_i32_0 = arith.constant 0 : i32
    return %arg0, %arg1, %c0_i32 : i32, i32, i32
  }
  func.func @transform_1(%arg0: i32, %arg1: i32) -> (i32, i32, i32) {
    %c0_i32 = arith.constant 0 : i32
    %c0_i32_0 = arith.constant 0 : i32
    %c0_i32_1 = arith.constant 0 : i32
    return %arg0, %c0_i32, %c0_i32_0 : i32, i32, i32
  }
  func.func @transform_2(%arg0: i32, %arg1: i32) -> (i32, i32) {
    %c0_i32 = arith.constant 0 : i32
    %c0_i32_0 = arith.constant 0 : i32
    %c0_i32_1 = arith.constant 0 : i32
    return %c0_i32, %c0_i32_0 : i32, i32
  }
  func.func @transform_3(%arg0: i32, %arg1: i32) -> (i32, i32) {
    %c0_i32 = arith.constant 0 : i32
    %c0_i32_0 = arith.constant 0 : i32
    %c0_i32_1 = arith.constant 0 : i32
    return %c0_i32, %c0_i32_0 : i32, i32
  }
  func.func @transform_4(%arg0: i32, %arg1: i32) -> (i32, i32) {
    %c0_i32 = arith.constant 0 : i32
    %c0_i32_0 = arith.constant 0 : i32
    %c0_i32_1 = arith.constant 0 : i32
    return %c0_i32, %c0_i32_0 : i32, i32
  }
  func.func @transform_5(%arg0: i32, %arg1: i32) -> (i32, i32) {
    %c0_i32 = arith.constant 0 : i32
    %c0_i32_0 = arith.constant 0 : i32
    %c0_i32_1 = arith.constant 0 : i32
    return %c0_i32, %c0_i32_0 : i32, i32
  }
  func.func @transform_6(%arg0: i32, %arg1: i32) -> (i32, i32, i32) {
    %c0_i32 = arith.constant 0 : i32
    %c0_i32_0 = arith.constant 0 : i32
    %c0_i32_1 = arith.constant 0 : i32
    return %arg0, %c0_i32, %c0_i32_0 : i32, i32, i32
  }
}

module attributes {stable_mosaic.version = 11 : i64} {
  func.func @_se_apply_kernel(%arg0: i32, %arg1: i32, %arg2: memref<1x32x128xf32, #tpu.memory_space<vmem>>, %arg3: memref<1x1x128xf32, #tpu.memory_space<vmem>>, %arg4: memref<1x32x128xf32, #tpu.memory_space<vmem>>) attributes {dimension_semantics = [#tpu.dimension_semantics<parallel>, #tpu.dimension_semantics<parallel>], iteration_bounds = array<i64: 2, 1>, scalar_prefetch = 0 : i64, scratch_operands = 0 : i64, tpu.core_type = #tpu.core_type<tc>, window_params = [{transform_indices = @transform_0, window_bounds = array<i64: 1, 32, 128>}, {transform_indices = @transform_1, window_bounds = array<i64: 1, 1, 128>}, {transform_indices = @transform_2, window_bounds = array<i64: 1, 32, 128>}]} {
    %c0 = arith.constant 0 : index
    %c0_0 = arith.constant 0 : index
    %c0_1 = arith.constant 0 : index
    %0 = vector.load %arg2[%c0, %c0_0, %c0_1] : memref<1x32x128xf32, #tpu.memory_space<vmem>>, vector<1x32x128xf32>
    %c0_2 = arith.constant 0 : index
    %c0_3 = arith.constant 0 : index
    %c0_4 = arith.constant 0 : index
    %1 = vector.load %arg3[%c0_2, %c0_3, %c0_4] : memref<1x1x128xf32, #tpu.memory_space<vmem>>, vector<1x1x128xf32>
    %2 = vector.broadcast %1 : vector<1x1x128xf32> to vector<1x32x128xf32>
    %3 = arith.mulf %0, %2 : vector<1x32x128xf32>
    %4 = arith.negf %3 : vector<1x32x128xf32>
    %5 = math.exp %4 : vector<1x32x128xf32>
    %cst = arith.constant 1.000000e+00 : f32
    %6 = vector.broadcast %cst : f32 to vector<1x32x128xf32>
    %7 = arith.addf %6, %5 : vector<1x32x128xf32>
    %8 = arith.divf %6, %7 : vector<1x32x128xf32>
    %9 = arith.mulf %3, %8 : vector<1x32x128xf32>
    %c0_5 = arith.constant 0 : index
    %c0_6 = arith.constant 0 : index
    %c0_7 = arith.constant 0 : index
    %10 = vector.load %arg4[%c0_5, %c0_6, %c0_7] : memref<1x32x128xf32, #tpu.memory_space<vmem>>, vector<1x32x128xf32>
    tpu.vector_store %arg4[%c0_5, %c0_6, %c0_7], %9 {strides = array<i32>} : memref<1x32x128xf32, #tpu.memory_space<vmem>>, vector<1x32x128xf32>,
    return
  }
  func.func @transform_0(%arg0: i32, %arg1: i32) -> (i32, i32, i32) {
    %c0_i32 = arith.constant 0 : i32
    %c0_i32_0 = arith.constant 0 : i32
    return %arg0, %arg1, %c0_i32 : i32, i32, i32
  }
  func.func @transform_1(%arg0: i32, %arg1: i32) -> (i32, i32, i32) {
    %c0_i32 = arith.constant 0 : i32
    %c0_i32_0 = arith.constant 0 : i32
    %c0_i32_1 = arith.constant 0 : i32
    return %arg0, %c0_i32, %c0_i32_0 : i32, i32, i32
  }
  func.func @transform_2(%arg0: i32, %arg1: i32) -> (i32, i32, i32) {
    %c0_i32 = arith.constant 0 : i32
    %c0_i32_0 = arith.constant 0 : i32
    return %arg0, %arg1, %c0_i32 : i32, i32, i32
  }
}

module attributes {stable_mosaic.version = 11 : i64} {
  func.func @_se_apply_kernel(%arg0: i32, %arg1: i32, %arg2: memref<1x32x128xf32, #tpu.memory_space<vmem>>, %arg3: memref<1x1x128xf32, #tpu.memory_space<vmem>>, %arg4: memref<1x32x128xf32, #tpu.memory_space<vmem>>, %arg5: memref<1x32x128xf32, #tpu.memory_space<vmem>>) attributes {dimension_semantics = [#tpu.dimension_semantics<parallel>, #tpu.dimension_semantics<parallel>], iteration_bounds = array<i64: 2, 1>, scalar_prefetch = 0 : i64, scratch_operands = 0 : i64, tpu.core_type = #tpu.core_type<tc>, window_params = [{transform_indices = @transform_0, window_bounds = array<i64: 1, 32, 128>}, {transform_indices = @transform_1, window_bounds = array<i64: 1, 1, 128>}, {transform_indices = @transform_2, window_bounds = array<i64: 1, 32, 128>}, {transform_indices = @transform_3, window_bounds = array<i64: 1, 32, 128>}]} {
    %c0 = arith.constant 0 : index
    %c0_0 = arith.constant 0 : index
    %c0_1 = arith.constant 0 : index
    %0 = vector.load %arg2[%c0, %c0_0, %c0_1] : memref<1x32x128xf32, #tpu.memory_space<vmem>>, vector<1x32x128xf32>
    %c0_2 = arith.constant 0 : index
    %c0_3 = arith.constant 0 : index
    %c0_4 = arith.constant 0 : index
    %1 = vector.load %arg3[%c0_2, %c0_3, %c0_4] : memref<1x1x128xf32, #tpu.memory_space<vmem>>, vector<1x1x128xf32>
    %2 = vector.broadcast %1 : vector<1x1x128xf32> to vector<1x32x128xf32>
    %3 = arith.mulf %0, %2 : vector<1x32x128xf32>
    %c0_5 = arith.constant 0 : index
    %c0_6 = arith.constant 0 : index
    %c0_7 = arith.constant 0 : index
    %4 = vector.load %arg4[%c0_5, %c0_6, %c0_7] : memref<1x32x128xf32, #tpu.memory_space<vmem>>, vector<1x32x128xf32>
    %5 = arith.addf %3, %4 : vector<1x32x128xf32>
    %6 = arith.negf %5 : vector<1x32x128xf32>
    %7 = math.exp %6 : vector<1x32x128xf32>
    %cst = arith.constant 1.000000e+00 : f32
    %8 = vector.broadcast %cst : f32 to vector<1x32x128xf32>
    %9 = arith.addf %8, %7 : vector<1x32x128xf32>
    %10 = arith.divf %8, %9 : vector<1x32x128xf32>
    %11 = arith.mulf %5, %10 : vector<1x32x128xf32>
    %c0_8 = arith.constant 0 : index
    %c0_9 = arith.constant 0 : index
    %c0_10 = arith.constant 0 : index
    %12 = vector.load %arg5[%c0_8, %c0_9, %c0_10] : memref<1x32x128xf32, #tpu.memory_space<vmem>>, vector<1x32x128xf32>
    tpu.vector_store %arg5[%c0_8, %c0_9, %c0_10], %11 {strides = array<i32>} : memref<1x32x128xf32, #tpu.memory_space<vmem>>, vector<1x32x128xf32>,
    return
  }
  func.func @transform_0(%arg0: i32, %arg1: i32) -> (i32, i32, i32) {
    %c0_i32 = arith.constant 0 : i32
    %c0_i32_0 = arith.constant 0 : i32
    return %arg0, %arg1, %c0_i32 : i32, i32, i32
  }
  func.func @transform_1(%arg0: i32, %arg1: i32) -> (i32, i32, i32) {
    %c0_i32 = arith.constant 0 : i32
    %c0_i32_0 = arith.constant 0 : i32
    %c0_i32_1 = arith.constant 0 : i32
    return %arg0, %c0_i32, %c0_i32_0 : i32, i32, i32
  }
  func.func @transform_2(%arg0: i32, %arg1: i32) -> (i32, i32, i32) {
    %c0_i32 = arith.constant 0 : i32
    %c0_i32_0 = arith.constant 0 : i32
    return %arg0, %arg1, %c0_i32 : i32, i32, i32
  }
  func.func @transform_3(%arg0: i32, %arg1: i32) -> (i32, i32, i32) {
    %c0_i32 = arith.constant 0 : i32
    %c0_i32_0 = arith.constant 0 : i32
    return %arg0, %arg1, %c0_i32 : i32, i32, i32
  }
}

module attributes {stable_mosaic.version = 11 : i64} {
  func.func @_gemm_bias_act_kernel(%arg0: i32, %arg1: i32, %arg2: memref<64x640xbf16, #tpu.memory_space<vmem>>, %arg3: memref<640x128xbf16, #tpu.memory_space<vmem>>, %arg4: memref<1x128xf32, #tpu.memory_space<vmem>>, %arg5: memref<64x128xf32, #tpu.memory_space<vmem>>) attributes {dimension_semantics = [#tpu.dimension_semantics<parallel>, #tpu.dimension_semantics<parallel>], iteration_bounds = array<i64: 1, 1>, scalar_prefetch = 0 : i64, scratch_operands = 0 : i64, tpu.core_type = #tpu.core_type<tc>, window_params = [{transform_indices = @transform_0, window_bounds = array<i64: 64, 640>}, {transform_indices = @transform_1, window_bounds = array<i64: 640, 128>}, {transform_indices = @transform_2, window_bounds = array<i64: 1, 128>}, {transform_indices = @transform_3, window_bounds = array<i64: 64, 128>}]} {
    %c0 = arith.constant 0 : index
    %c0_0 = arith.constant 0 : index
    %0 = vector.load %arg2[%c0, %c0_0] : memref<64x640xbf16, #tpu.memory_space<vmem>>, vector<64x640xbf16>
    %c0_1 = arith.constant 0 : index
    %c0_2 = arith.constant 0 : index
    %1 = vector.load %arg3[%c0_1, %c0_2] : memref<640x128xbf16, #tpu.memory_space<vmem>>, vector<640x128xbf16>
    %cst = arith.constant dense<0.000000e+00> : vector<64x128xf32>
    %2 = tpu.matmul %0, %1, %cst {dimension_numbers = #tpu.dot_dimension_numbers<[1], [0], [0], [1], [0, 0, 1, 1], [], []>} : vector<64x640xbf16>, vector<640x128xbf16>, vector<64x128xf32> -> vector<64x128xf32>
    %c0_3 = arith.constant 0 : index
    %c0_4 = arith.constant 0 : index
    %3 = vector.load %arg4[%c0_3, %c0_4] : memref<1x128xf32, #tpu.memory_space<vmem>>, vector<1x128xf32>
    %4 = vector.broadcast %3 : vector<1x128xf32> to vector<64x128xf32>
    %5 = arith.addf %2, %4 : vector<64x128xf32>
    %c0_5 = arith.constant 0 : index
    %c0_6 = arith.constant 0 : index
    %6 = vector.load %arg5[%c0_5, %c0_6] : memref<64x128xf32, #tpu.memory_space<vmem>>, vector<64x128xf32>
    tpu.vector_store %arg5[%c0_5, %c0_6], %5 {strides = array<i32>} : memref<64x128xf32, #tpu.memory_space<vmem>>, vector<64x128xf32>,
    return
  }
  func.func @transform_0(%arg0: i32, %arg1: i32) -> (i32, i32) {
    %c0_i32 = arith.constant 0 : i32
    %c0_i32_0 = arith.constant 0 : i32
    return %arg0, %c0_i32 : i32, i32
  }
  func.func @transform_1(%arg0: i32, %arg1: i32) -> (i32, i32) {
    %c0_i32 = arith.constant 0 : i32
    %c0_i32_0 = arith.constant 0 : i32
    return %c0_i32, %arg1 : i32, i32
  }
  func.func @transform_2(%arg0: i32, %arg1: i32) -> (i32, i32) {
    %c0_i32 = arith.constant 0 : i32
    %c0_i32_0 = arith.constant 0 : i32
    return %c0_i32, %arg1 : i32, i32
  }
  func.func @transform_3(%arg0: i32, %arg1: i32) -> (i32, i32) {
    %c0_i32 = arith.constant 0 : i32
    return %arg0, %arg1 : i32, i32
  }
}

module attributes {stable_mosaic.version = 11 : i64} {
  func.func @_gemm_bias_act_kernel(%arg0: i32, %arg1: i32, %arg2: memref<32x640xbf16, #tpu.memory_space<vmem>>, %arg3: memref<640x128xbf16, #tpu.memory_space<vmem>>, %arg4: memref<1x128xf32, #tpu.memory_space<vmem>>, %arg5: memref<32x128xf32, #tpu.memory_space<vmem>>) attributes {dimension_semantics = [#tpu.dimension_semantics<parallel>, #tpu.dimension_semantics<parallel>], iteration_bounds = array<i64: 1, 1>, scalar_prefetch = 0 : i64, scratch_operands = 0 : i64, tpu.core_type = #tpu.core_type<tc>, window_params = [{transform_indices = @transform_0, window_bounds = array<i64: 32, 640>}, {transform_indices = @transform_1, window_bounds = array<i64: 640, 128>}, {transform_indices = @transform_2, window_bounds = array<i64: 1, 128>}, {transform_indices = @transform_3, window_bounds = array<i64: 32, 128>}]} {
    %c0 = arith.constant 0 : index
    %c0_0 = arith.constant 0 : index
    %0 = vector.load %arg2[%c0, %c0_0] : memref<32x640xbf16, #tpu.memory_space<vmem>>, vector<32x640xbf16>
    %c0_1 = arith.constant 0 : index
    %c0_2 = arith.constant 0 : index
    %1 = vector.load %arg3[%c0_1, %c0_2] : memref<640x128xbf16, #tpu.memory_space<vmem>>, vector<640x128xbf16>
    %cst = arith.constant dense<0.000000e+00> : vector<32x128xf32>
    %2 = tpu.matmul %0, %1, %cst {dimension_numbers = #tpu.dot_dimension_numbers<[1], [0], [0], [1], [0, 0, 1, 1], [], []>} : vector<32x640xbf16>, vector<640x128xbf16>, vector<32x128xf32> -> vector<32x128xf32>
    %c0_3 = arith.constant 0 : index
    %c0_4 = arith.constant 0 : index
    %3 = vector.load %arg4[%c0_3, %c0_4] : memref<1x128xf32, #tpu.memory_space<vmem>>, vector<1x128xf32>
    %4 = vector.broadcast %3 : vector<1x128xf32> to vector<32x128xf32>
    %5 = arith.addf %2, %4 : vector<32x128xf32>
    %c0_5 = arith.constant 0 : index
    %c0_6 = arith.constant 0 : index
    %6 = vector.load %arg5[%c0_5, %c0_6] : memref<32x128xf32, #tpu.memory_space<vmem>>, vector<32x128xf32>
    tpu.vector_store %arg5[%c0_5, %c0_6], %5 {strides = array<i32>} : memref<32x128xf32, #tpu.memory_space<vmem>>, vector<32x128xf32>,
    return
  }
  func.func @transform_0(%arg0: i32, %arg1: i32) -> (i32, i32) {
    %c0_i32 = arith.constant 0 : i32
    %c0_i32_0 = arith.constant 0 : i32
    return %arg0, %c0_i32 : i32, i32
  }
  func.func @transform_1(%arg0: i32, %arg1: i32) -> (i32, i32) {
    %c0_i32 = arith.constant 0 : i32
    %c0_i32_0 = arith.constant 0 : i32
    return %c0_i32, %arg1 : i32, i32
  }
  func.func @transform_2(%arg0: i32, %arg1: i32) -> (i32, i32) {
    %c0_i32 = arith.constant 0 : i32
    %c0_i32_0 = arith.constant 0 : i32
    return %c0_i32, %arg1 : i32, i32
  }
  func.func @transform_3(%arg0: i32, %arg1: i32) -> (i32, i32) {
    %c0_i32 = arith.constant 0 : i32
    return %arg0, %arg1 : i32, i32
  }
}

module attributes {stable_mosaic.version = 11 : i64} {
  func.func @_gemm_bias_act_kernel(%arg0: i32, %arg1: i32, %arg2: memref<32x640xbf16, #tpu.memory_space<vmem>>, %arg3: memref<640x128xbf16, #tpu.memory_space<vmem>>, %arg4: memref<1x128xf32, #tpu.memory_space<vmem>>, %arg5: memref<32x128xf32, #tpu.memory_space<vmem>>) attributes {dimension_semantics = [#tpu.dimension_semantics<parallel>, #tpu.dimension_semantics<parallel>], iteration_bounds = array<i64: 1, 1>, scalar_prefetch = 0 : i64, scratch_operands = 0 : i64, tpu.core_type = #tpu.core_type<tc>, window_params = [{transform_indices = @transform_0, window_bounds = array<i64: 32, 640>}, {transform_indices = @transform_1, window_bounds = array<i64: 640, 128>}, {transform_indices = @transform_2, window_bounds = array<i64: 1, 128>}, {transform_indices = @transform_3, window_bounds = array<i64: 32, 128>}]} {
    %c0 = arith.constant 0 : index
    %c0_0 = arith.constant 0 : index
    %0 = vector.load %arg2[%c0, %c0_0] : memref<32x640xbf16, #tpu.memory_space<vmem>>, vector<32x640xbf16>
    %c0_1 = arith.constant 0 : index
    %c0_2 = arith.constant 0 : index
    %1 = vector.load %arg3[%c0_1, %c0_2] : memref<640x128xbf16, #tpu.memory_space<vmem>>, vector<640x128xbf16>
    %cst = arith.constant dense<0.000000e+00> : vector<32x128xf32>
    %2 = tpu.matmul %0, %1, %cst {dimension_numbers = #tpu.dot_dimension_numbers<[1], [0], [0], [1], [0, 0, 1, 1], [], []>} : vector<32x640xbf16>, vector<640x128xbf16>, vector<32x128xf32> -> vector<32x128xf32>
    %c0_3 = arith.constant 0 : index
    %c0_4 = arith.constant 0 : index
    %3 = vector.load %arg4[%c0_3, %c0_4] : memref<1x128xf32, #tpu.memory_space<vmem>>, vector<1x128xf32>
    %4 = vector.broadcast %3 : vector<1x128xf32> to vector<32x128xf32>
    %5 = arith.addf %2, %4 : vector<32x128xf32>
    %6 = arith.negf %5 : vector<32x128xf32>
    %7 = math.exp %6 : vector<32x128xf32>
    %cst_5 = arith.constant 1.000000e+00 : f32
    %8 = vector.broadcast %cst_5 : f32 to vector<32x128xf32>
    %9 = arith.addf %8, %7 : vector<32x128xf32>
    %10 = arith.divf %8, %9 : vector<32x128xf32>
    %11 = arith.mulf %5, %10 : vector<32x128xf32>
    %c0_6 = arith.constant 0 : index
    %c0_7 = arith.constant 0 : index
    %12 = vector.load %arg5[%c0_6, %c0_7] : memref<32x128xf32, #tpu.memory_space<vmem>>, vector<32x128xf32>
    tpu.vector_store %arg5[%c0_6, %c0_7], %11 {strides = array<i32>} : memref<32x128xf32, #tpu.memory_space<vmem>>, vector<32x128xf32>,
    return
  }
  func.func @transform_0(%arg0: i32, %arg1: i32) -> (i32, i32) {
    %c0_i32 = arith.constant 0 : i32
    %c0_i32_0 = arith.constant 0 : i32
    return %arg0, %c0_i32 : i32, i32
  }
  func.func @transform_1(%arg0: i32, %arg1: i32) -> (i32, i32) {
    %c0_i32 = arith.constant 0 : i32
    %c0_i32_0 = arith.constant 0 : i32
    return %c0_i32, %arg1 : i32, i32
  }
  func.func @transform_2(%arg0: i32, %arg1: i32) -> (i32, i32) {
    %c0_i32 = arith.constant 0 : i32
    %c0_i32_0 = arith.constant 0 : i32
    return %c0_i32, %arg1 : i32, i32
  }
  func.func @transform_3(%arg0: i32, %arg1: i32) -> (i32, i32) {
    %c0_i32 = arith.constant 0 : i32
    return %arg0, %arg1 : i32, i32
  }
}

module attributes {stable_mosaic.version = 11 : i64} {
  func.func @_se_gate_kernel(%arg0: i32, %arg1: i32, %arg2: memref<1x16x128xf32, #tpu.memory_space<vmem>>, %arg3: memref<1x1x1xf32, #tpu.memory_space<vmem>>, %arg4: memref<128x128xf32, #tpu.memory_space<vmem>>, %arg5: memref<1x128xf32, #tpu.memory_space<vmem>>, %arg6: memref<128x128xf32, #tpu.memory_space<vmem>>, %arg7: memref<1x128xf32, #tpu.memory_space<vmem>>, %arg8: memref<1x1x128xf32, #tpu.memory_space<vmem>>, %arg9: memref<1x128xf32, #tpu.memory_space<vmem>>) attributes {dimension_semantics = [#tpu.dimension_semantics<parallel>, #tpu.dimension_semantics<arbitrary>], iteration_bounds = array<i64: 2, 1>, scalar_prefetch = 0 : i64, scratch_operands = 1 : i64, tpu.core_type = #tpu.core_type<tc>, window_params = [{transform_indices = @transform_0, window_bounds = array<i64: 1, 16, 128>}, {transform_indices = @transform_1, window_bounds = array<i64: 1, 1, 1>}, {pipeline_mode = #tpu.pipeline_mode<synchronous>, transform_indices = @transform_2, window_bounds = array<i64: 128, 128>}, {pipeline_mode = #tpu.pipeline_mode<synchronous>, transform_indices = @transform_3, window_bounds = array<i64: 1, 128>}, {pipeline_mode = #tpu.pipeline_mode<synchronous>, transform_indices = @transform_4, window_bounds = array<i64: 128, 128>}, {pipeline_mode = #tpu.pipeline_mode<synchronous>, transform_indices = @transform_5, window_bounds = array<i64: 1, 128>}, {transform_indices = @transform_6, window_bounds = array<i64: 1, 1, 128>}]} {
    %c0_i32 = arith.constant 0 : i32
    %0 = arith.cmpi eq, %arg1, %c0_i32 : i32
    %1 = arith.extui %0 : i1 to i32
    %c0_i32_0 = arith.constant 0 : i32
    %2 = arith.cmpi ne, %1, %c0_i32_0 : i32
    scf.if %2 {
      %cst_9 = arith.constant 0.000000e+00 : f32
      %11 = vector.broadcast %cst_9 : f32 to vector<1x128xf32>
      %c0_10 = arith.constant 0 : index
      %c0_11 = arith.constant 0 : index
      %12 = vector.load %arg9[%c0_10, %c0_11] : memref<1x128xf32, #tpu.memory_space<vmem>>, vector<1x128xf32>
      tpu.vector_store %arg9[%c0_10, %c0_11], %11 {strides = array<i32>} : memref<1x128xf32, #tpu.memory_space<vmem>>, vector<1x128xf32>,
    } else {
    }
    %c0 = arith.constant 0 : index
    %c0_1 = arith.constant 0 : index
    %3 = vector.load %arg9[%c0, %c0_1] : memref<1x128xf32, #tpu.memory_space<vmem>>, vector<1x128xf32>
    %c0_2 = arith.constant 0 : index
    %c0_3 = arith.constant 0 : index
    %c0_4 = arith.constant 0 : index
    %4 = vector.load %arg2[%c0_2, %c0_3, %c0_4] : memref<1x16x128xf32, #tpu.memory_space<vmem>>, vector<1x16x128xf32>
    %cst = arith.constant dense<0.000000e+00> : vector<1x128xf32>
    %5 = vector.multi_reduction <add>, %4, %cst [1] : vector<1x16x128xf32> to vector<1x128xf32>
    %6 = arith.addf %3, %5 : vector<1x128xf32>
    %c0_5 = arith.constant 0 : index
    %c0_6 = arith.constant 0 : index
    %7 = vector.load %arg9[%c0_5, %c0_6] : memref<1x128xf32, #tpu.memory_space<vmem>>, vector<1x128xf32>
    tpu.vector_store %arg9[%c0_5, %c0_6], %6 {strides = array<i32>} : memref<1x128xf32, #tpu.memory_space<vmem>>, vector<1x128xf32>,
    %c0_i32_7 = arith.constant 0 : i32
    %8 = arith.cmpi eq, %arg1, %c0_i32_7 : i32
    %9 = arith.extui %8 : i1 to i32
    %c0_i32_8 = arith.constant 0 : i32
    %10 = arith.cmpi ne, %9, %c0_i32_8 : i32
    scf.if %10 {
      %c0_9 = arith.constant 0 : index
      %c0_10 = arith.constant 0 : index
      %11 = vector.load %arg9[%c0_9, %c0_10] : memref<1x128xf32, #tpu.memory_space<vmem>>, vector<1x128xf32>
      %c0_11 = arith.constant 0 : index
      %c0_12 = arith.constant 0 : index
      %c0_13 = arith.constant 0 : index
      %12 = vector.load %arg3[%c0_11, %c0_12, %c0_13] : memref<1x1x1xf32, #tpu.memory_space<vmem>>, vector<1x1x1xf32>
      %13 = vector.shape_cast %12 : vector<1x1x1xf32> to vector<1x1xf32>
      %14 = vector.broadcast %13 : vector<1x1xf32> to vector<1x128xf32>
      %15 = arith.divf %11, %14 : vector<1x128xf32>
      %c0_14 = arith.constant 0 : index
      %c0_15 = arith.constant 0 : index
      %16 = vector.load %arg4[%c0_14, %c0_15] : memref<128x128xf32, #tpu.memory_space<vmem>>, vector<128x128xf32>
      %cst_16 = arith.constant dense<0.000000e+00> : vector<1x128xf32>
      %17 = tpu.matmul %15, %16, %cst_16 {dimension_numbers = #tpu.dot_dimension_numbers<[1], [0], [0], [1], [0, 0, 1, 1], [], []>} : vector<1x128xf32>, vector<128x128xf32>, vector<1x128xf32> -> vector<1x128xf32>
      %c0_17 = arith.constant 0 : index
      %c0_18 = arith.constant 0 : index
      %18 = vector.load %arg5[%c0_17, %c0_18] : memref<1x128xf32, #tpu.memory_space<vmem>>, vector<1x128xf32>
      %19 = arith.addf %17, %18 : vector<1x128xf32>
      %20 = arith.negf %19 : vector<1x128xf32>
      %21 = math.exp %20 : vector<1x128xf32>
      %cst_19 = arith.constant 1.000000e+00 : f32
      %22 = vector.broadcast %cst_19 : f32 to vector<1x128xf32>
      %23 = arith.addf %22, %21 : vector<1x128xf32>
      %24 = arith.divf %22, %23 : vector<1x128xf32>
      %25 = arith.mulf %19, %24 : vector<1x128xf32>
      %c0_20 = arith.constant 0 : index
      %c0_21 = arith.constant 0 : index
      %26 = vector.load %arg6[%c0_20, %c0_21] : memref<128x128xf32, #tpu.memory_space<vmem>>, vector<128x128xf32>
      %cst_22 = arith.constant dense<0.000000e+00> : vector<1x128xf32>
      %27 = tpu.matmul %25, %26, %cst_22 {dimension_numbers = #tpu.dot_dimension_numbers<[1], [0], [0], [1], [0, 0, 1, 1], [], []>} : vector<1x128xf32>, vector<128x128xf32>, vector<1x128xf32> -> vector<1x128xf32>
      %c0_23 = arith.constant 0 : index
      %c0_24 = arith.constant 0 : index
      %28 = vector.load %arg7[%c0_23, %c0_24] : memref<1x128xf32, #tpu.memory_space<vmem>>, vector<1x128xf32>
      %29 = arith.addf %27, %28 : vector<1x128xf32>
      %30 = arith.negf %29 : vector<1x128xf32>
      %31 = math.exp %30 : vector<1x128xf32>
      %cst_25 = arith.constant 1.000000e+00 : f32
      %32 = vector.broadcast %cst_25 : f32 to vector<1x128xf32>
      %33 = arith.addf %32, %31 : vector<1x128xf32>
      %34 = arith.divf %32, %33 : vector<1x128xf32>
      %35 = vector.shape_cast %34 : vector<1x128xf32> to vector<1x1x128xf32>
      %c0_26 = arith.constant 0 : index
      %c0_27 = arith.constant 0 : index
      %c0_28 = arith.constant 0 : index
      %36 = vector.load %arg8[%c0_26, %c0_27, %c0_28] : memref<1x1x128xf32, #tpu.memory_space<vmem>>, vector<1x1x128xf32>
      tpu.vector_store %arg8[%c0_26, %c0_27, %c0_28], %35 {strides = array<i32>} : memref<1x1x128xf32, #tpu.memory_space<vmem>>, vector<1x1x128xf32>,
    } else {
    }
    return
  }
  func.func @transform_0(%arg0: i32, %arg1: i32) -> (i32, i32, i32) {
    %c0_i32 = arith.constant 0 : i32
    %c0_i32_0 = arith.constant 0 : i32
    return %arg0, %arg1, %c0_i32 : i32, i32, i32
  }
  func.func @transform_1(%arg0: i32, %arg1: i32) -> (i32, i32, i32) {
    %c0_i32 = arith.constant 0 : i32
    %c0_i32_0 = arith.constant 0 : i32
    %c0_i32_1 = arith.constant 0 : i32
    return %arg0, %c0_i32, %c0_i32_0 : i32, i32, i32
  }
  func.func @transform_2(%arg0: i32, %arg1: i32) -> (i32, i32) {
    %c0_i32 = arith.constant 0 : i32
    %c0_i32_0 = arith.constant 0 : i32
    %c0_i32_1 = arith.constant 0 : i32
    return %c0_i32, %c0_i32_0 : i32, i32
  }
  func.func @transform_3(%arg0: i32, %arg1: i32) -> (i32, i32) {
    %c0_i32 = arith.constant 0 : i32
    %c0_i32_0 = arith.constant 0 : i32
    %c0_i32_1 = arith.constant 0 : i32
    return %c0_i32, %c0_i32_0 : i32, i32
  }
  func.func @transform_4(%arg0: i32, %arg1: i32) -> (i32, i32) {
    %c0_i32 = arith.constant 0 : i32
    %c0_i32_0 = arith.constant 0 : i32
    %c0_i32_1 = arith.constant 0 : i32
    return %c0_i32, %c0_i32_0 : i32, i32
  }
  func.func @transform_5(%arg0: i32, %arg1: i32) -> (i32, i32) {
    %c0_i32 = arith.constant 0 : i32
    %c0_i32_0 = arith.constant 0 : i32
    %c0_i32_1 = arith.constant 0 : i32
    return %c0_i32, %c0_i32_0 : i32, i32
  }
  func.func @transform_6(%arg0: i32, %arg1: i32) -> (i32, i32, i32) {
    %c0_i32 = arith.constant 0 : i32
    %c0_i32_0 = arith.constant 0 : i32
    %c0_i32_1 = arith.constant 0 : i32
    return %arg0, %c0_i32, %c0_i32_0 : i32, i32, i32
  }
}

module attributes {stable_mosaic.version = 11 : i64} {
  func.func @_se_apply_kernel(%arg0: i32, %arg1: i32, %arg2: memref<1x16x128xf32, #tpu.memory_space<vmem>>, %arg3: memref<1x1x128xf32, #tpu.memory_space<vmem>>, %arg4: memref<1x16x128xf32, #tpu.memory_space<vmem>>, %arg5: memref<1x16x128xf32, #tpu.memory_space<vmem>>) attributes {dimension_semantics = [#tpu.dimension_semantics<parallel>, #tpu.dimension_semantics<parallel>], iteration_bounds = array<i64: 2, 1>, scalar_prefetch = 0 : i64, scratch_operands = 0 : i64, tpu.core_type = #tpu.core_type<tc>, window_params = [{transform_indices = @transform_0, window_bounds = array<i64: 1, 16, 128>}, {transform_indices = @transform_1, window_bounds = array<i64: 1, 1, 128>}, {transform_indices = @transform_2, window_bounds = array<i64: 1, 16, 128>}, {transform_indices = @transform_3, window_bounds = array<i64: 1, 16, 128>}]} {
    %c0 = arith.constant 0 : index
    %c0_0 = arith.constant 0 : index
    %c0_1 = arith.constant 0 : index
    %0 = vector.load %arg2[%c0, %c0_0, %c0_1] : memref<1x16x128xf32, #tpu.memory_space<vmem>>, vector<1x16x128xf32>
    %c0_2 = arith.constant 0 : index
    %c0_3 = arith.constant 0 : index
    %c0_4 = arith.constant 0 : index
    %1 = vector.load %arg3[%c0_2, %c0_3, %c0_4] : memref<1x1x128xf32, #tpu.memory_space<vmem>>, vector<1x1x128xf32>
    %2 = vector.broadcast %1 : vector<1x1x128xf32> to vector<1x16x128xf32>
    %3 = arith.mulf %0, %2 : vector<1x16x128xf32>
    %c0_5 = arith.constant 0 : index
    %c0_6 = arith.constant 0 : index
    %c0_7 = arith.constant 0 : index
    %4 = vector.load %arg4[%c0_5, %c0_6, %c0_7] : memref<1x16x128xf32, #tpu.memory_space<vmem>>, vector<1x16x128xf32>
    %5 = arith.addf %3, %4 : vector<1x16x128xf32>
    %6 = arith.negf %5 : vector<1x16x128xf32>
    %7 = math.exp %6 : vector<1x16x128xf32>
    %cst = arith.constant 1.000000e+00 : f32
    %8 = vector.broadcast %cst : f32 to vector<1x16x128xf32>
    %9 = arith.addf %8, %7 : vector<1x16x128xf32>
    %10 = arith.divf %8, %9 : vector<1x16x128xf32>
    %11 = arith.mulf %5, %10 : vector<1x16x128xf32>
    %c0_8 = arith.constant 0 : index
    %c0_9 = arith.constant 0 : index
    %c0_10 = arith.constant 0 : index
    %12 = vector.load %arg5[%c0_8, %c0_9, %c0_10] : memref<1x16x128xf32, #tpu.memory_space<vmem>>, vector<1x16x128xf32>
    tpu.vector_store %arg5[%c0_8, %c0_9, %c0_10], %11 {strides = array<i32>} : memref<1x16x128xf32, #tpu.memory_space<vmem>>, vector<1x16x128xf32>,
    return
  }
  func.func @transform_0(%arg0: i32, %arg1: i32) -> (i32, i32, i32) {
    %c0_i32 = arith.constant 0 : i32
    %c0_i32_0 = arith.constant 0 : i32
    return %arg0, %arg1, %c0_i32 : i32, i32, i32
  }
  func.func @transform_1(%arg0: i32, %arg1: i32) -> (i32, i32, i32) {
    %c0_i32 = arith.constant 0 : i32
    %c0_i32_0 = arith.constant 0 : i32
    %c0_i32_1 = arith.constant 0 : i32
    return %arg0, %c0_i32, %c0_i32_0 : i32, i32, i32
  }
  func.func @transform_2(%arg0: i32, %arg1: i32) -> (i32, i32, i32) {
    %c0_i32 = arith.constant 0 : i32
    %c0_i32_0 = arith.constant 0 : i32
    return %arg0, %arg1, %c0_i32 : i32, i32, i32
  }
  func.func @transform_3(%arg0: i32, %arg1: i32) -> (i32, i32, i32) {
    %c0_i32 = arith.constant 0 : i32
    %c0_i32_0 = arith.constant 0 : i32
    return %arg0, %arg1, %c0_i32 : i32, i32, i32
  }
}

module attributes {stable_mosaic.version = 11 : i64} {
  func.func @_gemm_bias_act_kernel(%arg0: i32, %arg1: i32, %arg2: memref<16x640xbf16, #tpu.memory_space<vmem>>, %arg3: memref<640x128xbf16, #tpu.memory_space<vmem>>, %arg4: memref<1x128xf32, #tpu.memory_space<vmem>>, %arg5: memref<16x128xf32, #tpu.memory_space<vmem>>) attributes {dimension_semantics = [#tpu.dimension_semantics<parallel>, #tpu.dimension_semantics<parallel>], iteration_bounds = array<i64: 1, 1>, scalar_prefetch = 0 : i64, scratch_operands = 0 : i64, tpu.core_type = #tpu.core_type<tc>, window_params = [{transform_indices = @transform_0, window_bounds = array<i64: 16, 640>}, {transform_indices = @transform_1, window_bounds = array<i64: 640, 128>}, {transform_indices = @transform_2, window_bounds = array<i64: 1, 128>}, {transform_indices = @transform_3, window_bounds = array<i64: 16, 128>}]} {
    %c0 = arith.constant 0 : index
    %c0_0 = arith.constant 0 : index
    %0 = vector.load %arg2[%c0, %c0_0] : memref<16x640xbf16, #tpu.memory_space<vmem>>, vector<16x640xbf16>
    %c0_1 = arith.constant 0 : index
    %c0_2 = arith.constant 0 : index
    %1 = vector.load %arg3[%c0_1, %c0_2] : memref<640x128xbf16, #tpu.memory_space<vmem>>, vector<640x128xbf16>
    %cst = arith.constant dense<0.000000e+00> : vector<16x128xf32>
    %2 = tpu.matmul %0, %1, %cst {dimension_numbers = #tpu.dot_dimension_numbers<[1], [0], [0], [1], [0, 0, 1, 1], [], []>} : vector<16x640xbf16>, vector<640x128xbf16>, vector<16x128xf32> -> vector<16x128xf32>
    %c0_3 = arith.constant 0 : index
    %c0_4 = arith.constant 0 : index
    %3 = vector.load %arg4[%c0_3, %c0_4] : memref<1x128xf32, #tpu.memory_space<vmem>>, vector<1x128xf32>
    %4 = vector.broadcast %3 : vector<1x128xf32> to vector<16x128xf32>
    %5 = arith.addf %2, %4 : vector<16x128xf32>
    %c0_5 = arith.constant 0 : index
    %c0_6 = arith.constant 0 : index
    %6 = vector.load %arg5[%c0_5, %c0_6] : memref<16x128xf32, #tpu.memory_space<vmem>>, vector<16x128xf32>
    tpu.vector_store %arg5[%c0_5, %c0_6], %5 {strides = array<i32>} : memref<16x128xf32, #tpu.memory_space<vmem>>, vector<16x128xf32>,
    return
  }
  func.func @transform_0(%arg0: i32, %arg1: i32) -> (i32, i32) {
    %c0_i32 = arith.constant 0 : i32
    %c0_i32_0 = arith.constant 0 : i32
    return %arg0, %c0_i32 : i32, i32
  }
  func.func @transform_1(%arg0: i32, %arg1: i32) -> (i32, i32) {
    %c0_i32 = arith.constant 0 : i32
    %c0_i32_0 = arith.constant 0 : i32
    return %c0_i32, %arg1 : i32, i32
  }
  func.func @transform_2(%arg0: i32, %arg1: i32) -> (i32, i32) {
    %c0_i32 = arith.constant 0 : i32
    %c0_i32_0 = arith.constant 0 : i32
    return %c0_i32, %arg1 : i32, i32
  }
  func.func @transform_3(%arg0: i32, %arg1: i32) -> (i32, i32) {
    %c0_i32 = arith.constant 0 : i32
    return %arg0, %arg1 : i32, i32
  }
}

module attributes {stable_mosaic.version = 11 : i64} {
  func.func @_gemm_bias_act_kernel(%arg0: i32, %arg1: i32, %arg2: memref<16x640xbf16, #tpu.memory_space<vmem>>, %arg3: memref<640x128xbf16, #tpu.memory_space<vmem>>, %arg4: memref<1x128xf32, #tpu.memory_space<vmem>>, %arg5: memref<16x128xf32, #tpu.memory_space<vmem>>) attributes {dimension_semantics = [#tpu.dimension_semantics<parallel>, #tpu.dimension_semantics<parallel>], iteration_bounds = array<i64: 1, 1>, scalar_prefetch = 0 : i64, scratch_operands = 0 : i64, tpu.core_type = #tpu.core_type<tc>, window_params = [{transform_indices = @transform_0, window_bounds = array<i64: 16, 640>}, {transform_indices = @transform_1, window_bounds = array<i64: 640, 128>}, {transform_indices = @transform_2, window_bounds = array<i64: 1, 128>}, {transform_indices = @transform_3, window_bounds = array<i64: 16, 128>}]} {
    %c0 = arith.constant 0 : index
    %c0_0 = arith.constant 0 : index
    %0 = vector.load %arg2[%c0, %c0_0] : memref<16x640xbf16, #tpu.memory_space<vmem>>, vector<16x640xbf16>
    %c0_1 = arith.constant 0 : index
    %c0_2 = arith.constant 0 : index
    %1 = vector.load %arg3[%c0_1, %c0_2] : memref<640x128xbf16, #tpu.memory_space<vmem>>, vector<640x128xbf16>
    %cst = arith.constant dense<0.000000e+00> : vector<16x128xf32>
    %2 = tpu.matmul %0, %1, %cst {dimension_numbers = #tpu.dot_dimension_numbers<[1], [0], [0], [1], [0, 0, 1, 1], [], []>} : vector<16x640xbf16>, vector<640x128xbf16>, vector<16x128xf32> -> vector<16x128xf32>
    %c0_3 = arith.constant 0 : index
    %c0_4 = arith.constant 0 : index
    %3 = vector.load %arg4[%c0_3, %c0_4] : memref<1x128xf32, #tpu.memory_space<vmem>>, vector<1x128xf32>
    %4 = vector.broadcast %3 : vector<1x128xf32> to vector<16x128xf32>
    %5 = arith.addf %2, %4 : vector<16x128xf32>
    %6 = arith.negf %5 : vector<16x128xf32>
    %7 = math.exp %6 : vector<16x128xf32>
    %cst_5 = arith.constant 1.000000e+00 : f32
    %8 = vector.broadcast %cst_5 : f32 to vector<16x128xf32>
    %9 = arith.addf %8, %7 : vector<16x128xf32>
    %10 = arith.divf %8, %9 : vector<16x128xf32>
    %11 = arith.mulf %5, %10 : vector<16x128xf32>
    %c0_6 = arith.constant 0 : index
    %c0_7 = arith.constant 0 : index
    %12 = vector.load %arg5[%c0_6, %c0_7] : memref<16x128xf32, #tpu.memory_space<vmem>>, vector<16x128xf32>
    tpu.vector_store %arg5[%c0_6, %c0_7], %11 {strides = array<i32>} : memref<16x128xf32, #tpu.memory_space<vmem>>, vector<16x128xf32>,
    return
  }
  func.func @transform_0(%arg0: i32, %arg1: i32) -> (i32, i32) {
    %c0_i32 = arith.constant 0 : i32
    %c0_i32_0 = arith.constant 0 : i32
    return %arg0, %c0_i32 : i32, i32
  }
  func.func @transform_1(%arg0: i32, %arg1: i32) -> (i32, i32) {
    %c0_i32 = arith.constant 0 : i32
    %c0_i32_0 = arith.constant 0 : i32
    return %c0_i32, %arg1 : i32, i32
  }
  func.func @transform_2(%arg0: i32, %arg1: i32) -> (i32, i32) {
    %c0_i32 = arith.constant 0 : i32
    %c0_i32_0 = arith.constant 0 : i32
    return %c0_i32, %arg1 : i32, i32
  }
  func.func @transform_3(%arg0: i32, %arg1: i32) -> (i32, i32) {
    %c0_i32 = arith.constant 0 : i32
    return %arg0, %arg1 : i32, i32
  }
}

module attributes {stable_mosaic.version = 11 : i64} {
  func.func @_se_gate_kernel(%arg0: i32, %arg1: i32, %arg2: memref<1x8x128xf32, #tpu.memory_space<vmem>>, %arg3: memref<1x1x1xf32, #tpu.memory_space<vmem>>, %arg4: memref<128x128xf32, #tpu.memory_space<vmem>>, %arg5: memref<1x128xf32, #tpu.memory_space<vmem>>, %arg6: memref<128x128xf32, #tpu.memory_space<vmem>>, %arg7: memref<1x128xf32, #tpu.memory_space<vmem>>, %arg8: memref<1x1x128xf32, #tpu.memory_space<vmem>>, %arg9: memref<1x128xf32, #tpu.memory_space<vmem>>) attributes {dimension_semantics = [#tpu.dimension_semantics<parallel>, #tpu.dimension_semantics<arbitrary>], iteration_bounds = array<i64: 2, 1>, scalar_prefetch = 0 : i64, scratch_operands = 1 : i64, tpu.core_type = #tpu.core_type<tc>, window_params = [{transform_indices = @transform_0, window_bounds = array<i64: 1, 8, 128>}, {transform_indices = @transform_1, window_bounds = array<i64: 1, 1, 1>}, {pipeline_mode = #tpu.pipeline_mode<synchronous>, transform_indices = @transform_2, window_bounds = array<i64: 128, 128>}, {pipeline_mode = #tpu.pipeline_mode<synchronous>, transform_indices = @transform_3, window_bounds = array<i64: 1, 128>}, {pipeline_mode = #tpu.pipeline_mode<synchronous>, transform_indices = @transform_4, window_bounds = array<i64: 128, 128>}, {pipeline_mode = #tpu.pipeline_mode<synchronous>, transform_indices = @transform_5, window_bounds = array<i64: 1, 128>}, {transform_indices = @transform_6, window_bounds = array<i64: 1, 1, 128>}]} {
    %c0_i32 = arith.constant 0 : i32
    %0 = arith.cmpi eq, %arg1, %c0_i32 : i32
    %1 = arith.extui %0 : i1 to i32
    %c0_i32_0 = arith.constant 0 : i32
    %2 = arith.cmpi ne, %1, %c0_i32_0 : i32
    scf.if %2 {
      %cst_9 = arith.constant 0.000000e+00 : f32
      %11 = vector.broadcast %cst_9 : f32 to vector<1x128xf32>
      %c0_10 = arith.constant 0 : index
      %c0_11 = arith.constant 0 : index
      %12 = vector.load %arg9[%c0_10, %c0_11] : memref<1x128xf32, #tpu.memory_space<vmem>>, vector<1x128xf32>
      tpu.vector_store %arg9[%c0_10, %c0_11], %11 {strides = array<i32>} : memref<1x128xf32, #tpu.memory_space<vmem>>, vector<1x128xf32>,
    } else {
    }
    %c0 = arith.constant 0 : index
    %c0_1 = arith.constant 0 : index
    %3 = vector.load %arg9[%c0, %c0_1] : memref<1x128xf32, #tpu.memory_space<vmem>>, vector<1x128xf32>
    %c0_2 = arith.constant 0 : index
    %c0_3 = arith.constant 0 : index
    %c0_4 = arith.constant 0 : index
    %4 = vector.load %arg2[%c0_2, %c0_3, %c0_4] : memref<1x8x128xf32, #tpu.memory_space<vmem>>, vector<1x8x128xf32>
    %cst = arith.constant dense<0.000000e+00> : vector<1x128xf32>
    %5 = vector.multi_reduction <add>, %4, %cst [1] : vector<1x8x128xf32> to vector<1x128xf32>
    %6 = arith.addf %3, %5 : vector<1x128xf32>
    %c0_5 = arith.constant 0 : index
    %c0_6 = arith.constant 0 : index
    %7 = vector.load %arg9[%c0_5, %c0_6] : memref<1x128xf32, #tpu.memory_space<vmem>>, vector<1x128xf32>
    tpu.vector_store %arg9[%c0_5, %c0_6], %6 {strides = array<i32>} : memref<1x128xf32, #tpu.memory_space<vmem>>, vector<1x128xf32>,
    %c0_i32_7 = arith.constant 0 : i32
    %8 = arith.cmpi eq, %arg1, %c0_i32_7 : i32
    %9 = arith.extui %8 : i1 to i32
    %c0_i32_8 = arith.constant 0 : i32
    %10 = arith.cmpi ne, %9, %c0_i32_8 : i32
    scf.if %10 {
      %c0_9 = arith.constant 0 : index
      %c0_10 = arith.constant 0 : index
      %11 = vector.load %arg9[%c0_9, %c0_10] : memref<1x128xf32, #tpu.memory_space<vmem>>, vector<1x128xf32>
      %c0_11 = arith.constant 0 : index
      %c0_12 = arith.constant 0 : index
      %c0_13 = arith.constant 0 : index
      %12 = vector.load %arg3[%c0_11, %c0_12, %c0_13] : memref<1x1x1xf32, #tpu.memory_space<vmem>>, vector<1x1x1xf32>
      %13 = vector.shape_cast %12 : vector<1x1x1xf32> to vector<1x1xf32>
      %14 = vector.broadcast %13 : vector<1x1xf32> to vector<1x128xf32>
      %15 = arith.divf %11, %14 : vector<1x128xf32>
      %c0_14 = arith.constant 0 : index
      %c0_15 = arith.constant 0 : index
      %16 = vector.load %arg4[%c0_14, %c0_15] : memref<128x128xf32, #tpu.memory_space<vmem>>, vector<128x128xf32>
      %cst_16 = arith.constant dense<0.000000e+00> : vector<1x128xf32>
      %17 = tpu.matmul %15, %16, %cst_16 {dimension_numbers = #tpu.dot_dimension_numbers<[1], [0], [0], [1], [0, 0, 1, 1], [], []>} : vector<1x128xf32>, vector<128x128xf32>, vector<1x128xf32> -> vector<1x128xf32>
      %c0_17 = arith.constant 0 : index
      %c0_18 = arith.constant 0 : index
      %18 = vector.load %arg5[%c0_17, %c0_18] : memref<1x128xf32, #tpu.memory_space<vmem>>, vector<1x128xf32>
      %19 = arith.addf %17, %18 : vector<1x128xf32>
      %20 = arith.negf %19 : vector<1x128xf32>
      %21 = math.exp %20 : vector<1x128xf32>
      %cst_19 = arith.constant 1.000000e+00 : f32
      %22 = vector.broadcast %cst_19 : f32 to vector<1x128xf32>
      %23 = arith.addf %22, %21 : vector<1x128xf32>
      %24 = arith.divf %22, %23 : vector<1x128xf32>
      %25 = arith.mulf %19, %24 : vector<1x128xf32>
      %c0_20 = arith.constant 0 : index
      %c0_21 = arith.constant 0 : index
      %26 = vector.load %arg6[%c0_20, %c0_21] : memref<128x128xf32, #tpu.memory_space<vmem>>, vector<128x128xf32>
      %cst_22 = arith.constant dense<0.000000e+00> : vector<1x128xf32>
      %27 = tpu.matmul %25, %26, %cst_22 {dimension_numbers = #tpu.dot_dimension_numbers<[1], [0], [0], [1], [0, 0, 1, 1], [], []>} : vector<1x128xf32>, vector<128x128xf32>, vector<1x128xf32> -> vector<1x128xf32>
      %c0_23 = arith.constant 0 : index
      %c0_24 = arith.constant 0 : index
      %28 = vector.load %arg7[%c0_23, %c0_24] : memref<1x128xf32, #tpu.memory_space<vmem>>, vector<1x128xf32>
      %29 = arith.addf %27, %28 : vector<1x128xf32>
      %30 = arith.negf %29 : vector<1x128xf32>
      %31 = math.exp %30 : vector<1x128xf32>
      %cst_25 = arith.constant 1.000000e+00 : f32
      %32 = vector.broadcast %cst_25 : f32 to vector<1x128xf32>
      %33 = arith.addf %32, %31 : vector<1x128xf32>
      %34 = arith.divf %32, %33 : vector<1x128xf32>
      %35 = vector.shape_cast %34 : vector<1x128xf32> to vector<1x1x128xf32>
      %c0_26 = arith.constant 0 : index
      %c0_27 = arith.constant 0 : index
      %c0_28 = arith.constant 0 : index
      %36 = vector.load %arg8[%c0_26, %c0_27, %c0_28] : memref<1x1x128xf32, #tpu.memory_space<vmem>>, vector<1x1x128xf32>
      tpu.vector_store %arg8[%c0_26, %c0_27, %c0_28], %35 {strides = array<i32>} : memref<1x1x128xf32, #tpu.memory_space<vmem>>, vector<1x1x128xf32>,
    } else {
    }
    return
  }
  func.func @transform_0(%arg0: i32, %arg1: i32) -> (i32, i32, i32) {
    %c0_i32 = arith.constant 0 : i32
    %c0_i32_0 = arith.constant 0 : i32
    return %arg0, %arg1, %c0_i32 : i32, i32, i32
  }
  func.func @transform_1(%arg0: i32, %arg1: i32) -> (i32, i32, i32) {
    %c0_i32 = arith.constant 0 : i32
    %c0_i32_0 = arith.constant 0 : i32
    %c0_i32_1 = arith.constant 0 : i32
    return %arg0, %c0_i32, %c0_i32_0 : i32, i32, i32
  }
  func.func @transform_2(%arg0: i32, %arg1: i32) -> (i32, i32) {
    %c0_i32 = arith.constant 0 : i32
    %c0_i32_0 = arith.constant 0 : i32
    %c0_i32_1 = arith.constant 0 : i32
    return %c0_i32, %c0_i32_0 : i32, i32
  }
  func.func @transform_3(%arg0: i32, %arg1: i32) -> (i32, i32) {
    %c0_i32 = arith.constant 0 : i32
    %c0_i32_0 = arith.constant 0 : i32
    %c0_i32_1 = arith.constant 0 : i32
    return %c0_i32, %c0_i32_0 : i32, i32
  }
  func.func @transform_4(%arg0: i32, %arg1: i32) -> (i32, i32) {
    %c0_i32 = arith.constant 0 : i32
    %c0_i32_0 = arith.constant 0 : i32
    %c0_i32_1 = arith.constant 0 : i32
    return %c0_i32, %c0_i32_0 : i32, i32
  }
  func.func @transform_5(%arg0: i32, %arg1: i32) -> (i32, i32) {
    %c0_i32 = arith.constant 0 : i32
    %c0_i32_0 = arith.constant 0 : i32
    %c0_i32_1 = arith.constant 0 : i32
    return %c0_i32, %c0_i32_0 : i32, i32
  }
  func.func @transform_6(%arg0: i32, %arg1: i32) -> (i32, i32, i32) {
    %c0_i32 = arith.constant 0 : i32
    %c0_i32_0 = arith.constant 0 : i32
    %c0_i32_1 = arith.constant 0 : i32
    return %arg0, %c0_i32, %c0_i32_0 : i32, i32, i32
  }
}

module attributes {stable_mosaic.version = 11 : i64} {
  func.func @_se_apply_kernel(%arg0: i32, %arg1: i32, %arg2: memref<1x8x128xf32, #tpu.memory_space<vmem>>, %arg3: memref<1x1x128xf32, #tpu.memory_space<vmem>>, %arg4: memref<1x8x128xf32, #tpu.memory_space<vmem>>, %arg5: memref<1x8x128xf32, #tpu.memory_space<vmem>>) attributes {dimension_semantics = [#tpu.dimension_semantics<parallel>, #tpu.dimension_semantics<parallel>], iteration_bounds = array<i64: 2, 1>, scalar_prefetch = 0 : i64, scratch_operands = 0 : i64, tpu.core_type = #tpu.core_type<tc>, window_params = [{transform_indices = @transform_0, window_bounds = array<i64: 1, 8, 128>}, {transform_indices = @transform_1, window_bounds = array<i64: 1, 1, 128>}, {transform_indices = @transform_2, window_bounds = array<i64: 1, 8, 128>}, {transform_indices = @transform_3, window_bounds = array<i64: 1, 8, 128>}]} {
    %c0 = arith.constant 0 : index
    %c0_0 = arith.constant 0 : index
    %c0_1 = arith.constant 0 : index
    %0 = vector.load %arg2[%c0, %c0_0, %c0_1] : memref<1x8x128xf32, #tpu.memory_space<vmem>>, vector<1x8x128xf32>
    %c0_2 = arith.constant 0 : index
    %c0_3 = arith.constant 0 : index
    %c0_4 = arith.constant 0 : index
    %1 = vector.load %arg3[%c0_2, %c0_3, %c0_4] : memref<1x1x128xf32, #tpu.memory_space<vmem>>, vector<1x1x128xf32>
    %2 = vector.broadcast %1 : vector<1x1x128xf32> to vector<1x8x128xf32>
    %3 = arith.mulf %0, %2 : vector<1x8x128xf32>
    %c0_5 = arith.constant 0 : index
    %c0_6 = arith.constant 0 : index
    %c0_7 = arith.constant 0 : index
    %4 = vector.load %arg4[%c0_5, %c0_6, %c0_7] : memref<1x8x128xf32, #tpu.memory_space<vmem>>, vector<1x8x128xf32>
    %5 = arith.addf %3, %4 : vector<1x8x128xf32>
    %6 = arith.negf %5 : vector<1x8x128xf32>
    %7 = math.exp %6 : vector<1x8x128xf32>
    %cst = arith.constant 1.000000e+00 : f32
    %8 = vector.broadcast %cst : f32 to vector<1x8x128xf32>
    %9 = arith.addf %8, %7 : vector<1x8x128xf32>
    %10 = arith.divf %8, %9 : vector<1x8x128xf32>
    %11 = arith.mulf %5, %10 : vector<1x8x128xf32>
    %c0_8 = arith.constant 0 : index
    %c0_9 = arith.constant 0 : index
    %c0_10 = arith.constant 0 : index
    %12 = vector.load %arg5[%c0_8, %c0_9, %c0_10] : memref<1x8x128xf32, #tpu.memory_space<vmem>>, vector<1x8x128xf32>
    tpu.vector_store %arg5[%c0_8, %c0_9, %c0_10], %11 {strides = array<i32>} : memref<1x8x128xf32, #tpu.memory_space<vmem>>, vector<1x8x128xf32>,
    return
  }
  func.func @transform_0(%arg0: i32, %arg1: i32) -> (i32, i32, i32) {
    %c0_i32 = arith.constant 0 : i32
    %c0_i32_0 = arith.constant 0 : i32
    return %arg0, %arg1, %c0_i32 : i32, i32, i32
  }
  func.func @transform_1(%arg0: i32, %arg1: i32) -> (i32, i32, i32) {
    %c0_i32 = arith.constant 0 : i32
    %c0_i32_0 = arith.constant 0 : i32
    %c0_i32_1 = arith.constant 0 : i32
    return %arg0, %c0_i32, %c0_i32_0 : i32, i32, i32
  }
  func.func @transform_2(%arg0: i32, %arg1: i32) -> (i32, i32, i32) {
    %c0_i32 = arith.constant 0 : i32
    %c0_i32_0 = arith.constant 0 : i32
    return %arg0, %arg1, %c0_i32 : i32, i32, i32
  }
  func.func @transform_3(%arg0: i32, %arg1: i32) -> (i32, i32, i32) {
    %c0_i32 = arith.constant 0 : i32
    %c0_i32_0 = arith.constant 0 : i32
    return %arg0, %arg1, %c0_i32 : i32, i32, i32
  }
}

module attributes {stable_mosaic.version = 11 : i64} {
  func.func @_gemm_bias_act_kernel(%arg0: i32, %arg1: i32, %arg2: memref<16x640xbf16, #tpu.memory_space<vmem>>, %arg3: memref<640x128xbf16, #tpu.memory_space<vmem>>, %arg4: memref<1x128xf32, #tpu.memory_space<vmem>>, %arg5: memref<16x128xf32, #tpu.memory_space<vmem>>) attributes {dimension_semantics = [#tpu.dimension_semantics<parallel>, #tpu.dimension_semantics<parallel>], iteration_bounds = array<i64: 1, 1>, scalar_prefetch = 0 : i64, scratch_operands = 0 : i64, tpu.core_type = #tpu.core_type<tc>, window_params = [{transform_indices = @transform_0, window_bounds = array<i64: 16, 640>}, {transform_indices = @transform_1, window_bounds = array<i64: 640, 128>}, {transform_indices = @transform_2, window_bounds = array<i64: 1, 128>}, {transform_indices = @transform_3, window_bounds = array<i64: 16, 128>}]} {
    %c0 = arith.constant 0 : index
    %c0_0 = arith.constant 0 : index
    %0 = vector.load %arg2[%c0, %c0_0] : memref<16x640xbf16, #tpu.memory_space<vmem>>, vector<16x640xbf16>
    %c0_1 = arith.constant 0 : index
    %c0_2 = arith.constant 0 : index
    %1 = vector.load %arg3[%c0_1, %c0_2] : memref<640x128xbf16, #tpu.memory_space<vmem>>, vector<640x128xbf16>
    %cst = arith.constant dense<0.000000e+00> : vector<16x128xf32>
    %2 = tpu.matmul %0, %1, %cst {dimension_numbers = #tpu.dot_dimension_numbers<[1], [0], [0], [1], [0, 0, 1, 1], [], []>} : vector<16x640xbf16>, vector<640x128xbf16>, vector<16x128xf32> -> vector<16x128xf32>
    %c0_3 = arith.constant 0 : index
    %c0_4 = arith.constant 0 : index
    %3 = vector.load %arg4[%c0_3, %c0_4] : memref<1x128xf32, #tpu.memory_space<vmem>>, vector<1x128xf32>
    %4 = vector.broadcast %3 : vector<1x128xf32> to vector<16x128xf32>
    %5 = arith.addf %2, %4 : vector<16x128xf32>
    %6 = arith.negf %5 : vector<16x128xf32>
    %7 = math.exp %6 : vector<16x128xf32>
    %cst_5 = arith.constant 1.000000e+00 : f32
    %8 = vector.broadcast %cst_5 : f32 to vector<16x128xf32>
    %9 = arith.addf %8, %7 : vector<16x128xf32>
    %10 = arith.divf %8, %9 : vector<16x128xf32>
    %11 = arith.mulf %5, %10 : vector<16x128xf32>
    %c0_6 = arith.constant 0 : index
    %c0_7 = arith.constant 0 : index
    %12 = vector.load %arg5[%c0_6, %c0_7] : memref<16x128xf32, #tpu.memory_space<vmem>>, vector<16x128xf32>
    tpu.vector_store %arg5[%c0_6, %c0_7], %11 {strides = array<i32>} : memref<16x128xf32, #tpu.memory_space<vmem>>, vector<16x128xf32>,
    return
  }
  func.func @transform_0(%arg0: i32, %arg1: i32) -> (i32, i32) {
    %c0_i32 = arith.constant 0 : i32
    %c0_i32_0 = arith.constant 0 : i32
    return %arg0, %c0_i32 : i32, i32
  }
  func.func @transform_1(%arg0: i32, %arg1: i32) -> (i32, i32) {
    %c0_i32 = arith.constant 0 : i32
    %c0_i32_0 = arith.constant 0 : i32
    return %c0_i32, %arg1 : i32, i32
  }
  func.func @transform_2(%arg0: i32, %arg1: i32) -> (i32, i32) {
    %c0_i32 = arith.constant 0 : i32
    %c0_i32_0 = arith.constant 0 : i32
    return %c0_i32, %arg1 : i32, i32
  }
  func.func @transform_3(%arg0: i32, %arg1: i32) -> (i32, i32) {
    %c0_i32 = arith.constant 0 : i32
    return %arg0, %arg1 : i32, i32
  }
}

module attributes {stable_mosaic.version = 11 : i64} {
  func.func @_gemm_bias_act_kernel(%arg0: i32, %arg1: i32, %arg2: memref<8x640xbf16, #tpu.memory_space<vmem>>, %arg3: memref<640x128xbf16, #tpu.memory_space<vmem>>, %arg4: memref<1x128xf32, #tpu.memory_space<vmem>>, %arg5: memref<8x128xf32, #tpu.memory_space<vmem>>) attributes {dimension_semantics = [#tpu.dimension_semantics<parallel>, #tpu.dimension_semantics<parallel>], iteration_bounds = array<i64: 1, 1>, scalar_prefetch = 0 : i64, scratch_operands = 0 : i64, tpu.core_type = #tpu.core_type<tc>, window_params = [{transform_indices = @transform_0, window_bounds = array<i64: 8, 640>}, {transform_indices = @transform_1, window_bounds = array<i64: 640, 128>}, {transform_indices = @transform_2, window_bounds = array<i64: 1, 128>}, {transform_indices = @transform_3, window_bounds = array<i64: 8, 128>}]} {
    %c0 = arith.constant 0 : index
    %c0_0 = arith.constant 0 : index
    %0 = vector.load %arg2[%c0, %c0_0] : memref<8x640xbf16, #tpu.memory_space<vmem>>, vector<8x640xbf16>
    %c0_1 = arith.constant 0 : index
    %c0_2 = arith.constant 0 : index
    %1 = vector.load %arg3[%c0_1, %c0_2] : memref<640x128xbf16, #tpu.memory_space<vmem>>, vector<640x128xbf16>
    %cst = arith.constant dense<0.000000e+00> : vector<8x128xf32>
    %2 = tpu.matmul %0, %1, %cst {dimension_numbers = #tpu.dot_dimension_numbers<[1], [0], [0], [1], [0, 0, 1, 1], [], []>} : vector<8x640xbf16>, vector<640x128xbf16>, vector<8x128xf32> -> vector<8x128xf32>
    %c0_3 = arith.constant 0 : index
    %c0_4 = arith.constant 0 : index
    %3 = vector.load %arg4[%c0_3, %c0_4] : memref<1x128xf32, #tpu.memory_space<vmem>>, vector<1x128xf32>
    %4 = vector.broadcast %3 : vector<1x128xf32> to vector<8x128xf32>
    %5 = arith.addf %2, %4 : vector<8x128xf32>
    %c0_5 = arith.constant 0 : index
    %c0_6 = arith.constant 0 : index
    %6 = vector.load %arg5[%c0_5, %c0_6] : memref<8x128xf32, #tpu.memory_space<vmem>>, vector<8x128xf32>
    tpu.vector_store %arg5[%c0_5, %c0_6], %5 {strides = array<i32>} : memref<8x128xf32, #tpu.memory_space<vmem>>, vector<8x128xf32>,
    return
  }
  func.func @transform_0(%arg0: i32, %arg1: i32) -> (i32, i32) {
    %c0_i32 = arith.constant 0 : i32
    %c0_i32_0 = arith.constant 0 : i32
    return %arg0, %c0_i32 : i32, i32
  }
  func.func @transform_1(%arg0: i32, %arg1: i32) -> (i32, i32) {
    %c0_i32 = arith.constant 0 : i32
    %c0_i32_0 = arith.constant 0 : i32
    return %c0_i32, %arg1 : i32, i32
  }
  func.func @transform_2(%arg0: i32, %arg1: i32) -> (i32, i32) {
    %c0_i32 = arith.constant 0 : i32
    %c0_i32_0 = arith.constant 0 : i32
    return %c0_i32, %arg1 : i32, i32
  }
  func.func @transform_3(%arg0: i32, %arg1: i32) -> (i32, i32) {
    %c0_i32 = arith.constant 0 : i32
    return %arg0, %arg1 : i32, i32
  }
}

module attributes {stable_mosaic.version = 11 : i64} {
  func.func @_gemm_bias_act_kernel(%arg0: i32, %arg1: i32, %arg2: memref<8x640xbf16, #tpu.memory_space<vmem>>, %arg3: memref<640x128xbf16, #tpu.memory_space<vmem>>, %arg4: memref<1x128xf32, #tpu.memory_space<vmem>>, %arg5: memref<8x128xf32, #tpu.memory_space<vmem>>) attributes {dimension_semantics = [#tpu.dimension_semantics<parallel>, #tpu.dimension_semantics<parallel>], iteration_bounds = array<i64: 1, 1>, scalar_prefetch = 0 : i64, scratch_operands = 0 : i64, tpu.core_type = #tpu.core_type<tc>, window_params = [{transform_indices = @transform_0, window_bounds = array<i64: 8, 640>}, {transform_indices = @transform_1, window_bounds = array<i64: 640, 128>}, {transform_indices = @transform_2, window_bounds = array<i64: 1, 128>}, {transform_indices = @transform_3, window_bounds = array<i64: 8, 128>}]} {
    %c0 = arith.constant 0 : index
    %c0_0 = arith.constant 0 : index
    %0 = vector.load %arg2[%c0, %c0_0] : memref<8x640xbf16, #tpu.memory_space<vmem>>, vector<8x640xbf16>
    %c0_1 = arith.constant 0 : index
    %c0_2 = arith.constant 0 : index
    %1 = vector.load %arg3[%c0_1, %c0_2] : memref<640x128xbf16, #tpu.memory_space<vmem>>, vector<640x128xbf16>
    %cst = arith.constant dense<0.000000e+00> : vector<8x128xf32>
    %2 = tpu.matmul %0, %1, %cst {dimension_numbers = #tpu.dot_dimension_numbers<[1], [0], [0], [1], [0, 0, 1, 1], [], []>} : vector<8x640xbf16>, vector<640x128xbf16>, vector<8x128xf32> -> vector<8x128xf32>
    %c0_3 = arith.constant 0 : index
    %c0_4 = arith.constant 0 : index
    %3 = vector.load %arg4[%c0_3, %c0_4] : memref<1x128xf32, #tpu.memory_space<vmem>>, vector<1x128xf32>
    %4 = vector.broadcast %3 : vector<1x128xf32> to vector<8x128xf32>
    %5 = arith.addf %2, %4 : vector<8x128xf32>
    %6 = arith.negf %5 : vector<8x128xf32>
    %7 = math.exp %6 : vector<8x128xf32>
    %cst_5 = arith.constant 1.000000e+00 : f32
    %8 = vector.broadcast %cst_5 : f32 to vector<8x128xf32>
    %9 = arith.addf %8, %7 : vector<8x128xf32>
    %10 = arith.divf %8, %9 : vector<8x128xf32>
    %11 = arith.mulf %5, %10 : vector<8x128xf32>
    %c0_6 = arith.constant 0 : index
    %c0_7 = arith.constant 0 : index
    %12 = vector.load %arg5[%c0_6, %c0_7] : memref<8x128xf32, #tpu.memory_space<vmem>>, vector<8x128xf32>
    tpu.vector_store %arg5[%c0_6, %c0_7], %11 {strides = array<i32>} : memref<8x128xf32, #tpu.memory_space<vmem>>, vector<8x128xf32>,
    return
  }
  func.func @transform_0(%arg0: i32, %arg1: i32) -> (i32, i32) {
    %c0_i32 = arith.constant 0 : i32
    %c0_i32_0 = arith.constant 0 : i32
    return %arg0, %c0_i32 : i32, i32
  }
  func.func @transform_1(%arg0: i32, %arg1: i32) -> (i32, i32) {
    %c0_i32 = arith.constant 0 : i32
    %c0_i32_0 = arith.constant 0 : i32
    return %c0_i32, %arg1 : i32, i32
  }
  func.func @transform_2(%arg0: i32, %arg1: i32) -> (i32, i32) {
    %c0_i32 = arith.constant 0 : i32
    %c0_i32_0 = arith.constant 0 : i32
    return %c0_i32, %arg1 : i32, i32
  }
  func.func @transform_3(%arg0: i32, %arg1: i32) -> (i32, i32) {
    %c0_i32 = arith.constant 0 : i32
    return %arg0, %arg1 : i32, i32
  }
}

module attributes {stable_mosaic.version = 11 : i64} {
  func.func @_gemm_bias_act_kernel(%arg0: i32, %arg1: i32, %arg2: memref<8x640xbf16, #tpu.memory_space<vmem>>, %arg3: memref<640x128xbf16, #tpu.memory_space<vmem>>, %arg4: memref<1x128xf32, #tpu.memory_space<vmem>>, %arg5: memref<8x128xf32, #tpu.memory_space<vmem>>) attributes {dimension_semantics = [#tpu.dimension_semantics<parallel>, #tpu.dimension_semantics<parallel>], iteration_bounds = array<i64: 1, 1>, scalar_prefetch = 0 : i64, scratch_operands = 0 : i64, tpu.core_type = #tpu.core_type<tc>, window_params = [{transform_indices = @transform_0, window_bounds = array<i64: 8, 640>}, {transform_indices = @transform_1, window_bounds = array<i64: 640, 128>}, {transform_indices = @transform_2, window_bounds = array<i64: 1, 128>}, {transform_indices = @transform_3, window_bounds = array<i64: 8, 128>}]} {
    %c0 = arith.constant 0 : index
    %c0_0 = arith.constant 0 : index
    %0 = vector.load %arg2[%c0, %c0_0] : memref<8x640xbf16, #tpu.memory_space<vmem>>, vector<8x640xbf16>
    %c0_1 = arith.constant 0 : index
    %c0_2 = arith.constant 0 : index
    %1 = vector.load %arg3[%c0_1, %c0_2] : memref<640x128xbf16, #tpu.memory_space<vmem>>, vector<640x128xbf16>
    %cst = arith.constant dense<0.000000e+00> : vector<8x128xf32>
    %2 = tpu.matmul %0, %1, %cst {dimension_numbers = #tpu.dot_dimension_numbers<[1], [0], [0], [1], [0, 0, 1, 1], [], []>} : vector<8x640xbf16>, vector<640x128xbf16>, vector<8x128xf32> -> vector<8x128xf32>
    %c0_3 = arith.constant 0 : index
    %c0_4 = arith.constant 0 : index
    %3 = vector.load %arg4[%c0_3, %c0_4] : memref<1x128xf32, #tpu.memory_space<vmem>>, vector<1x128xf32>
    %4 = vector.broadcast %3 : vector<1x128xf32> to vector<8x128xf32>
    %5 = arith.addf %2, %4 : vector<8x128xf32>
    %6 = arith.negf %5 : vector<8x128xf32>
    %7 = math.exp %6 : vector<8x128xf32>
    %cst_5 = arith.constant 1.000000e+00 : f32
    %8 = vector.broadcast %cst_5 : f32 to vector<8x128xf32>
    %9 = arith.addf %8, %7 : vector<8x128xf32>
    %10 = arith.divf %8, %9 : vector<8x128xf32>
    %11 = arith.mulf %5, %10 : vector<8x128xf32>
    %c0_6 = arith.constant 0 : index
    %c0_7 = arith.constant 0 : index
    %12 = vector.load %arg5[%c0_6, %c0_7] : memref<8x128xf32, #tpu.memory_space<vmem>>, vector<8x128xf32>
    tpu.vector_store %arg5[%c0_6, %c0_7], %11 {strides = array<i32>} : memref<8x128xf32, #tpu.memory_space<vmem>>, vector<8x128xf32>,
    return
  }
  func.func @transform_0(%arg0: i32, %arg1: i32) -> (i32, i32) {
    %c0_i32 = arith.constant 0 : i32
    %c0_i32_0 = arith.constant 0 : i32
    return %arg0, %c0_i32 : i32, i32
  }
  func.func @transform_1(%arg0: i32, %arg1: i32) -> (i32, i32) {
    %c0_i32 = arith.constant 0 : i32
    %c0_i32_0 = arith.constant 0 : i32
    return %c0_i32, %arg1 : i32, i32
  }
  func.func @transform_2(%arg0: i32, %arg1: i32) -> (i32, i32) {
    %c0_i32 = arith.constant 0 : i32
    %c0_i32_0 = arith.constant 0 : i32
    return %c0_i32, %arg1 : i32, i32
  }
  func.func @transform_3(%arg0: i32, %arg1: i32) -> (i32, i32) {
    %c0_i32 = arith.constant 0 : i32
    return %arg0, %arg1 : i32, i32
  }
}

module attributes {stable_mosaic.version = 11 : i64} {
  func.func @_gemm_bias_act_kernel(%arg0: i32, %arg1: i32, %arg2: memref<8x640xbf16, #tpu.memory_space<vmem>>, %arg3: memref<640x128xbf16, #tpu.memory_space<vmem>>, %arg4: memref<1x128xf32, #tpu.memory_space<vmem>>, %arg5: memref<8x128xf32, #tpu.memory_space<vmem>>) attributes {dimension_semantics = [#tpu.dimension_semantics<parallel>, #tpu.dimension_semantics<parallel>], iteration_bounds = array<i64: 1, 1>, scalar_prefetch = 0 : i64, scratch_operands = 0 : i64, tpu.core_type = #tpu.core_type<tc>, window_params = [{transform_indices = @transform_0, window_bounds = array<i64: 8, 640>}, {transform_indices = @transform_1, window_bounds = array<i64: 640, 128>}, {transform_indices = @transform_2, window_bounds = array<i64: 1, 128>}, {transform_indices = @transform_3, window_bounds = array<i64: 8, 128>}]} {
    %c0 = arith.constant 0 : index
    %c0_0 = arith.constant 0 : index
    %0 = vector.load %arg2[%c0, %c0_0] : memref<8x640xbf16, #tpu.memory_space<vmem>>, vector<8x640xbf16>
    %c0_1 = arith.constant 0 : index
    %c0_2 = arith.constant 0 : index
    %1 = vector.load %arg3[%c0_1, %c0_2] : memref<640x128xbf16, #tpu.memory_space<vmem>>, vector<640x128xbf16>
    %cst = arith.constant dense<0.000000e+00> : vector<8x128xf32>
    %2 = tpu.matmul %0, %1, %cst {dimension_numbers = #tpu.dot_dimension_numbers<[1], [0], [0], [1], [0, 0, 1, 1], [], []>} : vector<8x640xbf16>, vector<640x128xbf16>, vector<8x128xf32> -> vector<8x128xf32>
    %c0_3 = arith.constant 0 : index
    %c0_4 = arith.constant 0 : index
    %3 = vector.load %arg4[%c0_3, %c0_4] : memref<1x128xf32, #tpu.memory_space<vmem>>, vector<1x128xf32>
    %4 = vector.broadcast %3 : vector<1x128xf32> to vector<8x128xf32>
    %5 = arith.addf %2, %4 : vector<8x128xf32>
    %c0_5 = arith.constant 0 : index
    %c0_6 = arith.constant 0 : index
    %6 = vector.load %arg5[%c0_5, %c0_6] : memref<8x128xf32, #tpu.memory_space<vmem>>, vector<8x128xf32>
    tpu.vector_store %arg5[%c0_5, %c0_6], %5 {strides = array<i32>} : memref<8x128xf32, #tpu.memory_space<vmem>>, vector<8x128xf32>,
    return
  }
  func.func @transform_0(%arg0: i32, %arg1: i32) -> (i32, i32) {
    %c0_i32 = arith.constant 0 : i32
    %c0_i32_0 = arith.constant 0 : i32
    return %arg0, %c0_i32 : i32, i32
  }
  func.func @transform_1(%arg0: i32, %arg1: i32) -> (i32, i32) {
    %c0_i32 = arith.constant 0 : i32
    %c0_i32_0 = arith.constant 0 : i32
    return %c0_i32, %arg1 : i32, i32
  }
  func.func @transform_2(%arg0: i32, %arg1: i32) -> (i32, i32) {
    %c0_i32 = arith.constant 0 : i32
    %c0_i32_0 = arith.constant 0 : i32
    return %c0_i32, %arg1 : i32, i32
  }
  func.func @transform_3(%arg0: i32, %arg1: i32) -> (i32, i32) {
    %c0_i32 = arith.constant 0 : i32
    return %arg0, %arg1 : i32, i32
  }
}

module attributes {stable_mosaic.version = 11 : i64} {
  func.func @_se_apply_kernel(%arg0: i32, %arg1: i32, %arg2: memref<1x8x128xf32, #tpu.memory_space<vmem>>, %arg3: memref<1x1x128xf32, #tpu.memory_space<vmem>>, %arg4: memref<1x8x128xf32, #tpu.memory_space<vmem>>) attributes {dimension_semantics = [#tpu.dimension_semantics<parallel>, #tpu.dimension_semantics<parallel>], iteration_bounds = array<i64: 2, 1>, scalar_prefetch = 0 : i64, scratch_operands = 0 : i64, tpu.core_type = #tpu.core_type<tc>, window_params = [{transform_indices = @transform_0, window_bounds = array<i64: 1, 8, 128>}, {transform_indices = @transform_1, window_bounds = array<i64: 1, 1, 128>}, {transform_indices = @transform_2, window_bounds = array<i64: 1, 8, 128>}]} {
    %c0 = arith.constant 0 : index
    %c0_0 = arith.constant 0 : index
    %c0_1 = arith.constant 0 : index
    %0 = vector.load %arg2[%c0, %c0_0, %c0_1] : memref<1x8x128xf32, #tpu.memory_space<vmem>>, vector<1x8x128xf32>
    %c0_2 = arith.constant 0 : index
    %c0_3 = arith.constant 0 : index
    %c0_4 = arith.constant 0 : index
    %1 = vector.load %arg3[%c0_2, %c0_3, %c0_4] : memref<1x1x128xf32, #tpu.memory_space<vmem>>, vector<1x1x128xf32>
    %2 = vector.broadcast %1 : vector<1x1x128xf32> to vector<1x8x128xf32>
    %3 = arith.mulf %0, %2 : vector<1x8x128xf32>
    %4 = arith.negf %3 : vector<1x8x128xf32>
    %5 = math.exp %4 : vector<1x8x128xf32>
    %cst = arith.constant 1.000000e+00 : f32
    %6 = vector.broadcast %cst : f32 to vector<1x8x128xf32>
    %7 = arith.addf %6, %5 : vector<1x8x128xf32>
    %8 = arith.divf %6, %7 : vector<1x8x128xf32>
    %9 = arith.mulf %3, %8 : vector<1x8x128xf32>
    %c0_5 = arith.constant 0 : index
    %c0_6 = arith.constant 0 : index
    %c0_7 = arith.constant 0 : index
    %10 = vector.load %arg4[%c0_5, %c0_6, %c0_7] : memref<1x8x128xf32, #tpu.memory_space<vmem>>, vector<1x8x128xf32>
    tpu.vector_store %arg4[%c0_5, %c0_6, %c0_7], %9 {strides = array<i32>} : memref<1x8x128xf32, #tpu.memory_space<vmem>>, vector<1x8x128xf32>,
    return
  }
  func.func @transform_0(%arg0: i32, %arg1: i32) -> (i32, i32, i32) {
    %c0_i32 = arith.constant 0 : i32
    %c0_i32_0 = arith.constant 0 : i32
    return %arg0, %arg1, %c0_i32 : i32, i32, i32
  }
  func.func @transform_1(%arg0: i32, %arg1: i32) -> (i32, i32, i32) {
    %c0_i32 = arith.constant 0 : i32
    %c0_i32_0 = arith.constant 0 : i32
    %c0_i32_1 = arith.constant 0 : i32
    return %arg0, %c0_i32, %c0_i32_0 : i32, i32, i32
  }
  func.func @transform_2(%arg0: i32, %arg1: i32) -> (i32, i32, i32) {
    %c0_i32 = arith.constant 0 : i32
    %c0_i32_0 = arith.constant 0 : i32
    return %arg0, %arg1, %c0_i32 : i32, i32, i32
  }
}

</mosaic_0001>

<bundles_post_ra>
// kernel: forward.113
= control target key start
LH: loop header
LB: loop body
LE: loop exit
PB: predicated region body
PF: predicated region fallthrough
CT: control target
= control target key end

     0   :  { %s486_s9 = smov 0   ;;  %s488_s10 = smov 0   ;;  %s580_s0 = inlined_call_operand.vmem [shape: f32[2,32,128], index: 0, kind: input, shape index: {}]   ;;  %s581_s1 = inlined_call_operand.vmem [shape: f32[2,1,128], index: 1, kind: input, shape index: {}]   ;;  %s582_s2 = inlined_call_operand.vmem [shape: f32[2,32,128], index: 2, kind: output, shape index: {}]  }
   0x1   :  { %s490_s11 = smov 0  }
   0x2 LB: > { %s24_s12 = sadd.s32 1, %s465_s10  ;;  %p393_p0 = scmp.ge.s32.totalorder %s469_s11, 1  ;;  %s469_s11 = sphi %s490_s11, %s12_s11   ;;  %s465_s10 = sphi %s488_s10, %s594_s10   ;;  %s461_s9 = sphi %s486_s9, %s593_s9  }
   0x3   : > { %p26_p1 = scmp.ge.s32.totalorder %s24_s12, 2  ;;  %p141_p2 = scmp.lt.s32.totalorder %s469_s11, 3 }
   0x5   : > { %s596_s12 = smov (%p26_p1, %s24_s12), 0  ;;  %p142_p3 = pnand %p393_p0, %p141_p2 }
   0x6   : > { %p175_p4 = scmp.lt.s32.totalorder (!%p142_p3), %s461_s9, 1 }
   0x7   : > { %145 = sbr.rel (%p142_p3) target bundleno = 52 (0x34), region = 28 }
   0xc   : > { %s598_s9 = smov (!%p175_p4, %s461_s9), 1 }
   0xd   : > { %s404_s13 = sshll.u32 %s598_s9, 5  ;;  %s186_s16 = scalar_lea.vmem %s581_s1, %s598_s9 }
   0xe   : > { %s182_s19 = scalar_lea.vmem %s580_s0, %s404_s13  ;;  %v430_v0 = vld [vmem:[%s186_s16] ss:$0 sm:$0xff]  ;;  %s195_s22 = scalar_lea.vmem %s582_s2, %s404_s13 }
   0xf   : > { %v197_v1 = vld [vmem:[%s182_s19] sm:$0xff]  ;;  %v198_v2 = vld [vmem:[%s182_s19 + $0x8] sm:$0xff]  ;;  %v199_v3 = vld [vmem:[%s182_s19 + $0x10] sm:$0xff] }
  0x10   : > { %v516_v4 = vmul.f32 %v430_v0, %v197_v1  ;;  %v518_v5 = vmul.f32 %v430_v0, %v198_v2  ;;  %v520_v6 = vmul.f32 %v430_v0, %v199_v3  ;;  %v200_v7 = vld [vmem:[%s182_s19 + $0x18] sm:$0xff] }
  0x11   : > { %v522_v8 = vmul.f32 %v430_v0, %v200_v7 }
  0x12   : > { %v398_v9 = vmul.f32 -1.442695, %v516_v4  ;;  %v399_v10 = vmul.f32 -1.442695, %v518_v5  ;;  %v400_v11 = vmul.f32 -1.442695, %v520_v6 }
  0x13   : > { %v401_v12 = vmul.f32 -1.442695, %v522_v8 }
  0x14   : > { %431 = vpow2.f32 %v398_v9 }
  0x15   : > { %433 = vpow2.f32 %v399_v10 }
  0x16   : > { %435 = vpow2.f32 %v400_v11 }
  0x17   : > { %437 = vpow2.f32 %v401_v12 }
  0x1a   : > { %v432_v13 = vpop.eup %431 }
  0x1b   : > { %v434_v14 = vpop.eup %433  ;;  %v221_v15 = vadd.f32 1.0, %v432_v13 }
  0x1c   : > { %v436_v16 = vpop.eup %435  ;;  %v222_v17 = vadd.f32 1.0, %v434_v14 }
  0x1d   : > { %v438_v18 = vpop.eup %437  ;;  %439 = vrcp.f32 %v221_v15  ;;  %v223_v19 = vadd.f32 1.0, %v436_v16  ;;  %v234_v21 = vand.u32 2147483647, %v221_v15  ;;  %v236_v22 = vand.u32 2147483648, %v221_v15 }
  0x1e   : > { %441 = vrcp.f32 %v222_v17  ;;  %v224_v20 = vadd.f32 1.0, %v438_v18  ;;  %v249_v24 = vand.u32 2147483647, %v222_v17  ;;  %v251_v25 = vand.u32 2147483648, %v222_v17 }
  0x1f   : > { %443 = vrcp.f32 %v223_v19  ;;  %vm230_vm0 = vweird.f32 %v221_v15  ;;  %vm245_vm1 = vweird.f32 %v222_v17  ;;  %vm528_vm3 = vcmp.eq.f32.partialorder %v234_v21, 8.507059e+37 }
  0x20   : > { %445 = vrcp.f32 %v224_v20  ;;  %v237_v31 = vor.u32 1.1754944e-38, %v236_v22  ;;  %vm532_vm5 = vcmp.eq.f32.partialorder %v249_v24, 8.507059e+37  ;;  %v252_v35 = vor.u32 1.1754944e-38, %v251_v25 }
  0x21   : > { %vm260_vm6 = vweird.f32 %v223_v19  ;;  %v264_v39 = vand.u32 2147483647, %v223_v19  ;;  %v266_v42 = vand.u32 2147483648, %v223_v19  ;;  %vm275_vm8 = vweird.f32 %v224_v20 }
  0x22   : > { %v281_v47 = vand.u32 2147483648, %v224_v20  ;;  %v279_v50 = vand.u32 2147483647, %v224_v20 }
  0x23   : > { %v440_v23 = vpop.eup %439  ;;  %vm548_vm12 = vcmp.eq.f32.partialorder %v264_v39, 8.507059e+37  ;;  %v267_v56 = vor.u32 1.1754944e-38, %v266_v42 }
  0x24   : > { %v442_v26 = vpop.eup %441  ;;  %v226_v27 = vmul.f32 %v440_v23, %v221_v15  ;;  %vm231_vm2 = vweird.f32 %v440_v23  ;;  %v282_v61 = vor.u32 1.1754944e-38, %v281_v47  ;;  %vm280_vm15 = vcmp.eq.f32.partialorder %v279_v50, 8.507059e+37 }
  0x25   : > { %v241_v28 = vmul.f32 %v442_v26, %v222_v17  ;;  %v444_v32 = vpop.eup %443  ;;  %vm246_vm4 = vweird.f32 %v442_v26  ;;  %vm537_vm7 = vmor %vm230_vm0, %vm231_vm2 }
  0x26   : > { %v227_v29 = vsub.f32 1.0, %v226_v27  ;;  %v446_v36 = vpop.eup %445  ;;  %v256_v38 = vmul.f32 %v444_v32, %v223_v19  ;;  %vm542_vm9 = vmor %vm245_vm1, %vm246_vm4  ;;  %vm261_vm10 = vweird.f32 %v444_v32 }
  0x27   : > { %v242_v33 = vsub.f32 1.0, %v241_v28  ;;  %v271_v43 = vmul.f32 %v446_v36, %v224_v20  ;;  %vm276_vm11 = vweird.f32 %v446_v36  ;;  %vm262_vm13 = vmor %vm260_vm6, %vm261_vm10 }
  0x28   : > { %v228_v37 = vmul.f32 %v440_v23, %v227_v29  ;;  %v257_v46 = vsub.f32 1.0, %v256_v38  ;;  %vm277_vm14 = vmor %vm275_vm8, %vm276_vm11 }
  0x29   : > { %v243_v41 = vmul.f32 %v442_v26, %v242_v33  ;;  %v272_v49 = vsub.f32 1.0, %v271_v43 }
  0x2a   : > { %v229_v44 = vadd.f32 %v440_v23, %v228_v37  ;;  %v258_v52 = vmul.f32 %v444_v32, %v257_v46 }
  0x2b   : > { %v244_v48 = vadd.f32 %v442_v26, %v243_v41  ;;  %v273_v57 = vmul.f32 %v446_v36, %v272_v49 }
  0x2c   : > { %v233_v51 = vsel %vm537_vm7, %v440_v23, %v229_v44  ;;  %v259_v60 = vadd.f32 %v444_v32, %v258_v52 }
  0x2d   : > { %v238_v54 = vsel %vm528_vm3, %v237_v31, %v233_v51  ;;  %v248_v55 = vsel %vm542_vm9, %v442_v26, %v244_v48  ;;  %v274_v63 = vadd.f32 %v446_v36, %v273_v57 }
  0x2e   : > { %v285_v58 = vmul.f32 %v238_v54, %v516_v4  ;;  %v253_v59 = vsel %vm532_vm5, %v252_v35, %v248_v55  ;;  %v263_v0 = vsel %vm262_vm13, %v444_v32, %v259_v60 }
  0x2f   : > { %v286_v62 = vmul.f32 %v253_v59, %v518_v5  ;;  %v268_v1 = vsel %vm548_vm12, %v267_v56, %v263_v0  ;;  %v278_v2 = vsel %vm277_vm14, %v446_v36, %v274_v63 }
  0x30   : > { %289 = vst [vmem:[%s195_s22] sm:$0xff] %v285_v58  ;;  %v287_v3 = vmul.f32 %v268_v1, %v520_v6  ;;  %v283_v4 = vsel %vm280_vm15, %v282_v61, %v278_v2 }
  0x31   : > { %290 = vst [vmem:[%s195_s22 + $0x8] sm:$0xff] %v286_v62  ;;  %v288_v7 = vmul.f32 %v283_v4, %v522_v8 }
  0x32   : > { %291 = vst [vmem:[%s195_s22 + $0x10] sm:$0xff] %v287_v3 }
  0x33   : > { %292 = vst [vmem:[%s195_s22 + $0x18] sm:$0xff] %v288_v7 }
  0x34 PF: > { %s12_s11 = sadd.s32 1, %s469_s11   ;;  %s593_s9 = smov %s465_s10 }
  0x35   : > { %p9_p5 = scmp.ge.s32.totalorder %s12_s11, 4   ;;  %s594_s10 = smov %s596_s12 }
  0x37   :  { %11 = sbr.rel (!%p9_p5) target bundleno = 2 (0x2), region = 61 }

// kernel: forward.112
= control target key start
LH: loop header
LB: loop body
LE: loop exit
PB: predicated region body
PF: predicated region fallthrough
CT: control target
= control target key end

     0   :  { %s631_s21 = smov 0   ;;  %s633_s22 = smov 0   ;;  %s774_s0 = inlined_call_operand.vmem [shape: f32[2,32,128], index: 0, kind: input, shape index: {}]   ;;  %s775_s1 = inlined_call_operand.vmem [shape: f32[2,1,1], index: 1, kind: input, shape index: {}]   ;;  %s776_s2 = inlined_call_operand.vmem [shape: f32[128,128], index: 2, kind: input, shape index: {}]   ;;  %s777_s3 = inlined_call_operand.vmem [shape: f32[1,128], index: 3, kind: input, shape index: {}]   ;;  %s778_s4 = inlined_call_operand.vmem [shape: f32[128,128], index: 4, kind: input, shape index: {}]   ;;  %s779_s5 = inlined_call_operand.vmem [shape: f32[1,128], index: 5, kind: input, shape index: {}]   ;;  %s780_s6 = inlined_call_operand.vmem [shape: f32[2,1,128], index: 6, kind: output, shape index: {}]  }
   0x1   :  { %s635_s23 = smov 0  }
   0x2 LB: > { %s28_s24 = sadd.s32 1, %s588_s22  ;;  %p525_p0 = scmp.ge.s32.totalorder %s592_s23, 1  ;;  %s592_s23 = sphi %s635_s23, %s16_s23   ;;  %s588_s22 = sphi %s633_s22, %s782_s22   ;;  %s584_s21 = sphi %s631_s21, %s781_s21  }
   0x3   : > { %p30_p1 = scmp.ge.s32.totalorder %s28_s24, 2  ;;  %p239_p2 = scmp.lt.s32.totalorder %s592_s23, 3 }
   0x5   : > { %s784_s24 = smov (%p30_p1, %s28_s24), 0  ;;  %p240_p3 = pnand %p525_p0, %p239_p2 }
   0x6   : > { %p275_p4 = scmp.lt.s32.totalorder (!%p240_p3), %s584_s21, 1 }
   0x7   : > { %243 = sbr.rel (%p240_p3) target bundleno = 466 (0x1d2), region = 44 }
   0xc   : > { %v352_v0 = vld [vmem:[%s776_s2 + $0x78] sm:$0xff]  ;;  %v351_v1 = vld [vmem:[%s776_s2 + $0x70] sm:$0xff]  ;;  %v594_v2 = vmov 0   ;;  %v595_v3 = vmov 0.0   ;;  %s786_s21 = smov (!%p275_p4, %s584_s21), 1  ;;  %v350_v4 = vld [vmem:[%s776_s2 + $0x68] sm:$0xff] }
   0xd   : > { %559 = vset.pattern.permute.xlu0 %v594_v2  ;;  %294 = vst [vmem:[#allocation2] sm:$0x1] %v595_v3  ;;  %354 = vmatpush.msra.mxu0 %v352_v0  ;;  %s286_s9 = scalar_lea.vmem %s775_s1, %s786_s21  ;;  %v349_v5 = vld [vmem:[%s776_s2 + $0x60] sm:$0xff]  ;;  %s532_s12 = sshll.u32 %s786_s21, 5  ;;  %v348_v7 = vld [vmem:[%s776_s2 + $0x58] sm:$0xff]  ;;  %v347_v23 = vld [vmem:[%s776_s2 + $0x50] sm:$0xff] }
   0xe   : > { %v315_v6 = vld [vmem:[%s286_s9] sm:$0x1]  ;;  %s282_s15 = scalar_lea.vmem %s774_s0, %s532_s12  ;;  %v346_v24 = vld [vmem:[%s776_s2 + $0x48] sm:$0xff]  ;;  %v344_v26 = vld [vmem:[%s776_s2 + $0x38] sm:$0xff]  ;;  %s289_s18 = scalar_lea.vmem %s780_s6, %s786_s21 }
   0xf   : > { %355 = vmatpush.msra.mxu0 %v351_v1  ;;  %318 = vperm.xlu0 %559, %v315_v6   ;;  %v296_v8 = vld [vmem:[%s282_s15] sm:$0xff]  ;;  %v297_v9 = vld [vmem:[%s282_s15 + $0x8] sm:$0xff]  ;;  %v298_v10 = vld [vmem:[%s282_s15 + $0x10] sm:$0xff] }
  0x10   : > { %v300_v11 = vadd.f32 %v297_v9, %v296_v8  ;;  %v299_v12 = vld [vmem:[%s282_s15 + $0x18] sm:$0xff]  ;;  %v345_v25 = vld [vmem:[%s776_s2 + $0x40] sm:$0xff]  ;;  %v343_v27 = vld [vmem:[%s776_s2 + $0x30] sm:$0xff] }
  0x11   : > { %356 = vmatpush.msra.mxu0 %v350_v4  ;;  %v342_v28 = vld [vmem:[%s776_s2 + $0x28] sm:$0xff]  ;;  %v341_v29 = vld [vmem:[%s776_s2 + $0x20] sm:$0xff]  ;;  %v340_v30 = vld [vmem:[%s776_s2 + $0x18] sm:$0xff] }
  0x12   : > { %v301_v13 = vadd.f32 %v300_v11, %v298_v10  ;;  %v339_v31 = vld [vmem:[%s776_s2 + $0x10] sm:$0xff]  ;;  %v338_v32 = vld [vmem:[%s776_s2 + $0x8] sm:$0xff]  ;;  %v337_v33 = vld [vmem:[%s776_s2] sm:$0xff] }
  0x13   : > { %357 = vmatpush.msra.mxu0 %v349_v5  ;;  %v409_v48 = vld [vmem:[%s778_s4 + $0x78] sm:$0xff]  ;;  %v408_v49 = vld [vmem:[%s778_s4 + $0x70] sm:$0xff]  ;;  %v407_v50 = vld [vmem:[%s778_s4 + $0x68] sm:$0xff] }
  0x14   : > { %v302_v14 = vadd.f32 %v301_v13, %v299_v12  ;;  %v295_v20 = vld [vmem:[#allocation2] sm:$0x1]  ;;  %411 = vmatpush.msra.mxu1 %v409_v48  ;;  %v405_v52 = vld [vmem:[%s778_s4 + $0x58] sm:$0xff]  ;;  %v404_v53 = vld [vmem:[%s778_s4 + $0x50] sm:$0xff] }
  0x15   : > { %358 = vmatpush.msra.mxu0 %v348_v7  ;;  %v406_v51 = vld [vmem:[%s778_s4 + $0x60] sm:$0xff]  ;;  %v403_v54 = vld [vmem:[%s778_s4 + $0x48] sm:$0xff]  ;;  %v401_v56 = vld [vmem:[%s778_s4 + $0x38] sm:$0xff] }
  0x16   : > { %v303_v15 = vrot.slane %v302_v14, 4  ;;  %412 = vmatpush.msra.mxu1 %v408_v49  ;;  %v402_v55 = vld [vmem:[%s778_s4 + $0x40] sm:$0xff]  ;;  %v400_v57 = vld [vmem:[%s778_s4 + $0x30] sm:$0xff]  ;;  %v399_v58 = vld [vmem:[%s778_s4 + $0x28] sm:$0xff] }
  0x17   : > { %359 = vmatpush.msra.mxu0 %v347_v23  ;;  %v398_v59 = vld [vmem:[%s778_s4 + $0x20] sm:$0xff]  ;;  %v397_v60 = vld [vmem:[%s778_s4 + $0x18] sm:$0xff]  ;;  %v396_v61 = vld [vmem:[%s778_s4 + $0x10] sm:$0xff] }
  0x18   : > { %v304_v16 = vadd.f32 %v303_v15, %v302_v14  ;;  %413 = vmatpush.msra.mxu1 %v407_v50  ;;  %v395_v62 = vld [vmem:[%s778_s4 + $0x8] sm:$0xff]  ;;  %v394_v63 = vld [vmem:[%s778_s4] sm:$0xff] }
  0x19   : > { %360 = vmatpush.msra.mxu0 %v346_v24  ;;  %v353_v0 = vld [vmem:[%s777_s3] sm:$0x1] }
  0x1a   : > { %v305_v17 = vrot.slane %v304_v16, 2  ;;  %414 = vmatpush.msra.mxu1 %v406_v51 }
  0x1b   : > { %361 = vmatpush.msra.mxu0 %v345_v25 }
  0x1c   : > { %v306_v18 = vadd.f32 %v305_v17, %v304_v16  ;;  %415 = vmatpush.msra.mxu1 %v405_v52  ;;  %v410_v17 = vld [vmem:[%s779_s5] sm:$0x1] }
  0x1d   : > { %362 = vmatpush.msra.mxu0 %v344_v26 }
  0x1e   : > { %v307_v19 = vrot.slane %v306_v18, 1  ;;  %416 = vmatpush.msra.mxu1 %v404_v53 }
  0x1f   : > { %363 = vmatpush.msra.mxu0 %v343_v27 }
  0x20   : > { %v308_v21 = vadd.f32 %v307_v19, %v306_v18  ;;  %417 = vmatpush.msra.mxu1 %v403_v54 }
  0x21   : > { %364 = vmatpush.msra.mxu0 %v342_v28 }
  0x22   : > { %v309_v22 = vadd.f32 %v308_v21, %v295_v20  ;;  %418 = vmatpush.msra.mxu1 %v402_v55 }
  0x23   : > { %365 = vmatpush.msra.mxu0 %v341_v29 }
  0x24   : > { %310 = vst [vmem:[#allocation2] sm:$0x1] %v309_v22  ;;  %419 = vmatpush.msra.mxu1 %v401_v56 }
  0x25   : > { %366 = vmatpush.msra.mxu0 %v340_v30 }
  0x26   : > { %420 = vmatpush.msra.mxu1 %v400_v57 }
  0x27   : > { %367 = vmatpush.msra.mxu0 %v339_v31 }
  0x28   : > { %421 = vmatpush.msra.mxu1 %v399_v58 }
  0x29   : > { %368 = vmatpush.msra.mxu0 %v338_v32 }
  0x2a   : > { %422 = vmatpush.msra.mxu1 %v398_v59 }
  0x2b   : > { %369 = vmatpush.msra.mxu0 %v337_v33  ;;  %v314_v43 = vld [vmem:[#allocation2] sm:$0x1] }
  0x2c   : > { %423 = vmatpush.msra.mxu1 %v397_v60 }
  0x2e   : > { %424 = vmatpush.msra.mxu1 %v396_v61 }
  0x30   : > { %425 = vmatpush.msra.mxu1 %v395_v62 }
  0x32   : > { %426 = vmatpush.msra.mxu1 %v394_v63 }
  0x81   : > { %v319_v34 = vpop.permute.xlu0 %318 }
  0x82   : > { %v321_v35 = vperm.slane %v319_v34, 0 }
  0x84   : > { %560 = vrcp.f32 %v321_v35  ;;  %v333_v39 = vand.u32 2147483648, %v321_v35  ;;  %v331_v41 = vand.u32 2147483647, %v321_v35  ;;  %vm327_vm1 = vweird.f32 %v321_v35 }
  0x86   : > { %v334_v44 = vor.u32 1.1754944e-38, %v333_v39  ;;  %vm332_vm3 = vcmp.eq.f32.partialorder %v331_v41, 8.507059e+37 }
  0x8a   : > { %v561_v36 = vpop.eup %560 }
  0x8b   : > { %v323_v37 = vmul.f32 %v561_v36, %v321_v35  ;;  %vm328_vm0 = vweird.f32 %v561_v36 }
  0x8c   : > { %vm329_vm2 = vmor %vm327_vm1, %vm328_vm0 }
  0x8d   : > { %v324_v38 = vsub.f32 1.0, %v323_v37 }
  0x8f   : > { %v325_v40 = vmul.f32 %v561_v36, %v324_v38 }
  0x91   : > { %v326_v42 = vadd.f32 %v561_v36, %v325_v40 }
  0x93   : > { %v330_v45 = vsel %vm329_vm2, %v561_v36, %v326_v42 }
  0x94   : > { %v335_v46 = vsel %vm332_vm3, %v334_v44, %v330_v45 }
  0x95   : > { %v336_v47 = vmul.f32 %v335_v46, %v314_v43 }
  0x97   : > { %370 = vmatmul.f32.vlgmr.msra.gmra.mxu0 %v336_v47 }
 0x114   : > { %v371_v1 = vpop.f32.mrf.mxu0 }
 0x115   : > { %v372_v2 = vadd.f32 %v371_v1, %v353_v0 }
 0x117   : > { %v528_v3 = vmul.f32 -1.442695, %v372_v2 }
 0x119   : > { %562 = vpow2.f32 %v528_v3 }
 0x11f   : > { %v563_v4 = vpop.eup %562 }
 0x120   : > { %v377_v5 = vadd.f32 1.0, %v563_v4 }
 0x122   : > { %564 = vrcp.f32 %v377_v5  ;;  %v389_v9 = vand.u32 2147483648, %v377_v5  ;;  %v387_v11 = vand.u32 2147483647, %v377_v5  ;;  %vm383_vm5 = vweird.f32 %v377_v5 }
 0x124   : > { %v390_v13 = vor.u32 1.1754944e-38, %v389_v9  ;;  %vm388_vm7 = vcmp.eq.f32.partialorder %v387_v11, 8.507059e+37 }
 0x128   : > { %v565_v6 = vpop.eup %564 }
 0x129   : > { %v379_v7 = vmul.f32 %v565_v6, %v377_v5  ;;  %vm384_vm4 = vweird.f32 %v565_v6 }
 0x12a   : > { %vm385_vm6 = vmor %vm383_vm5, %vm384_vm4 }
 0x12b   : > { %v380_v8 = vsub.f32 1.0, %v379_v7 }
 0x12d   : > { %v381_v10 = vmul.f32 %v565_v6, %v380_v8 }
 0x12f   : > { %v382_v12 = vadd.f32 %v565_v6, %v381_v10 }
 0x131   : > { %v386_v14 = vsel %vm385_vm6, %v565_v6, %v382_v12 }
 0x132   : > { %v391_v15 = vsel %vm388_vm7, %v390_v13, %v386_v14 }
 0x133   : > { %v393_v16 = vmul.f32 %v391_v15, %v372_v2 }
 0x135   : > { %427 = vmatmul.f32.vlgmr.msra.gmra.mxu1 %v393_v16 }
 0x1b2   : > { %v428_v18 = vpop.f32.mrf.mxu1 }
 0x1b3   : > { %v429_v19 = vadd.f32 %v428_v18, %v410_v17 }
 0x1b5   : > { %v529_v20 = vmul.f32 -1.442695, %v429_v19 }
 0x1b7   : > { %566 = vpow2.f32 %v529_v20 }
 0x1bd   : > { %v567_v21 = vpop.eup %566 }
 0x1be   : > { %v434_v22 = vadd.f32 1.0, %v567_v21 }
 0x1c0   : > { %568 = vrcp.f32 %v434_v22  ;;  %v446_v26 = vand.u32 2147483648, %v434_v22  ;;  %v444_v28 = vand.u32 2147483647, %v434_v22  ;;  %vm440_vm9 = vweird.f32 %v434_v22 }
 0x1c2   : > { %v447_v30 = vor.u32 1.1754944e-38, %v446_v26  ;;  %vm445_vm11 = vcmp.eq.f32.partialorder %v444_v28, 8.507059e+37 }
 0x1c6   : > { %v569_v23 = vpop.eup %568 }
 0x1c7   : > { %v436_v24 = vmul.f32 %v569_v23, %v434_v22  ;;  %vm441_vm8 = vweird.f32 %v569_v23 }
 0x1c8   : > { %vm442_vm10 = vmor %vm440_vm9, %vm441_vm8 }
 0x1c9   : > { %v437_v25 = vsub.f32 1.0, %v436_v24 }
 0x1cb   : > { %v438_v27 = vmul.f32 %v569_v23, %v437_v25 }
 0x1cd   : > { %v439_v29 = vadd.f32 %v569_v23, %v438_v27 }
 0x1cf   : > { %v443_v31 = vsel %vm442_vm10, %v569_v23, %v439_v29 }
 0x1d0   : > { %v448_v32 = vsel %vm445_vm11, %v447_v30, %v443_v31 }
 0x1d1   : > { %450 = vst [vmem:[%s289_s18] sm:$0x1] %v448_v32 }
 0x1d2 PF: > { %s16_s23 = sadd.s32 1, %s592_s23   ;;  %s781_s21 = smov %s588_s22 }
 0x1d3   : > { %p13_p5 = scmp.ge.s32.totalorder %s16_s23, 4   ;;  %s782_s22 = smov %s784_s24 }
 0x1d5   :  { %15 = sbr.rel (!%p13_p5) target bundleno = 2 (0x2), region = 85 }

// kernel: forward.111
= control target key start
LH: loop header
LB: loop body
LE: loop exit
PB: predicated region body
PF: predicated region fallthrough
CT: control target
= control target key end

     0   :  { %s1484_s1 = inlined_call_operand.vmem [shape: bf16[640,128], index: 1, kind: input, shape index: {}]   ;;  %s1485_s2 = inlined_call_operand.vmem [shape: f32[1,128], index: 2, kind: input, shape index: {}]   ;;  %s1486_s0 = inlined_call_operand.vmem [shape: bf16[64,640], index: 0, kind: input, shape index: {}]   ;;  %s1487_s3 = inlined_call_operand.vmem [shape: f32[64,128], index: 3, kind: output, shape index: {}]  }
   0x1   :  { %v1058_v0 = vld [vmem:[%s1484_s1 + $0x38] sm:$0xff]  ;;  %v1057_v2 = vld [vmem:[%s1484_s1 + $0x30] sm:$0xff]  ;;  %v1056_v6 = vld [vmem:[%s1484_s1 + $0x28] sm:$0xff] }
   0x2   :  { %v1074_v1 = vld [vmem:[%s1484_s1 + $0xb8] sm:$0xff]  ;;  %1091 = vmatpush.bf16.msra.mxu1 %v1058_v0  ;;  %466 = vmatpush.bf16.msra.mxu0 %v1058_v0  ;;  %v1073_v3 = vld [vmem:[%s1484_s1 + $0xb0] sm:$0xff]  ;;  %v1072_v7 = vld [vmem:[%s1484_s1 + $0xa8] sm:$0xff] }
   0x3   :  { %524 = vmatpush.bf16.msra.mxu2 %v1074_v1  ;;  %v1082_v4 = vld [vmem:[%s1484_s1 + $0xf8] sm:$0xff]  ;;  %v1081_v5 = vld [vmem:[%s1484_s1 + $0xf0] sm:$0xff]  ;;  %v1080_v8 = vld [vmem:[%s1484_s1 + $0xe8] sm:$0xff] }
   0x4   :  { %553 = vmatpush.bf16.msra.mxu3 %v1082_v4  ;;  %v1055_v9 = vld [vmem:[%s1484_s1 + $0x20] sm:$0xff]  ;;  %v1054_v12 = vld [vmem:[%s1484_s1 + $0x18] sm:$0xff]  ;;  %v1053_v15 = vld [vmem:[%s1484_s1 + $0x10] sm:$0xff] }
   0x5   :  { %v1071_v10 = vld [vmem:[%s1484_s1 + $0xa0] sm:$0xff]  ;;  %v1070_v13 = vld [vmem:[%s1484_s1 + $0x98] sm:$0xff]  ;;  %v1069_v16 = vld [vmem:[%s1484_s1 + $0x90] sm:$0xff] }
   0x6   :  { %1092 = vmatpush.bf16.msra.mxu1 %v1057_v2  ;;  %467 = vmatpush.bf16.msra.mxu0 %v1057_v2  ;;  %v1079_v11 = vld [vmem:[%s1484_s1 + $0xe0] sm:$0xff]  ;;  %v1078_v14 = vld [vmem:[%s1484_s1 + $0xd8] sm:$0xff]  ;;  %v1077_v17 = vld [vmem:[%s1484_s1 + $0xd0] sm:$0xff] }
   0x7   :  { %525 = vmatpush.bf16.msra.mxu2 %v1073_v3  ;;  %v1052_v18 = vld [vmem:[%s1484_s1 + $0x8] sm:$0xff]  ;;  %v1051_v20 = vld [vmem:[%s1484_s1] sm:$0xff]  ;;  %v825_v21 = vld [vmem:[%s1486_s0 + $0x50] sm:$0xf] }
   0x8   :  { %554 = vmatpush.bf16.msra.mxu3 %v1081_v5  ;;  %v1068_v19 = vld [vmem:[%s1484_s1 + $0x88] sm:$0xff]  ;;  %v1043_v22 = vld [vmem:[%s1486_s0 + $0x60] sm:$0xf0]  ;;  %v1066_v24 = vld [vmem:[%s1484_s1 + $0x78] sm:$0xff] }
   0x9   :  { %v1076_v23 = vld [vmem:[%s1484_s1 + $0xc8] sm:$0xff]  ;;  %v785_v25 = vld [vmem:[%s1486_s0] sm:$0xf]  ;;  %v1033_v26 = vld [vmem:[%s1486_s0 + $0x10] sm:$0xf0]  ;;  %v826_v31 = vor.u32 %v1043_v22, %v825_v21 }
   0xa   :  { %1093 = vmatpush.bf16.msra.mxu1 %v1056_v6  ;;  %468 = vmatpush.bf16.msra.mxu0 %v1056_v6  ;;  %v1067_v27 = vld [vmem:[%s1484_s1 + $0x80] sm:$0xff]  ;;  %v793_v28 = vld [vmem:[%s1486_s0 + $0x8] sm:$0xf]  ;;  %v1034_v29 = vld [vmem:[%s1486_s0 + $0x18] sm:$0xf0]  ;;  %v786_v32 = vor.u32 %v1033_v26, %v785_v25 }
   0xb   :  { %526 = vmatpush.bf16.msra.mxu2 %v1072_v7  ;;  %v1090_v30 = vld [vmem:[%s1484_s1 + $0x138] sm:$0xff]  ;;  %v794_v33 = vor.u32 %v1034_v29, %v793_v28  ;;  %v1075_v34 = vld [vmem:[%s1484_s1 + $0xc0] sm:$0xff]  ;;  %v1032_v35 = vld [vmem:[%s1486_s0 + $0xc] sm:$0xf] }
   0xc   :  { %555 = vmatpush.bf16.msra.mxu3 %v1080_v8  ;;  %v795_v36 = vld [vmem:[%s1486_s0 + $0x1c] sm:$0xf0]  ;;  %v1065_v37 = vld [vmem:[%s1484_s1 + $0x70] sm:$0xff]  ;;  %v1064_v40 = vld [vmem:[%s1484_s1 + $0x68] sm:$0xff] }
   0xd   :  { %v1089_v38 = vld [vmem:[%s1484_s1 + $0x130] sm:$0xff]  ;;  %v798_v39 = vor.u32 %v1032_v35, %v795_v36  ;;  %v1088_v41 = vld [vmem:[%s1484_s1 + $0x128] sm:$0xff]  ;;  %v1063_v42 = vld [vmem:[%s1484_s1 + $0x60] sm:$0xff] }
   0xe   :  { %1094 = vmatpush.bf16.msra.mxu1 %v1055_v9  ;;  %469 = vmatpush.bf16.msra.mxu0 %v1055_v9  ;;  %v1087_v43 = vld [vmem:[%s1484_s1 + $0x120] sm:$0xff]  ;;  %v845_v44 = vld [vmem:[%s1486_s0 + $0x78] sm:$0xf]  ;;  %v1048_v45 = vld [vmem:[%s1486_s0 + $0x88] sm:$0xf0] }
   0xf   :  { %527 = vmatpush.bf16.msra.mxu2 %v1071_v10  ;;  %v805_v46 = vld [vmem:[%s1486_s0 + $0x28] sm:$0xf]  ;;  %v1038_v47 = vld [vmem:[%s1486_s0 + $0x38] sm:$0xf0]  ;;  %v813_v49 = vld [vmem:[%s1486_s0 + $0x30] sm:$0xf]  ;;  %v846_v52 = vor.u32 %v1048_v45, %v845_v44 }
  0x10   :  { %556 = vmatpush.bf16.msra.mxu3 %v1079_v11  ;;  %v1062_v48 = vld [vmem:[%s1484_s1 + $0x58] sm:$0xff]  ;;  %v1039_v50 = vld [vmem:[%s1486_s0 + $0x40] sm:$0xf0]  ;;  %v806_v53 = vor.u32 %v1038_v47, %v805_v46  ;;  %v1037_v55 = vld [vmem:[%s1486_s0 + $0x34] sm:$0xf] }
  0x11   :  { %v1086_v51 = vld [vmem:[%s1484_s1 + $0x118] sm:$0xff]  ;;  %v814_v54 = vor.u32 %v1039_v50, %v813_v49  ;;  %v815_v56 = vld [vmem:[%s1486_s0 + $0x44] sm:$0xf0]  ;;  %v1061_v57 = vld [vmem:[%s1484_s1 + $0x50] sm:$0xff] }
  0x12   :  { %1095 = vmatpush.bf16.msra.mxu1 %v1054_v12  ;;  %470 = vmatpush.bf16.msra.mxu0 %v1054_v12  ;;  %v1085_v58 = vld [vmem:[%s1484_s1 + $0x110] sm:$0xff]  ;;  %v818_v59 = vor.u32 %v1037_v55, %v815_v56  ;;  %v1060_v60 = vld [vmem:[%s1484_s1 + $0x48] sm:$0xff]  ;;  %v1059_v62 = vld [vmem:[%s1484_s1 + $0x40] sm:$0xff] }
  0x13   :  { %528 = vmatpush.bf16.msra.mxu2 %v1070_v13  ;;  %v1084_v61 = vld [vmem:[%s1484_s1 + $0x108] sm:$0xff]  ;;  %v1083_v63 = vld [vmem:[%s1484_s1 + $0x100] sm:$0xff]  ;;  %v787_v1 = vld [vmem:[%s1486_s0 + $0x14] sm:$0xf0] }
  0x14   :  { %557 = vmatpush.bf16.msra.mxu3 %v1078_v14  ;;  %v1031_v0 = vld [vmem:[%s1486_s0 + $0x4] sm:$0xf]  ;;  %v801_v2 = vld [vmem:[%s1486_s0 + $0x10] sm:$0xf]  ;;  %v833_v4 = vld [vmem:[%s1486_s0 + $0x58] sm:$0xf] }
  0x15   :  { %v1035_v3 = vld [vmem:[%s1486_s0 + $0x20] sm:$0xf0]  ;;  %v1044_v5 = vld [vmem:[%s1486_s0 + $0x68] sm:$0xf0]  ;;  %v790_v6 = vor.u32 %v1031_v0, %v787_v1  ;;  %v1042_v9 = vld [vmem:[%s1486_s0 + $0x5c] sm:$0xf] }
  0x16   :  { %1096 = vmatpush.bf16.msra.mxu1 %v1053_v15  ;;  %471 = vmatpush.bf16.msra.mxu0 %v1053_v15  ;;  %v802_v7 = vor.u32 %v1035_v3, %v801_v2  ;;  %v834_v8 = vor.u32 %v1044_v5, %v833_v4  ;;  %v835_v10 = vld [vmem:[%s1486_s0 + $0x6c] sm:$0xf0]  ;;  %v1036_v12 = vld [vmem:[%s1486_s0 + $0x2c] sm:$0xf]  ;;  %v807_v13 = vld [vmem:[%s1486_s0 + $0x3c] sm:$0xf0] }
  0x17   :  { %529 = vmatpush.bf16.msra.mxu2 %v1069_v16  ;;  %v838_v11 = vor.u32 %v1042_v9, %v835_v10  ;;  %v821_v14 = vld [vmem:[%s1486_s0 + $0x38] sm:$0xf]  ;;  %v1040_v15 = vld [vmem:[%s1486_s0 + $0x48] sm:$0xf0]  ;;  %v853_v16 = vld [vmem:[%s1486_s0 + $0x80] sm:$0xf] }
  0x18   :  { %558 = vmatpush.bf16.msra.mxu3 %v1077_v17  ;;  %v1049_v17 = vld [vmem:[%s1486_s0 + $0x90] sm:$0xf0]  ;;  %v1047_v21 = vld [vmem:[%s1486_s0 + $0x84] sm:$0xf]  ;;  %v855_v22 = vld [vmem:[%s1486_s0 + $0x94] sm:$0xf0] }
  0x19   :  { %v827_v25 = vld [vmem:[%s1486_s0 + $0x64] sm:$0xf0]  ;;  %v841_v26 = vld [vmem:[%s1486_s0 + $0x60] sm:$0xf]  ;;  %v1050_v29 = vld [vmem:[%s1486_s0 + $0x98] sm:$0xf0] }
  0x1a   :  { %1097 = vmatpush.bf16.msra.mxu1 %v1052_v18  ;;  %472 = vmatpush.bf16.msra.mxu0 %v1052_v18  ;;  %v810_v18 = vor.u32 %v1036_v12, %v807_v13  ;;  %v861_v28 = vld [vmem:[%s1486_s0 + $0x88] sm:$0xf] }
  0x1b   :  { %530 = vmatpush.bf16.msra.mxu2 %v1068_v19  ;;  %v822_v19 = vor.u32 %v1040_v15, %v821_v14 }
  0x1c   :  { %559 = vmatpush.bf16.msra.mxu3 %v1076_v23  ;;  %v858_v23 = vor.u32 %v1047_v21, %v855_v22 }
  0x1e   :  { %1098 = vmatpush.bf16.msra.mxu1 %v1051_v20  ;;  %473 = vmatpush.bf16.msra.mxu0 %v1051_v20  ;;  %v854_v20 = vor.u32 %v1049_v17, %v853_v16 }
  0x1f   :  { %531 = vmatpush.bf16.msra.mxu2 %v1067_v27  ;;  %v1045_v27 = vld [vmem:[%s1486_s0 + $0x70] sm:$0xf0] }
  0x20   :  { %560 = vmatpush.bf16.msra.mxu3 %v1075_v34  ;;  %v847_v34 = vld [vmem:[%s1486_s0 + $0x8c] sm:$0xf0] }
  0x21   :  { %484 = vmatmul.bf16.vlgmr.msra.gmra.mxu1 %v826_v31  ;;  %474 = vmatmul.bf16.vlgmr.msra.gmra.mxu0 %v786_v32  ;;  %v842_v31 = vor.u32 %v1045_v27, %v841_v26  ;;  %v862_v32 = vor.u32 %v1050_v29, %v861_v28 }
  0x22   :  { %495 = vmatpush.bf16.msrb.mxu1 %v1066_v24  ;;  %582 = vmatpush.bf16.msrb.mxu0 %v1090_v30  ;;  %v1041_v24 = vld [vmem:[%s1486_s0 + $0x54] sm:$0xf] }
  0x23   :  { %1099 = vmatpush.bf16.msrb.mxu2 %v1090_v30  ;;  %561 = vmatmul.bf16.vlgmr.msra.gmra.mxu3 %v798_v39  ;;  %v830_v30 = vor.u32 %v1041_v24, %v827_v25 }
  0x24   :  { %532 = vmatmul.bf16.vlgmr.msra.gmra.mxu2 %v794_v33  ;;  %v1046_v33 = vld [vmem:[%s1486_s0 + $0x7c] sm:$0xf] }
  0x25   :  { %v850_v35 = vor.u32 %v1046_v33, %v847_v34 }
  0x26   :  { %496 = vmatpush.bf16.msrb.mxu1 %v1065_v37  ;;  %583 = vmatpush.bf16.msrb.mxu0 %v1089_v38 }
  0x27   :  { %1100 = vmatpush.bf16.msrb.mxu2 %v1089_v38 }
  0x2a   :  { %497 = vmatpush.bf16.msrb.mxu1 %v1064_v40  ;;  %584 = vmatpush.bf16.msrb.mxu0 %v1088_v41 }
  0x2b   :  { %1101 = vmatpush.bf16.msrb.mxu2 %v1088_v41 }
  0x2e   :  { %498 = vmatpush.bf16.msrb.mxu1 %v1063_v42  ;;  %585 = vmatpush.bf16.msrb.mxu0 %v1087_v43 }
  0x2f   :  { %1102 = vmatpush.bf16.msrb.mxu2 %v1087_v43 }
  0x31   :  { %489 = vmatmul.bf16.gmra.mxu1 %v846_v52  ;;  %479 = vmatmul.bf16.gmra.mxu0 %v806_v53 }
  0x32   :  { %499 = vmatpush.bf16.msrb.mxu1 %v1062_v48  ;;  %586 = vmatpush.bf16.msrb.mxu0 %v1086_v51  ;;  %v1409_v48 = vld [vmem:[%s1485_s2] ss:$0 sm:$0xff] }
  0x33   :  { %1103 = vmatpush.bf16.msrb.mxu2 %v1086_v51  ;;  %566 = vmatmul.bf16.gmra.mxu3 %v818_v59 }
  0x34   :  { %537 = vmatmul.bf16.gmra.mxu2 %v814_v54 }
  0x36   :  { %500 = vmatpush.bf16.msrb.mxu1 %v1061_v57  ;;  %587 = vmatpush.bf16.msrb.mxu0 %v1085_v58 }
  0x37   :  { %1104 = vmatpush.bf16.msrb.mxu2 %v1085_v58 }
  0x3a   :  { %501 = vmatpush.bf16.msrb.mxu1 %v1060_v60  ;;  %588 = vmatpush.bf16.msrb.mxu0 %v1084_v61 }
  0x3b   :  { %1105 = vmatpush.bf16.msrb.mxu2 %v1084_v61 }
  0x3e   :  { %502 = vmatpush.bf16.msrb.mxu1 %v1059_v62  ;;  %589 = vmatpush.bf16.msrb.mxu0 %v1083_v63 }
  0x3f   :  { %1106 = vmatpush.bf16.msrb.mxu2 %v1083_v63 }
  0x41   :  { %503 = vmatmul.bf16.vlgmr.msrb.gmra.mxu1 %v790_v6  ;;  %590 = vmatmul.bf16.vlgmr.msrb.gmra.mxu0 %v802_v7 }
  0x43   :  { %571 = vmatmul.bf16.gmra.mxu3 %v838_v11 }
  0x44   :  { %542 = vmatmul.bf16.gmra.mxu2 %v834_v8 }
  0x51   :  { %508 = vmatmul.bf16.gmra.mxu1 %v810_v18  ;;  %595 = vmatmul.bf16.gmra.mxu0 %v822_v19 }
  0x53   :  { %576 = vmatmul.bf16.gmra.mxu3 %v858_v23 }
  0x54   :  { %547 = vmatmul.bf16.gmra.mxu2 %v854_v20 }
  0x61   :  { %513 = vmatmul.bf16.gmra.mxu1 %v830_v30  ;;  %600 = vmatmul.bf16.gmra.mxu0 %v842_v31 }
  0x64   :  { %605 = vmatmul.bf16.vlgmr.msrb.gmra.mxu2 %v862_v32 }
  0x71   :  { %518 = vmatmul.bf16.gmra.mxu1 %v850_v35 }
  0x9e   :  { %v485_v36 = vpop.f32.mrf.mxu1  ;;  %v475_v37 = vpop.f32.mrf.mxu0 }
  0x9f   :  { %v476_v49 = vadd.f32 %v1409_v48, %v475_v37  ;;  %v486_v28 = vadd.f32 %v1409_v48, %v485_v36 }
  0xa6   :  { %v1400_v39 = vpop.f32.mrf.mxu1  ;;  %v477_v40 = vpop.f32.mrf.mxu0 }
  0xa7   :  { %v533_v38 = vpop.f32.mrf.mxu2  ;;  %v562_v44 = vpop.f32.mrf.mxu3  ;;  %v478_v57 = vadd.f32 %v1409_v48, %v477_v40 }
  0xae   :  { %v1402_v42 = vpop.f32.mrf.mxu1  ;;  %v480_v43 = vpop.f32.mrf.mxu0 }
  0xaf   :  { %v535_v41 = vpop.f32.mrf.mxu2  ;;  %v564_v50 = vpop.f32.mrf.mxu3  ;;  %v481_v3 = vadd.f32 %v1409_v48, %v480_v43 }
  0xb6   :  { %v1404_v46 = vpop.f32.mrf.mxu1  ;;  %v482_v47 = vpop.f32.mrf.mxu0 }
  0xb7   :  { %v538_v45 = vpop.f32.mrf.mxu2  ;;  %v567_v63 = vpop.f32.mrf.mxu3  ;;  %v483_v15 = vadd.f32 %v1409_v48, %v482_v47 }
  0xbe   :  { %v504_v51 = vpop.f32.mrf.mxu1  ;;  %v591_v52 = vpop.f32.mrf.mxu0 }
  0xbf   :  { %v505_v53 = vadd.f32 %v504_v51, %v476_v49  ;;  %v540_v54 = vpop.f32.mrf.mxu2  ;;  %v569_v12 = vpop.f32.mrf.mxu3 }
  0xc1   :  { %v534_v55 = vadd.f32 %v533_v38, %v505_v53 }
  0xc3   :  { %v563_v56 = vadd.f32 %v562_v44, %v534_v55 }
  0xc5   :  { %v1413_v58 = vadd.f32 %v591_v52, %v563_v56 }
  0xc6   :  { %v506_v59 = vpop.f32.mrf.mxu1  ;;  %v593_v60 = vpop.f32.mrf.mxu0 }
  0xc7   :  { %v1023_v61 = vmul.f32 -1.442695, %v1413_v58  ;;  %v507_v62 = vadd.f32 %v506_v59, %v478_v57  ;;  %v543_v1 = vpop.f32.mrf.mxu2  ;;  %v572_v30 = vpop.f32.mrf.mxu3  ;;  %v488_v59 = vadd.f32 %v1409_v48, %v1400_v39 }
  0xc9   :  { %1108 = vpow2.f32 %v1023_v61  ;;  %v536_v0 = vadd.f32 %v535_v41, %v507_v62 }
  0xcb   :  { %v565_v2 = vadd.f32 %v564_v50, %v536_v0 }
  0xcd   :  { %v1417_v4 = vadd.f32 %v593_v60, %v565_v2 }
  0xce   :  { %v509_v5 = vpop.f32.mrf.mxu1  ;;  %v596_v9 = vpop.f32.mrf.mxu0 }
  0xcf   :  { %v1109_v6 = vpop.eup %1108  ;;  %v1024_v7 = vmul.f32 -1.442695, %v1417_v4  ;;  %v510_v8 = vadd.f32 %v509_v5, %v481_v3  ;;  %v1420_v14 = vpop.f32.mrf.mxu2 }
  0xd0   :  { %v635_v10 = vadd.f32 1.0, %v1109_v6  ;;  %v574_v60 = vpop.f32.mrf.mxu3 }
  0xd1   :  { %1110 = vpow2.f32 %v1024_v7  ;;  %v539_v11 = vadd.f32 %v538_v45, %v510_v8 }
  0xd2   :  { %1112 = vrcp.f32 %v635_v10  ;;  %v654_v29 = vand.u32 2147483648, %v635_v10  ;;  %v652_v32 = vand.u32 2147483647, %v635_v10  ;;  %vm648_vm1 = vweird.f32 %v635_v10 }
  0xd3   :  { %v568_v13 = vadd.f32 %v567_v63, %v539_v11 }
  0xd4   :  { %v655_v44 = vor.u32 1.1754944e-38, %v654_v29  ;;  %vm653_vm3 = vcmp.eq.f32.partialorder %v652_v32, 8.507059e+37 }
  0xd5   :  { %v1423_v16 = vadd.f32 %v596_v9, %v568_v13  ;;  %v491_v13 = vadd.f32 %v1409_v48, %v1402_v42 }
  0xd6   :  { %v511_v17 = vpop.f32.mrf.mxu1  ;;  %v598_v25 = vpop.f32.mrf.mxu0 }
  0xd7   :  { %v1111_v18 = vpop.eup %1110  ;;  %v1025_v19 = vmul.f32 -1.442695, %v1423_v16  ;;  %v512_v20 = vadd.f32 %v511_v17, %v483_v15  ;;  %v1429_v34 = vpop.f32.mrf.mxu2 }
  0xd8   :  { %v1113_v21 = vpop.eup %1112  ;;  %v636_v22 = vadd.f32 1.0, %v1111_v18 }
  0xd9   :  { %v644_v23 = vmul.f32 %v1113_v21, %v635_v10  ;;  %1114 = vpow2.f32 %v1025_v19  ;;  %v541_v24 = vadd.f32 %v540_v54, %v512_v20  ;;  %vm649_vm0 = vweird.f32 %v1113_v21 }
  0xda   :  { %1116 = vrcp.f32 %v636_v22  ;;  %vm650_vm2 = vmor %vm648_vm1, %vm649_vm0  ;;  %v669_v54 = vand.u32 2147483648, %v636_v22  ;;  %v667_v56 = vand.u32 2147483647, %v636_v22  ;;  %vm663_vm5 = vweird.f32 %v636_v22 }
  0xdb   :  { %v645_v26 = vsub.f32 1.0, %v644_v23  ;;  %v570_v27 = vadd.f32 %v569_v12, %v541_v24 }
  0xdc   :  { %vm668_vm7 = vcmp.eq.f32.partialorder %v667_v56, 8.507059e+37 }
  0xdd   :  { %v646_v31 = vmul.f32 %v1113_v21, %v645_v26  ;;  %v1427_v33 = vadd.f32 %v598_v25, %v570_v27 }
  0xde   :  { %v514_v35 = vpop.f32.mrf.mxu1  ;;  %v601_v53 = vpop.f32.mrf.mxu0 }
  0xdf   :  { %v1115_v37 = vpop.eup %1114  ;;  %v647_v38 = vadd.f32 %v1113_v21, %v646_v31  ;;  %v1026_v40 = vmul.f32 -1.442695, %v1427_v33  ;;  %v515_v41 = vadd.f32 %v514_v35, %v486_v28  ;;  %v550_v3 = vpop.f32.mrf.mxu2 }
  0xe0   :  { %v1117_v43 = vpop.eup %1116  ;;  %v637_v36 = vadd.f32 1.0, %v1115_v37 }
  0xe1   :  { %v651_v45 = vsel %vm650_vm2, %v1113_v21, %v647_v38  ;;  %v659_v47 = vmul.f32 %v1117_v43, %v636_v22  ;;  %1118 = vpow2.f32 %v1026_v40  ;;  %v544_v52 = vadd.f32 %v543_v1, %v515_v41 }
  0xe2   :  { %v656_v49 = vsel %vm653_vm3, %v655_v44, %v651_v45  ;;  %1120 = vrcp.f32 %v637_v36  ;;  %vm664_vm4 = vweird.f32 %v1117_v43  ;;  %v670_v1 = vor.u32 1.1754944e-38, %v669_v54 }
  0xe3   :  { %v763_v50 = vmul.f32 %v656_v49, %v1413_v58  ;;  %v660_v51 = vsub.f32 1.0, %v659_v47  ;;  %v573_v57 = vadd.f32 %v572_v30, %v544_v52  ;;  %vm665_vm6 = vmor %vm663_vm5, %vm664_vm4  ;;  %v684_v11 = vand.u32 2147483648, %v637_v36 }
  0xe4   :  { %v682_v17 = vand.u32 2147483647, %v637_v36  ;;  %vm678_vm9 = vweird.f32 %v637_v36  ;;  %v493_v38 = vadd.f32 %v1409_v48, %v1404_v46 }
  0xe5   :  { %771 = vst [vmem:[%s1487_s3] sm:$0xff] %v763_v50  ;;  %v661_v55 = vmul.f32 %v1117_v43, %v660_v51  ;;  %v1438_v58 = vadd.f32 %v601_v53, %v573_v57  ;;  %v685_v23 = vor.u32 1.1754944e-38, %v684_v11 }
  0xe6   :  { %v516_v61 = vpop.f32.mrf.mxu1  ;;  %v603_v18 = vpop.f32.mrf.mxu0  ;;  %vm683_vm11 = vcmp.eq.f32.partialorder %v682_v17, 8.507059e+37 }
  0xe7   :  { %v1119_v62 = vpop.eup %1118  ;;  %v662_v63 = vadd.f32 %v1117_v43, %v661_v55  ;;  %v517_v5 = vadd.f32 %v516_v61, %v488_v59  ;;  %v1027_v8 = vmul.f32 -1.442695, %v1438_v58  ;;  %v606_v31 = vpop.f32.mrf.mxu2 }
  0xe8   :  { %v1121_v0 = vpop.eup %1120  ;;  %v638_v2 = vadd.f32 1.0, %v1119_v62 }
  0xe9   :  { %v666_v6 = vsel %vm665_vm6, %v1117_v43, %v662_v63  ;;  %v674_v7 = vmul.f32 %v1121_v0, %v637_v36  ;;  %v546_v12 = vadd.f32 %v1420_v14, %v517_v5  ;;  %vm679_vm8 = vweird.f32 %v1121_v0  ;;  %v577_v14 = vpop.f32.mrf.mxu3 }
  0xea   :  { %v671_v9 = vsel %vm668_vm7, %v670_v1, %v666_v6  ;;  %1122 = vrcp.f32 %v638_v2  ;;  %vm680_vm10 = vmor %vm678_vm9, %vm679_vm8  ;;  %v697_v40 = vand.u32 2147483647, %v638_v2  ;;  %v699_v41 = vand.u32 2147483648, %v638_v2 }
  0xeb   :  { %v764_v39 = vmul.f32 %v671_v9, %v1417_v4  ;;  %v675_v10 = vsub.f32 1.0, %v674_v7  ;;  %1124 = vpow2.f32 %v1027_v8  ;;  %v575_v19 = vadd.f32 %v574_v60, %v546_v12 }
  0xec   :  { %vm693_vm13 = vweird.f32 %v638_v2  ;;  %v700_v46 = vor.u32 1.1754944e-38, %v699_v41  ;;  %vm698_vm15 = vcmp.eq.f32.partialorder %v697_v40, 8.507059e+37 }
  0xed   :  { %772 = vst [vmem:[%s1487_s3 + $0x8] sm:$0xff] %v764_v39  ;;  %v676_v15 = vmul.f32 %v1121_v0, %v675_v10  ;;  %v1448_v24 = vadd.f32 %v603_v18, %v575_v19 }
  0xee   :  { %v519_v20 = vpop.f32.mrf.mxu1 }
  0xef   :  { %v677_v21 = vadd.f32 %v1121_v0, %v676_v15  ;;  %v520_v4 = vadd.f32 %v519_v20, %v491_v13  ;;  %v1028_v30 = vmul.f32 -1.442695, %v1448_v24  ;;  %v608_v57 = vpop.f32.mrf.mxu2 }
  0xf0   :  { %v1123_v22 = vpop.eup %1122 }
  0xf1   :  { %v1125_v42 = vpop.eup %1124  ;;  %v681_v25 = vsel %vm680_vm10, %v1121_v0, %v677_v21  ;;  %v689_v26 = vmul.f32 %v1123_v22, %v638_v2  ;;  %v549_v27 = vadd.f32 %v1429_v34, %v520_v4  ;;  %vm694_vm12 = vweird.f32 %v1123_v22  ;;  %v579_v51 = vpop.f32.mrf.mxu3 }
  0xf2   :  { %v686_v28 = vsel %vm683_vm11, %v685_v23, %v681_v25  ;;  %v639_v29 = vadd.f32 1.0, %v1125_v42  ;;  %vm695_vm14 = vmor %vm693_vm13, %vm694_vm12 }
  0xf3   :  { %v765_v32 = vmul.f32 %v686_v28, %v1423_v16  ;;  %v690_v35 = vsub.f32 1.0, %v689_v26  ;;  %v578_v37 = vadd.f32 %v577_v14, %v549_v27 }
  0xf4   :  { %1126 = vrcp.f32 %v639_v29  ;;  %v714_v61 = vand.u32 2147483648, %v639_v29  ;;  %v712_v0 = vand.u32 2147483647, %v639_v29  ;;  %vm708_vm1 = vweird.f32 %v639_v29 }
  0xf5   :  { %773 = vst [vmem:[%s1487_s3 + $0x10] sm:$0xff] %v765_v32  ;;  %v691_v34 = vmul.f32 %v1123_v22, %v690_v35  ;;  %1128 = vpow2.f32 %v1028_v30  ;;  %v1458_v43 = vadd.f32 %v606_v31, %v578_v37 }
  0xf6   :  { %v521_v44 = vpop.f32.mrf.mxu1  ;;  %vm713_vm3 = vcmp.eq.f32.partialorder %v712_v0, 8.507059e+37 }
  0xf7   :  { %v692_v36 = vadd.f32 %v1123_v22, %v691_v34  ;;  %v1029_v16 = vmul.f32 -1.442695, %v1458_v43  ;;  %v522_v45 = vadd.f32 %v521_v44, %v493_v38 }
  0xf9   :  { %v696_v48 = vsel %vm695_vm14, %v1123_v22, %v692_v36  ;;  %1130 = vpow2.f32 %v1029_v16  ;;  %v551_v47 = vadd.f32 %v550_v3, %v522_v45  ;;  %v715_v3 = vor.u32 1.1754944e-38, %v714_v61 }
  0xfa   :  { %v1127_v49 = vpop.eup %1126  ;;  %v701_v50 = vsel %vm698_vm15, %v700_v46, %v696_v48 }
  0xfb   :  { %v1129_v52 = vpop.eup %1128  ;;  %v766_v53 = vmul.f32 %v701_v50, %v1427_v33  ;;  %v704_v54 = vmul.f32 %v1127_v49, %v639_v29  ;;  %v580_v55 = vadd.f32 %v579_v51, %v551_v47  ;;  %vm709_vm0 = vweird.f32 %v1127_v49 }
  0xfc   :  { %v640_v56 = vadd.f32 1.0, %v1129_v52  ;;  %vm710_vm2 = vmor %vm708_vm1, %vm709_vm0 }
  0xfd   :  { %774 = vst [vmem:[%s1487_s3 + $0x18] sm:$0xff] %v766_v53  ;;  %v705_v59 = vsub.f32 1.0, %v704_v54  ;;  %v1465_v60 = vadd.f32 %v608_v57, %v580_v55 }
  0xfe   :  { %1132 = vrcp.f32 %v640_v56  ;;  %v727_v12 = vand.u32 2147483647, %v640_v56  ;;  %v729_v13 = vand.u32 2147483648, %v640_v56  ;;  %vm723_vm5 = vweird.f32 %v640_v56 }
  0xff   :  { %v1131_v62 = vpop.eup %1130  ;;  %v706_v63 = vmul.f32 %v1127_v49, %v705_v59  ;;  %v1030_v1 = vmul.f32 -1.442695, %v1465_v60 }
 0x100   :  { %v641_v33 = vadd.f32 1.0, %v1131_v62  ;;  %vm728_vm7 = vcmp.eq.f32.partialorder %v727_v12, 8.507059e+37 }
 0x101   :  { %v707_v2 = vadd.f32 %v1127_v49, %v706_v63  ;;  %1134 = vpow2.f32 %v1030_v1 }
 0x102   :  { %1136 = vrcp.f32 %v641_v33  ;;  %v744_v21 = vand.u32 2147483648, %v641_v33  ;;  %v742_v23 = vand.u32 2147483647, %v641_v33  ;;  %vm738_vm9 = vweird.f32 %v641_v33 }
 0x103   :  { %v711_v5 = vsel %vm710_vm2, %v1127_v49, %v707_v2 }
 0x104   :  { %v1133_v6 = vpop.eup %1132  ;;  %v716_v7 = vsel %vm713_vm3, %v715_v3, %v711_v5  ;;  %v745_v27 = vor.u32 1.1754944e-38, %v744_v21  ;;  %vm743_vm11 = vcmp.eq.f32.partialorder %v742_v23, 8.507059e+37 }
 0x105   :  { %v767_v8 = vmul.f32 %v716_v7, %v1438_v58  ;;  %v719_v9 = vmul.f32 %v1133_v6, %v640_v56  ;;  %vm724_vm4 = vweird.f32 %v1133_v6  ;;  %v730_v58 = vor.u32 1.1754944e-38, %v729_v13 }
 0x106   :  { %vm725_vm6 = vmor %vm723_vm5, %vm724_vm4 }
 0x107   :  { %v1135_v39 = vpop.eup %1134  ;;  %775 = vst [vmem:[%s1487_s3 + $0x20] sm:$0xff] %v767_v8  ;;  %v720_v10 = vsub.f32 1.0, %v719_v9 }
 0x108   :  { %v1137_v11 = vpop.eup %1136  ;;  %v642_v15 = vadd.f32 1.0, %v1135_v39 }
 0x109   :  { %v721_v17 = vmul.f32 %v1133_v6, %v720_v10  ;;  %v734_v18 = vmul.f32 %v1137_v11, %v641_v33  ;;  %vm739_vm8 = vweird.f32 %v1137_v11 }
 0x10a   :  { %1138 = vrcp.f32 %v642_v15  ;;  %vm740_vm10 = vmor %vm738_vm9, %vm739_vm8  ;;  %v759_v35 = vand.u32 2147483648, %v642_v15  ;;  %v757_v37 = vand.u32 2147483647, %v642_v15  ;;  %vm753_vm13 = vweird.f32 %v642_v15 }
 0x10b   :  { %v722_v19 = vadd.f32 %v1133_v6, %v721_v17  ;;  %v735_v20 = vsub.f32 1.0, %v734_v18 }
 0x10c   :  { %v760_v40 = vor.u32 1.1754944e-38, %v759_v35  ;;  %vm758_vm15 = vcmp.eq.f32.partialorder %v757_v37, 8.507059e+37 }
 0x10d   :  { %v726_v4 = vsel %vm725_vm6, %v1133_v6, %v722_v19  ;;  %v736_v22 = vmul.f32 %v1137_v11, %v735_v20 }
 0x10e   :  { %v731_v14 = vsel %vm728_vm7, %v730_v58, %v726_v4 }
 0x10f   :  { %v768_v42 = vmul.f32 %v731_v14, %v1448_v24  ;;  %v737_v25 = vadd.f32 %v1137_v11, %v736_v22 }
 0x110   :  { %v1139_v26 = vpop.eup %1138 }
 0x111   :  { %776 = vst [vmem:[%s1487_s3 + $0x28] sm:$0xff] %v768_v42  ;;  %v741_v28 = vsel %vm740_vm10, %v1137_v11, %v737_v25  ;;  %v749_v29 = vmul.f32 %v1139_v26, %v642_v15  ;;  %vm754_vm12 = vweird.f32 %v1139_v26 }
 0x112   :  { %v746_v30 = vsel %vm743_vm11, %v745_v27, %v741_v28  ;;  %vm755_vm14 = vmor %vm753_vm13, %vm754_vm12 }
 0x113   :  { %v769_v31 = vmul.f32 %v746_v30, %v1458_v43  ;;  %v750_v32 = vsub.f32 1.0, %v749_v29 }
 0x115   :  { %777 = vst [vmem:[%s1487_s3 + $0x30] sm:$0xff] %v769_v31  ;;  %v751_v24 = vmul.f32 %v1139_v26, %v750_v32 }
 0x117   :  { %v752_v38 = vadd.f32 %v1139_v26, %v751_v24 }
 0x119   :  { %v756_v41 = vsel %vm755_vm14, %v1139_v26, %v752_v38 }
 0x11a   :  { %v761_v34 = vsel %vm758_vm15, %v760_v40, %v756_v41 }
 0x11b   :  { %v770_v44 = vmul.f32 %v761_v34, %v1465_v60 }
 0x11d   :  { %778 = vst [vmem:[%s1487_s3 + $0x38] sm:$0xff] %v770_v44 }

// kernel: forward.118
= control target key start
LH: loop header
LB: loop body
LE: loop exit
PB: predicated region body
PF: predicated region fallthrough
CT: control target
= control target key end

     0   :  { %s583_s12 = smov 0   ;;  %s585_s13 = smov 0   ;;  %s677_s0 = inlined_call_operand.vmem [shape: f32[2,32,128], index: 0, kind: input, shape index: {}]   ;;  %s678_s1 = inlined_call_operand.vmem [shape: f32[2,1,128], index: 1, kind: input, shape index: {}]   ;;  %s679_s2 = inlined_call_operand.vmem [shape: f32[2,32,128], index: 2, kind: input, shape index: {}]   ;;  %s680_s3 = inlined_call_operand.vmem [shape: f32[2,32,128], index: 3, kind: output, shape index: {}]  }
   0x1   :  { %s587_s14 = smov 0  }
   0x2 LB: > { %s25_s15 = sadd.s32 1, %s557_s13  ;;  %p482_p0 = scmp.ge.s32.totalorder %s561_s14, 1  ;;  %s561_s14 = sphi %s587_s14, %s13_s14   ;;  %s557_s13 = sphi %s585_s13, %s692_s13   ;;  %s553_s12 = sphi %s583_s12, %s691_s12  }
   0x3   : > { %p27_p1 = scmp.ge.s32.totalorder %s25_s15, 2  ;;  %p183_p2 = scmp.lt.s32.totalorder %s561_s14, 3 }
   0x5   : > { %s694_s15 = smov (%p27_p1, %s25_s15), 0  ;;  %p184_p3 = pnand %p482_p0, %p183_p2 }
   0x6   : > { %p228_p4 = scmp.lt.s32.totalorder (!%p184_p3), %s553_s12, 1 }
   0x7   : > { %187 = sbr.rel (%p184_p3) target bundleno = 54 (0x36), region = 32 }
   0xc   : > { %s696_s12 = smov (!%p228_p4, %s553_s12), 1 }
   0xd   : > { %s601_s16 = sshll.u32 %s696_s12, 5  ;;  %s239_s19 = scalar_lea.vmem %s678_s1, %s696_s12 }
   0xe   : > { %s235_s22 = scalar_lea.vmem %s677_s0, %s601_s16  ;;  %s248_s25 = scalar_lea.vmem %s679_s2, %s601_s16  ;;  %v522_v0 = vld [vmem:[%s239_s19] ss:$0 sm:$0xff] }
   0xf   : > { %v260_v1 = vld [vmem:[%s235_s22] sm:$0xff]  ;;  %v261_v3 = vld [vmem:[%s235_s22 + $0x8] sm:$0xff]  ;;  %v262_v7 = vld [vmem:[%s235_s22 + $0x10] sm:$0xff]  ;;  %s258_s28 = scalar_lea.vmem %s680_s3, %s601_s16 }
  0x10   : > { %v272_v2 = vld [vmem:[%s248_s25] sm:$0xff]  ;;  %v268_v4 = vmul.f32 %v522_v0, %v260_v1  ;;  %v269_v5 = vmul.f32 %v522_v0, %v261_v3  ;;  %v273_v6 = vld [vmem:[%s248_s25 + $0x8] sm:$0xff]  ;;  %v274_v8 = vld [vmem:[%s248_s25 + $0x10] sm:$0xff]  ;;  %v270_v9 = vmul.f32 %v522_v0, %v262_v7 }
  0x11   : > { %v263_v10 = vld [vmem:[%s235_s22 + $0x18] sm:$0xff] }
  0x12   : > { %v275_v11 = vld [vmem:[%s248_s25 + $0x18] sm:$0xff]  ;;  %v614_v12 = vadd.f32 %v272_v2, %v268_v4  ;;  %v616_v13 = vadd.f32 %v273_v6, %v269_v5  ;;  %v271_v14 = vmul.f32 %v522_v0, %v263_v10  ;;  %v618_v15 = vadd.f32 %v274_v8, %v270_v9 }
  0x14   : > { %v489_v16 = vmul.f32 -1.442695, %v614_v12  ;;  %v490_v17 = vmul.f32 -1.442695, %v616_v13  ;;  %v622_v18 = vadd.f32 %v275_v11, %v271_v14  ;;  %v491_v19 = vmul.f32 -1.442695, %v618_v15 }
  0x16   : > { %523 = vpow2.f32 %v489_v16  ;;  %v492_v20 = vmul.f32 -1.442695, %v622_v18 }
  0x17   : > { %525 = vpow2.f32 %v490_v17 }
  0x18   : > { %527 = vpow2.f32 %v491_v19 }
  0x19   : > { %529 = vpow2.f32 %v492_v20 }
  0x1c   : > { %v524_v21 = vpop.eup %523 }
  0x1d   : > { %v526_v22 = vpop.eup %525  ;;  %v292_v23 = vadd.f32 1.0, %v524_v21 }
  0x1e   : > { %v528_v24 = vpop.eup %527  ;;  %v293_v25 = vadd.f32 1.0, %v526_v22 }
  0x1f   : > { %v530_v26 = vpop.eup %529  ;;  %531 = vrcp.f32 %v292_v23  ;;  %v294_v27 = vadd.f32 1.0, %v528_v24  ;;  %v305_v29 = vand.u32 2147483647, %v292_v23  ;;  %v307_v30 = vand.u32 2147483648, %v292_v23 }
  0x20   : > { %533 = vrcp.f32 %v293_v25  ;;  %v295_v28 = vadd.f32 1.0, %v530_v26  ;;  %v320_v32 = vand.u32 2147483647, %v293_v25  ;;  %v322_v33 = vand.u32 2147483648, %v293_v25 }
  0x21   : > { %535 = vrcp.f32 %v294_v27  ;;  %vm301_vm0 = vweird.f32 %v292_v23  ;;  %vm316_vm1 = vweird.f32 %v293_v25  ;;  %vm626_vm3 = vcmp.eq.f32.partialorder %v305_v29, 8.507059e+37 }
  0x22   : > { %537 = vrcp.f32 %v295_v28  ;;  %v308_v39 = vor.u32 1.1754944e-38, %v307_v30  ;;  %vm630_vm5 = vcmp.eq.f32.partialorder %v320_v32, 8.507059e+37  ;;  %v323_v43 = vor.u32 1.1754944e-38, %v322_v33 }
  0x23   : > { %vm331_vm6 = vweird.f32 %v294_v27  ;;  %v335_v47 = vand.u32 2147483647, %v294_v27  ;;  %v337_v50 = vand.u32 2147483648, %v294_v27  ;;  %vm346_vm8 = vweird.f32 %v295_v28 }
  0x24   : > { %v352_v55 = vand.u32 2147483648, %v295_v28  ;;  %v350_v58 = vand.u32 2147483647, %v295_v28 }
  0x25   : > { %v532_v31 = vpop.eup %531  ;;  %vm646_vm12 = vcmp.eq.f32.partialorder %v335_v47, 8.507059e+37  ;;  %v338_v0 = vor.u32 1.1754944e-38, %v337_v50 }
  0x26   : > { %v534_v34 = vpop.eup %533  ;;  %v297_v35 = vmul.f32 %v532_v31, %v292_v23  ;;  %vm302_vm2 = vweird.f32 %v532_v31  ;;  %v353_v5 = vor.u32 1.1754944e-38, %v352_v55  ;;  %vm351_vm15 = vcmp.eq.f32.partialorder %v350_v58, 8.507059e+37 }
  0x27   : > { %v312_v36 = vmul.f32 %v534_v34, %v293_v25  ;;  %v536_v40 = vpop.eup %535  ;;  %vm317_vm4 = vweird.f32 %v534_v34  ;;  %vm635_vm7 = vmor %vm301_vm0, %vm302_vm2 }
  0x28   : > { %v298_v37 = vsub.f32 1.0, %v297_v35  ;;  %v538_v44 = vpop.eup %537  ;;  %v327_v46 = vmul.f32 %v536_v40, %v294_v27  ;;  %vm640_vm9 = vmor %vm316_vm1, %vm317_vm4  ;;  %vm332_vm10 = vweird.f32 %v536_v40 }
  0x29   : > { %v313_v41 = vsub.f32 1.0, %v312_v36  ;;  %v342_v51 = vmul.f32 %v538_v44, %v295_v28  ;;  %vm347_vm11 = vweird.f32 %v538_v44  ;;  %vm333_vm13 = vmor %vm331_vm6, %vm332_vm10 }
  0x2a   : > { %v299_v45 = vmul.f32 %v532_v31, %v298_v37  ;;  %v328_v54 = vsub.f32 1.0, %v327_v46  ;;  %vm348_vm14 = vmor %vm346_vm8, %vm347_vm11 }
  0x2b   : > { %v314_v49 = vmul.f32 %v534_v34, %v313_v41  ;;  %v343_v57 = vsub.f32 1.0, %v342_v51 }
  0x2c   : > { %v300_v52 = vadd.f32 %v532_v31, %v299_v45  ;;  %v329_v60 = vmul.f32 %v536_v40, %v328_v54 }
  0x2d   : > { %v315_v56 = vadd.f32 %v534_v34, %v314_v49  ;;  %v344_v1 = vmul.f32 %v538_v44, %v343_v57 }
  0x2e   : > { %v304_v59 = vsel %vm635_vm7, %v532_v31, %v300_v52  ;;  %v330_v4 = vadd.f32 %v536_v40, %v329_v60 }
  0x2f   : > { %v309_v62 = vsel %vm626_vm3, %v308_v39, %v304_v59  ;;  %v319_v63 = vsel %vm640_vm9, %v534_v34, %v315_v56  ;;  %v345_v7 = vadd.f32 %v538_v44, %v344_v1 }
  0x30   : > { %v356_v2 = vmul.f32 %v309_v62, %v614_v12  ;;  %v324_v3 = vsel %vm630_vm5, %v323_v43, %v319_v63  ;;  %v334_v8 = vsel %vm333_vm13, %v536_v40, %v330_v4 }
  0x31   : > { %v357_v6 = vmul.f32 %v324_v3, %v616_v13  ;;  %v339_v9 = vsel %vm646_vm12, %v338_v0, %v334_v8  ;;  %v349_v10 = vsel %vm348_vm14, %v538_v44, %v345_v7 }
  0x32   : > { %360 = vst [vmem:[%s258_s28] sm:$0xff] %v356_v2  ;;  %v358_v11 = vmul.f32 %v339_v9, %v618_v15  ;;  %v354_v12 = vsel %vm351_vm15, %v353_v5, %v349_v10 }
  0x33   : > { %361 = vst [vmem:[%s258_s28 + $0x8] sm:$0xff] %v357_v6  ;;  %v359_v14 = vmul.f32 %v354_v12, %v622_v18 }
  0x34   : > { %362 = vst [vmem:[%s258_s28 + $0x10] sm:$0xff] %v358_v11 }
  0x35   : > { %363 = vst [vmem:[%s258_s28 + $0x18] sm:$0xff] %v359_v14 }
  0x36 PF: > { %s13_s14 = sadd.s32 1, %s561_s14   ;;  %s691_s12 = smov %s557_s13 }
  0x37   : > { %p10_p5 = scmp.ge.s32.totalorder %s13_s14, 4   ;;  %s692_s13 = smov %s694_s15 }
  0x39   :  { %12 = sbr.rel (!%p10_p5) target bundleno = 2 (0x2), region = 68 }

// kernel: forward.116
= control target key start
LH: loop header
LB: loop body
LE: loop exit
PB: predicated region body
PF: predicated region fallthrough
CT: control target
= control target key end

     0   :  { %s1243_s1 = inlined_call_operand.vmem [shape: bf16[640,128], index: 1, kind: input, shape index: {}]   ;;  %s1244_s2 = inlined_call_operand.vmem [shape: f32[1,128], index: 2, kind: input, shape index: {}]   ;;  %s1245_s0 = inlined_call_operand.vmem [shape: bf16[64,640], index: 0, kind: input, shape index: {}]   ;;  %s1246_s3 = inlined_call_operand.vmem [shape: f32[64,128], index: 3, kind: output, shape index: {}]  }
   0x1   :  { %v890_v0 = vld [vmem:[%s1243_s1 + $0x38] sm:$0xff]  ;;  %v889_v2 = vld [vmem:[%s1243_s1 + $0x30] sm:$0xff]  ;;  %v888_v6 = vld [vmem:[%s1243_s1 + $0x28] sm:$0xff] }
   0x2   :  { %v906_v1 = vld [vmem:[%s1243_s1 + $0xb8] sm:$0xff]  ;;  %923 = vmatpush.bf16.msra.mxu1 %v890_v0  ;;  %466 = vmatpush.bf16.msra.mxu0 %v890_v0  ;;  %v905_v3 = vld [vmem:[%s1243_s1 + $0xb0] sm:$0xff]  ;;  %v904_v7 = vld [vmem:[%s1243_s1 + $0xa8] sm:$0xff] }
   0x3   :  { %524 = vmatpush.bf16.msra.mxu2 %v906_v1  ;;  %v914_v4 = vld [vmem:[%s1243_s1 + $0xf8] sm:$0xff]  ;;  %v913_v5 = vld [vmem:[%s1243_s1 + $0xf0] sm:$0xff]  ;;  %v912_v8 = vld [vmem:[%s1243_s1 + $0xe8] sm:$0xff] }
   0x4   :  { %553 = vmatpush.bf16.msra.mxu3 %v914_v4  ;;  %v887_v9 = vld [vmem:[%s1243_s1 + $0x20] sm:$0xff]  ;;  %v886_v12 = vld [vmem:[%s1243_s1 + $0x18] sm:$0xff]  ;;  %v885_v15 = vld [vmem:[%s1243_s1 + $0x10] sm:$0xff] }
   0x5   :  { %v903_v10 = vld [vmem:[%s1243_s1 + $0xa0] sm:$0xff]  ;;  %v902_v13 = vld [vmem:[%s1243_s1 + $0x98] sm:$0xff]  ;;  %v901_v16 = vld [vmem:[%s1243_s1 + $0x90] sm:$0xff] }
   0x6   :  { %924 = vmatpush.bf16.msra.mxu1 %v889_v2  ;;  %467 = vmatpush.bf16.msra.mxu0 %v889_v2  ;;  %v911_v11 = vld [vmem:[%s1243_s1 + $0xe0] sm:$0xff]  ;;  %v910_v14 = vld [vmem:[%s1243_s1 + $0xd8] sm:$0xff]  ;;  %v909_v17 = vld [vmem:[%s1243_s1 + $0xd0] sm:$0xff] }
   0x7   :  { %525 = vmatpush.bf16.msra.mxu2 %v905_v3  ;;  %v884_v18 = vld [vmem:[%s1243_s1 + $0x8] sm:$0xff]  ;;  %v883_v20 = vld [vmem:[%s1243_s1] sm:$0xff]  ;;  %v665_v21 = vld [vmem:[%s1245_s0 + $0x50] sm:$0xf] }
   0x8   :  { %554 = vmatpush.bf16.msra.mxu3 %v913_v5  ;;  %v900_v19 = vld [vmem:[%s1243_s1 + $0x88] sm:$0xff]  ;;  %v875_v22 = vld [vmem:[%s1245_s0 + $0x60] sm:$0xf0]  ;;  %v898_v24 = vld [vmem:[%s1243_s1 + $0x78] sm:$0xff] }
   0x9   :  { %v908_v23 = vld [vmem:[%s1243_s1 + $0xc8] sm:$0xff]  ;;  %v625_v25 = vld [vmem:[%s1245_s0] sm:$0xf]  ;;  %v865_v26 = vld [vmem:[%s1245_s0 + $0x10] sm:$0xf0]  ;;  %v666_v31 = vor.u32 %v875_v22, %v665_v21 }
   0xa   :  { %925 = vmatpush.bf16.msra.mxu1 %v888_v6  ;;  %468 = vmatpush.bf16.msra.mxu0 %v888_v6  ;;  %v899_v27 = vld [vmem:[%s1243_s1 + $0x80] sm:$0xff]  ;;  %v633_v28 = vld [vmem:[%s1245_s0 + $0x8] sm:$0xf]  ;;  %v866_v29 = vld [vmem:[%s1245_s0 + $0x18] sm:$0xf0]  ;;  %v626_v32 = vor.u32 %v865_v26, %v625_v25 }
   0xb   :  { %526 = vmatpush.bf16.msra.mxu2 %v904_v7  ;;  %v922_v30 = vld [vmem:[%s1243_s1 + $0x138] sm:$0xff]  ;;  %v634_v33 = vor.u32 %v866_v29, %v633_v28  ;;  %v907_v34 = vld [vmem:[%s1243_s1 + $0xc0] sm:$0xff]  ;;  %v864_v35 = vld [vmem:[%s1245_s0 + $0xc] sm:$0xf] }
   0xc   :  { %555 = vmatpush.bf16.msra.mxu3 %v912_v8  ;;  %v635_v36 = vld [vmem:[%s1245_s0 + $0x1c] sm:$0xf0]  ;;  %v897_v37 = vld [vmem:[%s1243_s1 + $0x70] sm:$0xff]  ;;  %v896_v40 = vld [vmem:[%s1243_s1 + $0x68] sm:$0xff] }
   0xd   :  { %v921_v38 = vld [vmem:[%s1243_s1 + $0x130] sm:$0xff]  ;;  %v638_v39 = vor.u32 %v864_v35, %v635_v36  ;;  %v920_v41 = vld [vmem:[%s1243_s1 + $0x128] sm:$0xff]  ;;  %v895_v42 = vld [vmem:[%s1243_s1 + $0x60] sm:$0xff] }
   0xe   :  { %926 = vmatpush.bf16.msra.mxu1 %v887_v9  ;;  %469 = vmatpush.bf16.msra.mxu0 %v887_v9  ;;  %v919_v43 = vld [vmem:[%s1243_s1 + $0x120] sm:$0xff]  ;;  %v685_v44 = vld [vmem:[%s1245_s0 + $0x78] sm:$0xf]  ;;  %v880_v45 = vld [vmem:[%s1245_s0 + $0x88] sm:$0xf0] }
   0xf   :  { %527 = vmatpush.bf16.msra.mxu2 %v903_v10  ;;  %v645_v46 = vld [vmem:[%s1245_s0 + $0x28] sm:$0xf]  ;;  %v870_v47 = vld [vmem:[%s1245_s0 + $0x38] sm:$0xf0]  ;;  %v653_v49 = vld [vmem:[%s1245_s0 + $0x30] sm:$0xf]  ;;  %v686_v52 = vor.u32 %v880_v45, %v685_v44 }
  0x10   :  { %556 = vmatpush.bf16.msra.mxu3 %v911_v11  ;;  %v894_v48 = vld [vmem:[%s1243_s1 + $0x58] sm:$0xff]  ;;  %v871_v50 = vld [vmem:[%s1245_s0 + $0x40] sm:$0xf0]  ;;  %v646_v53 = vor.u32 %v870_v47, %v645_v46  ;;  %v869_v55 = vld [vmem:[%s1245_s0 + $0x34] sm:$0xf] }
  0x11   :  { %v918_v51 = vld [vmem:[%s1243_s1 + $0x118] sm:$0xff]  ;;  %v654_v54 = vor.u32 %v871_v50, %v653_v49  ;;  %v655_v56 = vld [vmem:[%s1245_s0 + $0x44] sm:$0xf0]  ;;  %v893_v57 = vld [vmem:[%s1243_s1 + $0x50] sm:$0xff] }
  0x12   :  { %927 = vmatpush.bf16.msra.mxu1 %v886_v12  ;;  %470 = vmatpush.bf16.msra.mxu0 %v886_v12  ;;  %v917_v58 = vld [vmem:[%s1243_s1 + $0x110] sm:$0xff]  ;;  %v658_v59 = vor.u32 %v869_v55, %v655_v56  ;;  %v892_v60 = vld [vmem:[%s1243_s1 + $0x48] sm:$0xff]  ;;  %v891_v62 = vld [vmem:[%s1243_s1 + $0x40] sm:$0xff] }
  0x13   :  { %528 = vmatpush.bf16.msra.mxu2 %v902_v13  ;;  %v916_v61 = vld [vmem:[%s1243_s1 + $0x108] sm:$0xff]  ;;  %v915_v63 = vld [vmem:[%s1243_s1 + $0x100] sm:$0xff]  ;;  %v627_v1 = vld [vmem:[%s1245_s0 + $0x14] sm:$0xf0] }
  0x14   :  { %557 = vmatpush.bf16.msra.mxu3 %v910_v14  ;;  %v863_v0 = vld [vmem:[%s1245_s0 + $0x4] sm:$0xf]  ;;  %v641_v2 = vld [vmem:[%s1245_s0 + $0x10] sm:$0xf]  ;;  %v673_v4 = vld [vmem:[%s1245_s0 + $0x58] sm:$0xf] }
  0x15   :  { %v867_v3 = vld [vmem:[%s1245_s0 + $0x20] sm:$0xf0]  ;;  %v876_v5 = vld [vmem:[%s1245_s0 + $0x68] sm:$0xf0]  ;;  %v630_v6 = vor.u32 %v863_v0, %v627_v1  ;;  %v874_v9 = vld [vmem:[%s1245_s0 + $0x5c] sm:$0xf] }
  0x16   :  { %928 = vmatpush.bf16.msra.mxu1 %v885_v15  ;;  %471 = vmatpush.bf16.msra.mxu0 %v885_v15  ;;  %v642_v7 = vor.u32 %v867_v3, %v641_v2  ;;  %v674_v8 = vor.u32 %v876_v5, %v673_v4  ;;  %v675_v10 = vld [vmem:[%s1245_s0 + $0x6c] sm:$0xf0]  ;;  %v868_v12 = vld [vmem:[%s1245_s0 + $0x2c] sm:$0xf]  ;;  %v647_v13 = vld [vmem:[%s1245_s0 + $0x3c] sm:$0xf0] }
  0x17   :  { %529 = vmatpush.bf16.msra.mxu2 %v901_v16  ;;  %v678_v11 = vor.u32 %v874_v9, %v675_v10  ;;  %v661_v14 = vld [vmem:[%s1245_s0 + $0x38] sm:$0xf]  ;;  %v872_v15 = vld [vmem:[%s1245_s0 + $0x48] sm:$0xf0]  ;;  %v693_v16 = vld [vmem:[%s1245_s0 + $0x80] sm:$0xf] }
  0x18   :  { %558 = vmatpush.bf16.msra.mxu3 %v909_v17  ;;  %v881_v17 = vld [vmem:[%s1245_s0 + $0x90] sm:$0xf0]  ;;  %v879_v21 = vld [vmem:[%s1245_s0 + $0x84] sm:$0xf]  ;;  %v695_v22 = vld [vmem:[%s1245_s0 + $0x94] sm:$0xf0] }
  0x19   :  { %v667_v25 = vld [vmem:[%s1245_s0 + $0x64] sm:$0xf0]  ;;  %v681_v26 = vld [vmem:[%s1245_s0 + $0x60] sm:$0xf]  ;;  %v882_v29 = vld [vmem:[%s1245_s0 + $0x98] sm:$0xf0] }
  0x1a   :  { %929 = vmatpush.bf16.msra.mxu1 %v884_v18  ;;  %472 = vmatpush.bf16.msra.mxu0 %v884_v18  ;;  %v650_v18 = vor.u32 %v868_v12, %v647_v13  ;;  %v701_v28 = vld [vmem:[%s1245_s0 + $0x88] sm:$0xf] }
  0x1b   :  { %530 = vmatpush.bf16.msra.mxu2 %v900_v19  ;;  %v662_v19 = vor.u32 %v872_v15, %v661_v14 }
  0x1c   :  { %559 = vmatpush.bf16.msra.mxu3 %v908_v23  ;;  %v698_v23 = vor.u32 %v879_v21, %v695_v22 }
  0x1e   :  { %930 = vmatpush.bf16.msra.mxu1 %v883_v20  ;;  %473 = vmatpush.bf16.msra.mxu0 %v883_v20  ;;  %v694_v20 = vor.u32 %v881_v17, %v693_v16 }
  0x1f   :  { %531 = vmatpush.bf16.msra.mxu2 %v899_v27  ;;  %v877_v27 = vld [vmem:[%s1245_s0 + $0x70] sm:$0xf0] }
  0x20   :  { %560 = vmatpush.bf16.msra.mxu3 %v907_v34  ;;  %v687_v34 = vld [vmem:[%s1245_s0 + $0x8c] sm:$0xf0] }
  0x21   :  { %484 = vmatmul.bf16.vlgmr.msra.gmra.mxu1 %v666_v31  ;;  %474 = vmatmul.bf16.vlgmr.msra.gmra.mxu0 %v626_v32  ;;  %v682_v31 = vor.u32 %v877_v27, %v681_v26  ;;  %v702_v32 = vor.u32 %v882_v29, %v701_v28 }
  0x22   :  { %495 = vmatpush.bf16.msrb.mxu1 %v898_v24  ;;  %582 = vmatpush.bf16.msrb.mxu0 %v922_v30  ;;  %v873_v24 = vld [vmem:[%s1245_s0 + $0x54] sm:$0xf] }
  0x23   :  { %931 = vmatpush.bf16.msrb.mxu2 %v922_v30  ;;  %561 = vmatmul.bf16.vlgmr.msra.gmra.mxu3 %v638_v39  ;;  %v670_v30 = vor.u32 %v873_v24, %v667_v25 }
  0x24   :  { %532 = vmatmul.bf16.vlgmr.msra.gmra.mxu2 %v634_v33  ;;  %v878_v33 = vld [vmem:[%s1245_s0 + $0x7c] sm:$0xf] }
  0x25   :  { %v690_v35 = vor.u32 %v878_v33, %v687_v34 }
  0x26   :  { %496 = vmatpush.bf16.msrb.mxu1 %v897_v37  ;;  %583 = vmatpush.bf16.msrb.mxu0 %v921_v38 }
  0x27   :  { %932 = vmatpush.bf16.msrb.mxu2 %v921_v38 }
  0x2a   :  { %497 = vmatpush.bf16.msrb.mxu1 %v896_v40  ;;  %584 = vmatpush.bf16.msrb.mxu0 %v920_v41 }
  0x2b   :  { %933 = vmatpush.bf16.msrb.mxu2 %v920_v41 }
  0x2e   :  { %498 = vmatpush.bf16.msrb.mxu1 %v895_v42  ;;  %585 = vmatpush.bf16.msrb.mxu0 %v919_v43 }
  0x2f   :  { %934 = vmatpush.bf16.msrb.mxu2 %v919_v43 }
  0x31   :  { %489 = vmatmul.bf16.gmra.mxu1 %v686_v52  ;;  %479 = vmatmul.bf16.gmra.mxu0 %v646_v53 }
  0x32   :  { %499 = vmatpush.bf16.msrb.mxu1 %v894_v48  ;;  %586 = vmatpush.bf16.msrb.mxu0 %v918_v51  ;;  %v1207_v48 = vld [vmem:[%s1244_s2] ss:$0 sm:$0xff] }
  0x33   :  { %935 = vmatpush.bf16.msrb.mxu2 %v918_v51  ;;  %566 = vmatmul.bf16.gmra.mxu3 %v658_v59 }
  0x34   :  { %537 = vmatmul.bf16.gmra.mxu2 %v654_v54 }
  0x36   :  { %500 = vmatpush.bf16.msrb.mxu1 %v893_v57  ;;  %587 = vmatpush.bf16.msrb.mxu0 %v917_v58 }
  0x37   :  { %936 = vmatpush.bf16.msrb.mxu2 %v917_v58 }
  0x3a   :  { %501 = vmatpush.bf16.msrb.mxu1 %v892_v60  ;;  %588 = vmatpush.bf16.msrb.mxu0 %v916_v61 }
  0x3b   :  { %937 = vmatpush.bf16.msrb.mxu2 %v916_v61 }
  0x3e   :  { %502 = vmatpush.bf16.msrb.mxu1 %v891_v62  ;;  %589 = vmatpush.bf16.msrb.mxu0 %v915_v63 }
  0x3f   :  { %938 = vmatpush.bf16.msrb.mxu2 %v915_v63 }
  0x41   :  { %503 = vmatmul.bf16.vlgmr.msrb.gmra.mxu1 %v630_v6  ;;  %590 = vmatmul.bf16.vlgmr.msrb.gmra.mxu0 %v642_v7 }
  0x43   :  { %571 = vmatmul.bf16.gmra.mxu3 %v678_v11 }
  0x44   :  { %542 = vmatmul.bf16.gmra.mxu2 %v674_v8 }
  0x51   :  { %508 = vmatmul.bf16.gmra.mxu1 %v650_v18  ;;  %595 = vmatmul.bf16.gmra.mxu0 %v662_v19 }
  0x53   :  { %576 = vmatmul.bf16.gmra.mxu3 %v698_v23 }
  0x54   :  { %547 = vmatmul.bf16.gmra.mxu2 %v694_v20 }
  0x61   :  { %513 = vmatmul.bf16.gmra.mxu1 %v670_v30  ;;  %600 = vmatmul.bf16.gmra.mxu0 %v682_v31 }
  0x64   :  { %605 = vmatmul.bf16.vlgmr.msrb.gmra.mxu2 %v702_v32 }
  0x71   :  { %518 = vmatmul.bf16.gmra.mxu1 %v690_v35 }
  0x9e   :  { %v485_v36 = vpop.f32.mrf.mxu1  ;;  %v475_v37 = vpop.f32.mrf.mxu0 }
  0x9f   :  { %v476_v49 = vadd.f32 %v1207_v48, %v475_v37  ;;  %v486_v19 = vadd.f32 %v1207_v48, %v485_v36 }
  0xa6   :  { %v487_v39 = vpop.f32.mrf.mxu1  ;;  %v477_v40 = vpop.f32.mrf.mxu0 }
  0xa7   :  { %v533_v38 = vpop.f32.mrf.mxu2  ;;  %v562_v44 = vpop.f32.mrf.mxu3  ;;  %v478_v57 = vadd.f32 %v1207_v48, %v477_v40  ;;  %v488_v27 = vadd.f32 %v1207_v48, %v487_v39 }
  0xae   :  { %v1200_v42 = vpop.f32.mrf.mxu1  ;;  %v480_v43 = vpop.f32.mrf.mxu0 }
  0xaf   :  { %v535_v41 = vpop.f32.mrf.mxu2  ;;  %v564_v50 = vpop.f32.mrf.mxu3  ;;  %v481_v2 = vadd.f32 %v1207_v48, %v480_v43  ;;  %v491_v36 = vadd.f32 %v1207_v48, %v1200_v42 }
  0xb6   :  { %v1202_v46 = vpop.f32.mrf.mxu1  ;;  %v482_v47 = vpop.f32.mrf.mxu0 }
  0xb7   :  { %v538_v45 = vpop.f32.mrf.mxu2  ;;  %v567_v62 = vpop.f32.mrf.mxu3  ;;  %v483_v11 = vadd.f32 %v1207_v48, %v482_v47 }
  0xbe   :  { %v504_v51 = vpop.f32.mrf.mxu1  ;;  %v591_v52 = vpop.f32.mrf.mxu0 }
  0xbf   :  { %v505_v53 = vadd.f32 %v504_v51, %v476_v49  ;;  %v540_v54 = vpop.f32.mrf.mxu2  ;;  %v569_v8 = vpop.f32.mrf.mxu3 }
  0xc1   :  { %v534_v55 = vadd.f32 %v533_v38, %v505_v53 }
  0xc3   :  { %v563_v56 = vadd.f32 %v562_v44, %v534_v55 }
  0xc5   :  { %v592_v58 = vadd.f32 %v591_v52, %v563_v56 }
  0xc6   :  { %v506_v59 = vpop.f32.mrf.mxu1  ;;  %v593_v60 = vpop.f32.mrf.mxu0 }
  0xc7   :  { %611 = vst [vmem:[%s1246_s3] sm:$0xff] %v592_v58  ;;  %v507_v61 = vadd.f32 %v506_v59, %v478_v57  ;;  %v543_v0 = vpop.f32.mrf.mxu2  ;;  %v572_v18 = vpop.f32.mrf.mxu3 }
  0xc9   :  { %v536_v63 = vadd.f32 %v535_v41, %v507_v61 }
  0xcb   :  { %v565_v1 = vadd.f32 %v564_v50, %v536_v63 }
  0xcd   :  { %v594_v3 = vadd.f32 %v593_v60, %v565_v1 }
  0xce   :  { %v509_v4 = vpop.f32.mrf.mxu1  ;;  %v596_v5 = vpop.f32.mrf.mxu0 }
  0xcf   :  { %612 = vst [vmem:[%s1246_s3 + $0x8] sm:$0xff] %v594_v3  ;;  %v510_v6 = vadd.f32 %v509_v4, %v481_v2  ;;  %v545_v10 = vpop.f32.mrf.mxu2  ;;  %v574_v29 = vpop.f32.mrf.mxu3 }
  0xd1   :  { %v539_v7 = vadd.f32 %v538_v45, %v510_v6  ;;  %v493_v45 = vadd.f32 %v1207_v48, %v1202_v46 }
  0xd3   :  { %v568_v9 = vadd.f32 %v567_v62, %v539_v7 }
  0xd5   :  { %v597_v12 = vadd.f32 %v596_v5, %v568_v9 }
  0xd6   :  { %v511_v13 = vpop.f32.mrf.mxu1  ;;  %v598_v14 = vpop.f32.mrf.mxu0 }
  0xd7   :  { %613 = vst [vmem:[%s1246_s3 + $0x10] sm:$0xff] %v597_v12  ;;  %v512_v15 = vadd.f32 %v511_v13, %v483_v11  ;;  %v548_v21 = vpop.f32.mrf.mxu2  ;;  %v577_v40 = vpop.f32.mrf.mxu3 }
  0xd9   :  { %v541_v16 = vadd.f32 %v540_v54, %v512_v15 }
  0xdb   :  { %v570_v17 = vadd.f32 %v569_v8, %v541_v16 }
  0xdd   :  { %v599_v20 = vadd.f32 %v598_v14, %v570_v17 }
  0xde   :  { %v514_v22 = vpop.f32.mrf.mxu1  ;;  %v601_v24 = vpop.f32.mrf.mxu0 }
  0xdf   :  { %614 = vst [vmem:[%s1246_s3 + $0x18] sm:$0xff] %v599_v20  ;;  %v515_v23 = vadd.f32 %v514_v22, %v486_v19  ;;  %v550_v32 = vpop.f32.mrf.mxu2  ;;  %v579_v51 = vpop.f32.mrf.mxu3 }
  0xe1   :  { %v544_v25 = vadd.f32 %v543_v0, %v515_v23 }
  0xe3   :  { %v573_v26 = vadd.f32 %v572_v18, %v544_v25 }
  0xe5   :  { %v602_v28 = vadd.f32 %v601_v24, %v573_v26 }
  0xe6   :  { %v516_v30 = vpop.f32.mrf.mxu1  ;;  %v603_v34 = vpop.f32.mrf.mxu0 }
  0xe7   :  { %615 = vst [vmem:[%s1246_s3 + $0x20] sm:$0xff] %v602_v28  ;;  %v517_v31 = vadd.f32 %v516_v30, %v488_v27  ;;  %v606_v43 = vpop.f32.mrf.mxu2 }
  0xe9   :  { %v546_v33 = vadd.f32 %v545_v10, %v517_v31 }
  0xeb   :  { %v575_v35 = vadd.f32 %v574_v29, %v546_v33 }
  0xed   :  { %v604_v37 = vadd.f32 %v603_v34, %v575_v35 }
  0xee   :  { %v519_v38 = vpop.f32.mrf.mxu1 }
  0xef   :  { %616 = vst [vmem:[%s1246_s3 + $0x28] sm:$0xff] %v604_v37  ;;  %v520_v39 = vadd.f32 %v519_v38, %v491_v36  ;;  %v608_v53 = vpop.f32.mrf.mxu2 }
  0xf1   :  { %v549_v41 = vadd.f32 %v548_v21, %v520_v39 }
  0xf3   :  { %v578_v44 = vadd.f32 %v577_v40, %v549_v41 }
  0xf5   :  { %v607_v47 = vadd.f32 %v606_v43, %v578_v44 }
  0xf6   :  { %v521_v49 = vpop.f32.mrf.mxu1 }
  0xf7   :  { %617 = vst [vmem:[%s1246_s3 + $0x30] sm:$0xff] %v607_v47  ;;  %v522_v42 = vadd.f32 %v521_v49, %v493_v45 }
  0xf9   :  { %v551_v50 = vadd.f32 %v550_v32, %v522_v42 }
  0xfb   :  { %v580_v52 = vadd.f32 %v579_v51, %v551_v50 }
  0xfd   :  { %v609_v54 = vadd.f32 %v608_v53, %v580_v52 }
  0xff   :  { %618 = vst [vmem:[%s1246_s3 + $0x38] sm:$0xff] %v609_v54 }

// kernel: forward.126
= control target key start
LH: loop header
LB: loop body
LE: loop exit
PB: predicated region body
PF: predicated region fallthrough
CT: control target
= control target key end

     0   :  { %s979_s1 = inlined_call_operand.vmem [shape: bf16[640,128], index: 1, kind: input, shape index: {}]   ;;  %s980_s2 = inlined_call_operand.vmem [shape: f32[1,128], index: 2, kind: input, shape index: {}]   ;;  %s981_s0 = inlined_call_operand.vmem [shape: bf16[32,640], index: 0, kind: input, shape index: {}]   ;;  %s982_s3 = inlined_call_operand.vmem [shape: f32[32,128], index: 3, kind: output, shape index: {}]  }
   0x1   :  { %v722_v0 = vld [vmem:[%s979_s1 + $0x38] sm:$0xff]  ;;  %v721_v4 = vld [vmem:[%s979_s1 + $0x30] sm:$0xff]  ;;  %v720_v8 = vld [vmem:[%s979_s1 + $0x28] sm:$0xff] }
   0x2   :  { %v730_v1 = vld [vmem:[%s979_s1 + $0x78] sm:$0xff]  ;;  %402 = vmatpush.bf16.msra.mxu0 %v722_v0  ;;  %v729_v5 = vld [vmem:[%s979_s1 + $0x70] sm:$0xff]  ;;  %v728_v9 = vld [vmem:[%s979_s1 + $0x68] sm:$0xff] }
   0x3   :  { %v738_v2 = vld [vmem:[%s979_s1 + $0xb8] sm:$0xff]  ;;  %421 = vmatpush.bf16.msra.mxu1 %v730_v1  ;;  %v737_v6 = vld [vmem:[%s979_s1 + $0xb0] sm:$0xff]  ;;  %v736_v10 = vld [vmem:[%s979_s1 + $0xa8] sm:$0xff] }
   0x4   :  { %v746_v3 = vld [vmem:[%s979_s1 + $0xf8] sm:$0xff]  ;;  %440 = vmatpush.bf16.msra.mxu2 %v738_v2  ;;  %v745_v7 = vld [vmem:[%s979_s1 + $0xf0] sm:$0xff]  ;;  %v744_v11 = vld [vmem:[%s979_s1 + $0xe8] sm:$0xff] }
   0x5   :  { %459 = vmatpush.bf16.msra.mxu3 %v746_v3  ;;  %v719_v12 = vld [vmem:[%s979_s1 + $0x20] sm:$0xff]  ;;  %v718_v16 = vld [vmem:[%s979_s1 + $0x18] sm:$0xff]  ;;  %v717_v20 = vld [vmem:[%s979_s1 + $0x10] sm:$0xff] }
   0x6   :  { %403 = vmatpush.bf16.msra.mxu0 %v721_v4  ;;  %v727_v13 = vld [vmem:[%s979_s1 + $0x60] sm:$0xff]  ;;  %v726_v17 = vld [vmem:[%s979_s1 + $0x58] sm:$0xff]  ;;  %v725_v21 = vld [vmem:[%s979_s1 + $0x50] sm:$0xff] }
   0x7   :  { %422 = vmatpush.bf16.msra.mxu1 %v729_v5  ;;  %v735_v14 = vld [vmem:[%s979_s1 + $0xa0] sm:$0xff]  ;;  %v734_v18 = vld [vmem:[%s979_s1 + $0x98] sm:$0xff]  ;;  %v733_v22 = vld [vmem:[%s979_s1 + $0x90] sm:$0xff] }
   0x8   :  { %441 = vmatpush.bf16.msra.mxu2 %v737_v6  ;;  %v743_v15 = vld [vmem:[%s979_s1 + $0xe0] sm:$0xff]  ;;  %v742_v19 = vld [vmem:[%s979_s1 + $0xd8] sm:$0xff]  ;;  %v741_v23 = vld [vmem:[%s979_s1 + $0xd0] sm:$0xff] }
   0x9   :  { %460 = vmatpush.bf16.msra.mxu3 %v745_v7  ;;  %v716_v24 = vld [vmem:[%s979_s1 + $0x8] sm:$0xff]  ;;  %v715_v28 = vld [vmem:[%s979_s1] sm:$0xff]  ;;  %v707_v33 = vld [vmem:[%s981_s0 + $0x10] sm:$0xf0] }
   0xa   :  { %404 = vmatpush.bf16.msra.mxu0 %v720_v8  ;;  %v724_v25 = vld [vmem:[%s979_s1 + $0x48] sm:$0xff]  ;;  %v723_v29 = vld [vmem:[%s979_s1 + $0x40] sm:$0xff]  ;;  %v509_v35 = vld [vmem:[%s981_s0 + $0x14] sm:$0xf0] }
   0xb   :  { %423 = vmatpush.bf16.msra.mxu1 %v728_v9  ;;  %v732_v26 = vld [vmem:[%s979_s1 + $0x88] sm:$0xff]  ;;  %v731_v30 = vld [vmem:[%s979_s1 + $0x80] sm:$0xff]  ;;  %v708_v37 = vld [vmem:[%s981_s0 + $0x18] sm:$0xf0] }
   0xc   :  { %442 = vmatpush.bf16.msra.mxu2 %v736_v10  ;;  %v740_v27 = vld [vmem:[%s979_s1 + $0xc8] sm:$0xff]  ;;  %v739_v31 = vld [vmem:[%s979_s1 + $0xc0] sm:$0xff]  ;;  %v754_v40 = vld [vmem:[%s979_s1 + $0x138] sm:$0xff] }
   0xd   :  { %461 = vmatpush.bf16.msra.mxu3 %v744_v11  ;;  %v507_v32 = vld [vmem:[%s981_s0] sm:$0xf]  ;;  %v705_v34 = vld [vmem:[%s981_s0 + $0x4] sm:$0xf]  ;;  %v515_v36 = vld [vmem:[%s981_s0 + $0x8] sm:$0xf] }
   0xe   :  { %405 = vmatpush.bf16.msra.mxu0 %v719_v12  ;;  %v706_v38 = vld [vmem:[%s981_s0 + $0xc] sm:$0xf]  ;;  %v517_v39 = vld [vmem:[%s981_s0 + $0x1c] sm:$0xf0]  ;;  %v508_v41 = vor.u32 %v707_v33, %v507_v32  ;;  %v512_v42 = vor.u32 %v705_v34, %v509_v35  ;;  %v516_v43 = vor.u32 %v708_v37, %v515_v36  ;;  %v753_v45 = vld [vmem:[%s979_s1 + $0x130] sm:$0xff] }
   0xf   :  { %424 = vmatpush.bf16.msra.mxu1 %v727_v13  ;;  %v520_v44 = vor.u32 %v706_v38, %v517_v39  ;;  %v752_v46 = vld [vmem:[%s979_s1 + $0x128] sm:$0xff]  ;;  %v751_v47 = vld [vmem:[%s979_s1 + $0x120] sm:$0xff]  ;;  %v712_v49 = vld [vmem:[%s981_s0 + $0x38] sm:$0xf0] }
  0x10   :  { %443 = vmatpush.bf16.msra.mxu2 %v735_v14  ;;  %v527_v48 = vld [vmem:[%s981_s0 + $0x28] sm:$0xf]  ;;  %v710_v50 = vld [vmem:[%s981_s0 + $0x2c] sm:$0xf]  ;;  %v529_v51 = vld [vmem:[%s981_s0 + $0x3c] sm:$0xf0] }
  0x11   :  { %462 = vmatpush.bf16.msra.mxu3 %v743_v15  ;;  %v535_v52 = vld [vmem:[%s981_s0 + $0x30] sm:$0xf]  ;;  %v713_v53 = vld [vmem:[%s981_s0 + $0x40] sm:$0xf0]  ;;  %v711_v54 = vld [vmem:[%s981_s0 + $0x34] sm:$0xf]  ;;  %v528_v57 = vor.u32 %v712_v49, %v527_v48  ;;  %v532_v58 = vor.u32 %v710_v50, %v529_v51 }
  0x12   :  { %406 = vmatpush.bf16.msra.mxu0 %v718_v16  ;;  %v537_v55 = vld [vmem:[%s981_s0 + $0x44] sm:$0xf0]  ;;  %v750_v56 = vld [vmem:[%s979_s1 + $0x118] sm:$0xff]  ;;  %v536_v59 = vor.u32 %v713_v53, %v535_v52  ;;  %v749_v61 = vld [vmem:[%s979_s1 + $0x110] sm:$0xff] }
  0x13   :  { %425 = vmatpush.bf16.msra.mxu1 %v726_v17  ;;  %v540_v60 = vor.u32 %v711_v54, %v537_v55  ;;  %v748_v62 = vld [vmem:[%s979_s1 + $0x108] sm:$0xff]  ;;  %v747_v63 = vld [vmem:[%s979_s1 + $0x100] sm:$0xff]  ;;  %v523_v0 = vld [vmem:[%s981_s0 + $0x10] sm:$0xf] }
  0x14   :  { %444 = vmatpush.bf16.msra.mxu2 %v734_v18  ;;  %v709_v1 = vld [vmem:[%s981_s0 + $0x20] sm:$0xf0]  ;;  %v543_v2 = vld [vmem:[%s981_s0 + $0x38] sm:$0xf]  ;;  %v714_v3 = vld [vmem:[%s981_s0 + $0x48] sm:$0xf0] }
  0x15   :  { %463 = vmatpush.bf16.msra.mxu3 %v742_v19  ;;  %v524_v4 = vor.u32 %v709_v1, %v523_v0  ;;  %v544_v5 = vor.u32 %v714_v3, %v543_v2  ;;  %v763_v15 = vld [vmem:[%s980_s2] ss:$0 sm:$0xff] }
  0x16   :  { %407 = vmatpush.bf16.msra.mxu0 %v717_v20 }
  0x17   :  { %426 = vmatpush.bf16.msra.mxu1 %v725_v21 }
  0x18   :  { %445 = vmatpush.bf16.msra.mxu2 %v733_v22 }
  0x19   :  { %464 = vmatpush.bf16.msra.mxu3 %v741_v23 }
  0x1a   :  { %408 = vmatpush.bf16.msra.mxu0 %v716_v24 }
  0x1b   :  { %427 = vmatpush.bf16.msra.mxu1 %v724_v25 }
  0x1c   :  { %446 = vmatpush.bf16.msra.mxu2 %v732_v26 }
  0x1d   :  { %465 = vmatpush.bf16.msra.mxu3 %v740_v27 }
  0x1e   :  { %409 = vmatpush.bf16.msra.mxu0 %v715_v28 }
  0x1f   :  { %428 = vmatpush.bf16.msra.mxu1 %v723_v29 }
  0x20   :  { %447 = vmatpush.bf16.msra.mxu2 %v731_v30 }
  0x21   :  { %466 = vmatpush.bf16.msra.mxu3 %v739_v31  ;;  %410 = vmatmul.bf16.vlgmr.msra.gmra.mxu0 %v508_v41 }
  0x22   :  { %478 = vmatpush.bf16.msrb.mxu0 %v754_v40  ;;  %429 = vmatmul.bf16.vlgmr.msra.gmra.mxu1 %v512_v42 }
  0x23   :  { %755 = vmatpush.bf16.msrb.mxu1 %v754_v40  ;;  %448 = vmatmul.bf16.vlgmr.msra.gmra.mxu2 %v516_v43 }
  0x24   :  { %467 = vmatmul.bf16.vlgmr.msra.gmra.mxu3 %v520_v44 }
  0x26   :  { %479 = vmatpush.bf16.msrb.mxu0 %v753_v45 }
  0x27   :  { %756 = vmatpush.bf16.msrb.mxu1 %v753_v45 }
  0x2a   :  { %480 = vmatpush.bf16.msrb.mxu0 %v752_v46 }
  0x2b   :  { %757 = vmatpush.bf16.msrb.mxu1 %v752_v46 }
  0x2e   :  { %481 = vmatpush.bf16.msrb.mxu0 %v751_v47 }
  0x2f   :  { %758 = vmatpush.bf16.msrb.mxu1 %v751_v47 }
  0x31   :  { %415 = vmatmul.bf16.gmra.mxu0 %v528_v57 }
  0x32   :  { %482 = vmatpush.bf16.msrb.mxu0 %v750_v56  ;;  %434 = vmatmul.bf16.gmra.mxu1 %v532_v58 }
  0x33   :  { %759 = vmatpush.bf16.msrb.mxu1 %v750_v56  ;;  %453 = vmatmul.bf16.gmra.mxu2 %v536_v59 }
  0x34   :  { %472 = vmatmul.bf16.gmra.mxu3 %v540_v60 }
  0x36   :  { %483 = vmatpush.bf16.msrb.mxu0 %v749_v61 }
  0x37   :  { %760 = vmatpush.bf16.msrb.mxu1 %v749_v61 }
  0x3a   :  { %484 = vmatpush.bf16.msrb.mxu0 %v748_v62 }
  0x3b   :  { %761 = vmatpush.bf16.msrb.mxu1 %v748_v62 }
  0x3e   :  { %485 = vmatpush.bf16.msrb.mxu0 %v747_v63 }
  0x3f   :  { %762 = vmatpush.bf16.msrb.mxu1 %v747_v63 }
  0x41   :  { %486 = vmatmul.bf16.vlgmr.msrb.gmra.mxu0 %v524_v4 }
  0x42   :  { %491 = vmatmul.bf16.vlgmr.msrb.gmra.mxu1 %v544_v5 }
  0x9e   :  { %v411_v6 = vpop.f32.mrf.mxu0 }
  0x9f   :  { %v430_v7 = vpop.f32.mrf.mxu1  ;;  %v412_v17 = vadd.f32 %v763_v15, %v411_v6 }
  0xa1   :  { %v431_v22 = vadd.f32 %v430_v7, %v412_v17 }
  0xa6   :  { %v449_v8 = vpop.f32.mrf.mxu2  ;;  %v413_v10 = vpop.f32.mrf.mxu0 }
  0xa7   :  { %v468_v9 = vpop.f32.mrf.mxu3  ;;  %v432_v11 = vpop.f32.mrf.mxu1  ;;  %v450_v24 = vadd.f32 %v449_v8, %v431_v22  ;;  %v414_v27 = vadd.f32 %v763_v15, %v413_v10 }
  0xa9   :  { %v469_v29 = vadd.f32 %v468_v9, %v450_v24  ;;  %v433_v34 = vadd.f32 %v432_v11, %v414_v27 }
  0xae   :  { %v451_v12 = vpop.f32.mrf.mxu2  ;;  %v416_v13 = vpop.f32.mrf.mxu0 }
  0xaf   :  { %v435_v14 = vpop.f32.mrf.mxu1  ;;  %v470_v16 = vpop.f32.mrf.mxu3  ;;  %v417_v18 = vadd.f32 %v763_v15, %v416_v13  ;;  %v452_v38 = vadd.f32 %v451_v12, %v433_v34 }
  0xb1   :  { %v436_v23 = vadd.f32 %v435_v14, %v417_v18  ;;  %v471_v41 = vadd.f32 %v470_v16, %v452_v38 }
  0xb6   :  { %v454_v19 = vpop.f32.mrf.mxu2  ;;  %v418_v20 = vpop.f32.mrf.mxu0 }
  0xb7   :  { %v437_v21 = vpop.f32.mrf.mxu1  ;;  %v455_v25 = vadd.f32 %v454_v19, %v436_v23  ;;  %v473_v26 = vpop.f32.mrf.mxu3  ;;  %v419_v28 = vadd.f32 %v763_v15, %v418_v20 }
  0xb9   :  { %v474_v30 = vadd.f32 %v473_v26, %v455_v25  ;;  %v438_v35 = vadd.f32 %v437_v21, %v419_v28 }
  0xbe   :  { %v456_v31 = vpop.f32.mrf.mxu2  ;;  %v487_v32 = vpop.f32.mrf.mxu0 }
  0xbf   :  { %v492_v33 = vpop.f32.mrf.mxu1  ;;  %v488_v36 = vadd.f32 %v487_v32, %v469_v29  ;;  %v457_v39 = vadd.f32 %v456_v31, %v438_v35  ;;  %v475_v40 = vpop.f32.mrf.mxu3 }
  0xc0   :  { %v493_v37 = vadd.f32 %v492_v33, %v474_v30 }
  0xc1   :  { %497 = vst [vmem:[%s982_s3] sm:$0xff] %v488_v36  ;;  %v476_v42 = vadd.f32 %v475_v40, %v457_v39 }
  0xc2   :  { %499 = vst [vmem:[%s982_s3 + $0x10] sm:$0xff] %v493_v37 }
  0xc6   :  { %v489_v43 = vpop.f32.mrf.mxu0 }
  0xc7   :  { %v494_v44 = vpop.f32.mrf.mxu1  ;;  %v490_v45 = vadd.f32 %v489_v43, %v471_v41 }
  0xc8   :  { %v495_v46 = vadd.f32 %v494_v44, %v476_v42 }
  0xc9   :  { %498 = vst [vmem:[%s982_s3 + $0x8] sm:$0xff] %v490_v45 }
  0xca   :  { %500 = vst [vmem:[%s982_s3 + $0x18] sm:$0xff] %v495_v46 }

// kernel: forward.127
= control target key start
LH: loop header
LB: loop body
LE: loop exit
PB: predicated region body
PF: predicated region fallthrough
CT: control target
= control target key end

     0   :  { %s627_s21 = smov 0   ;;  %s629_s22 = smov 0   ;;  %s770_s0 = inlined_call_operand.vmem [shape: f32[2,16,128], index: 0, kind: input, shape index: {}]   ;;  %s771_s1 = inlined_call_operand.vmem [shape: f32[2,1,1], index: 1, kind: input, shape index: {}]   ;;  %s772_s2 = inlined_call_operand.vmem [shape: f32[128,128], index: 2, kind: input, shape index: {}]   ;;  %s773_s3 = inlined_call_operand.vmem [shape: f32[1,128], index: 3, kind: input, shape index: {}]   ;;  %s774_s4 = inlined_call_operand.vmem [shape: f32[128,128], index: 4, kind: input, shape index: {}]   ;;  %s775_s5 = inlined_call_operand.vmem [shape: f32[1,128], index: 5, kind: input, shape index: {}]   ;;  %s776_s6 = inlined_call_operand.vmem [shape: f32[2,1,128], index: 6, kind: output, shape index: {}]  }
   0x1   :  { %s631_s23 = smov 0  }
   0x2 LB: > { %s28_s24 = sadd.s32 1, %s584_s22  ;;  %p521_p0 = scmp.ge.s32.totalorder %s588_s23, 1  ;;  %s588_s23 = sphi %s631_s23, %s16_s23   ;;  %s584_s22 = sphi %s629_s22, %s778_s22   ;;  %s580_s21 = sphi %s627_s21, %s777_s21  }
   0x3   : > { %p30_p1 = scmp.ge.s32.totalorder %s28_s24, 2  ;;  %p239_p2 = scmp.lt.s32.totalorder %s588_s23, 3 }
   0x5   : > { %s780_s24 = smov (%p30_p1, %s28_s24), 0  ;;  %p240_p3 = pnand %p521_p0, %p239_p2 }
   0x6   : > { %p275_p4 = scmp.lt.s32.totalorder (!%p240_p3), %s580_s21, 1 }
   0x7   : > { %243 = sbr.rel (%p240_p3) target bundleno = 466 (0x1d2), region = 44 }
   0xc   : > { %v348_v0 = vld [vmem:[%s772_s2 + $0x78] sm:$0xff]  ;;  %v347_v1 = vld [vmem:[%s772_s2 + $0x70] sm:$0xff]  ;;  %v590_v2 = vmov 0   ;;  %v591_v3 = vmov 0.0   ;;  %s782_s21 = smov (!%p275_p4, %s580_s21), 1  ;;  %v346_v4 = vld [vmem:[%s772_s2 + $0x68] sm:$0xff] }
   0xd   : > { %555 = vset.pattern.permute.xlu0 %v590_v2  ;;  %294 = vst [vmem:[#allocation2] sm:$0x1] %v591_v3  ;;  %350 = vmatpush.msra.mxu0 %v348_v0  ;;  %s286_s9 = scalar_lea.vmem %s771_s1, %s782_s21  ;;  %v345_v5 = vld [vmem:[%s772_s2 + $0x60] sm:$0xff]  ;;  %s528_s12 = sshll.u32 %s782_s21, 4  ;;  %v344_v7 = vld [vmem:[%s772_s2 + $0x58] sm:$0xff]  ;;  %v343_v19 = vld [vmem:[%s772_s2 + $0x50] sm:$0xff] }
   0xe   : > { %v311_v6 = vld [vmem:[%s286_s9] sm:$0x1]  ;;  %s282_s15 = scalar_lea.vmem %s770_s0, %s528_s12  ;;  %v342_v20 = vld [vmem:[%s772_s2 + $0x48] sm:$0xff]  ;;  %v340_v22 = vld [vmem:[%s772_s2 + $0x38] sm:$0xff]  ;;  %s289_s18 = scalar_lea.vmem %s776_s6, %s782_s21 }
   0xf   : > { %351 = vmatpush.msra.mxu0 %v347_v1  ;;  %314 = vperm.xlu0 %555, %v311_v6   ;;  %v296_v8 = vld [vmem:[%s282_s15] sm:$0xff]  ;;  %v297_v9 = vld [vmem:[%s282_s15 + $0x8] sm:$0xff]  ;;  %v339_v23 = vld [vmem:[%s772_s2 + $0x30] sm:$0xff] }
  0x10   : > { %v298_v10 = vadd.f32 %v297_v9, %v296_v8  ;;  %v341_v21 = vld [vmem:[%s772_s2 + $0x40] sm:$0xff]  ;;  %v338_v24 = vld [vmem:[%s772_s2 + $0x28] sm:$0xff]  ;;  %v336_v26 = vld [vmem:[%s772_s2 + $0x18] sm:$0xff] }
  0x11   : > { %352 = vmatpush.msra.mxu0 %v346_v4  ;;  %v337_v25 = vld [vmem:[%s772_s2 + $0x20] sm:$0xff]  ;;  %v335_v27 = vld [vmem:[%s772_s2 + $0x10] sm:$0xff]  ;;  %v334_v28 = vld [vmem:[%s772_s2 + $0x8] sm:$0xff] }
  0x12   : > { %v299_v11 = vrot.slane %v298_v10, 4  ;;  %v333_v29 = vld [vmem:[%s772_s2] sm:$0xff]  ;;  %v405_v44 = vld [vmem:[%s774_s4 + $0x78] sm:$0xff]  ;;  %v404_v45 = vld [vmem:[%s774_s4 + $0x70] sm:$0xff] }
  0x13   : > { %353 = vmatpush.msra.mxu0 %v345_v5  ;;  %407 = vmatpush.msra.mxu1 %v405_v44  ;;  %v403_v46 = vld [vmem:[%s774_s4 + $0x68] sm:$0xff]  ;;  %v402_v47 = vld [vmem:[%s774_s4 + $0x60] sm:$0xff]  ;;  %v401_v48 = vld [vmem:[%s774_s4 + $0x58] sm:$0xff] }
  0x14   : > { %v300_v12 = vadd.f32 %v299_v11, %v298_v10  ;;  %v295_v16 = vld [vmem:[#allocation2] sm:$0x1]  ;;  %v400_v49 = vld [vmem:[%s774_s4 + $0x50] sm:$0xff]  ;;  %v399_v50 = vld [vmem:[%s774_s4 + $0x48] sm:$0xff] }
  0x15   : > { %354 = vmatpush.msra.mxu0 %v344_v7  ;;  %408 = vmatpush.msra.mxu1 %v404_v45  ;;  %v398_v51 = vld [vmem:[%s774_s4 + $0x40] sm:$0xff]  ;;  %v397_v52 = vld [vmem:[%s774_s4 + $0x38] sm:$0xff]  ;;  %v396_v53 = vld [vmem:[%s774_s4 + $0x30] sm:$0xff] }
  0x16   : > { %v301_v13 = vrot.slane %v300_v12, 2  ;;  %v395_v54 = vld [vmem:[%s774_s4 + $0x28] sm:$0xff]  ;;  %v394_v55 = vld [vmem:[%s774_s4 + $0x20] sm:$0xff]  ;;  %v393_v56 = vld [vmem:[%s774_s4 + $0x18] sm:$0xff] }
  0x17   : > { %355 = vmatpush.msra.mxu0 %v343_v19  ;;  %409 = vmatpush.msra.mxu1 %v403_v46  ;;  %v392_v57 = vld [vmem:[%s774_s4 + $0x10] sm:$0xff]  ;;  %v391_v58 = vld [vmem:[%s774_s4 + $0x8] sm:$0xff]  ;;  %v390_v59 = vld [vmem:[%s774_s4] sm:$0xff] }
  0x18   : > { %v302_v14 = vadd.f32 %v301_v13, %v300_v12  ;;  %v349_v60 = vld [vmem:[%s773_s3] sm:$0x1] }
  0x19   : > { %356 = vmatpush.msra.mxu0 %v342_v20  ;;  %410 = vmatpush.msra.mxu1 %v402_v47  ;;  %v406_v13 = vld [vmem:[%s775_s5] sm:$0x1] }
  0x1a   : > { %v303_v15 = vrot.slane %v302_v14, 1 }
  0x1b   : > { %357 = vmatpush.msra.mxu0 %v341_v21  ;;  %411 = vmatpush.msra.mxu1 %v401_v48 }
  0x1c   : > { %v304_v17 = vadd.f32 %v303_v15, %v302_v14 }
  0x1d   : > { %358 = vmatpush.msra.mxu0 %v340_v22  ;;  %412 = vmatpush.msra.mxu1 %v400_v49 }
  0x1e   : > { %v305_v18 = vadd.f32 %v304_v17, %v295_v16 }
  0x1f   : > { %359 = vmatpush.msra.mxu0 %v339_v23  ;;  %413 = vmatpush.msra.mxu1 %v399_v50 }
  0x20   : > { %306 = vst [vmem:[#allocation2] sm:$0x1] %v305_v18 }
  0x21   : > { %360 = vmatpush.msra.mxu0 %v338_v24  ;;  %414 = vmatpush.msra.mxu1 %v398_v51 }
  0x23   : > { %361 = vmatpush.msra.mxu0 %v337_v25  ;;  %415 = vmatpush.msra.mxu1 %v397_v52 }
  0x25   : > { %362 = vmatpush.msra.mxu0 %v336_v26  ;;  %416 = vmatpush.msra.mxu1 %v396_v53 }
  0x27   : > { %363 = vmatpush.msra.mxu0 %v335_v27  ;;  %v310_v39 = vld [vmem:[#allocation2] sm:$0x1]  ;;  %417 = vmatpush.msra.mxu1 %v395_v54 }
  0x29   : > { %364 = vmatpush.msra.mxu0 %v334_v28  ;;  %418 = vmatpush.msra.mxu1 %v394_v55 }
  0x2b   : > { %365 = vmatpush.msra.mxu0 %v333_v29  ;;  %419 = vmatpush.msra.mxu1 %v393_v56 }
  0x2d   : > { %420 = vmatpush.msra.mxu1 %v392_v57 }
  0x2f   : > { %421 = vmatpush.msra.mxu1 %v391_v58 }
  0x31   : > { %422 = vmatpush.msra.mxu1 %v390_v59 }
  0x81   : > { %v315_v30 = vpop.permute.xlu0 %314 }
  0x82   : > { %v317_v31 = vperm.slane %v315_v30, 0 }
  0x84   : > { %556 = vrcp.f32 %v317_v31  ;;  %v329_v35 = vand.u32 2147483648, %v317_v31  ;;  %v327_v37 = vand.u32 2147483647, %v317_v31  ;;  %vm323_vm1 = vweird.f32 %v317_v31 }
  0x86   : > { %v330_v40 = vor.u32 1.1754944e-38, %v329_v35  ;;  %vm328_vm3 = vcmp.eq.f32.partialorder %v327_v37, 8.507059e+37 }
  0x8a   : > { %v557_v32 = vpop.eup %556 }
  0x8b   : > { %v319_v33 = vmul.f32 %v557_v32, %v317_v31  ;;  %vm324_vm0 = vweird.f32 %v557_v32 }
  0x8c   : > { %vm325_vm2 = vmor %vm323_vm1, %vm324_vm0 }
  0x8d   : > { %v320_v34 = vsub.f32 1.0, %v319_v33 }
  0x8f   : > { %v321_v36 = vmul.f32 %v557_v32, %v320_v34 }
  0x91   : > { %v322_v38 = vadd.f32 %v557_v32, %v321_v36 }
  0x93   : > { %v326_v41 = vsel %vm325_vm2, %v557_v32, %v322_v38 }
  0x94   : > { %v331_v42 = vsel %vm328_vm3, %v330_v40, %v326_v41 }
  0x95   : > { %v332_v43 = vmul.f32 %v331_v42, %v310_v39 }
  0x97   : > { %366 = vmatmul.f32.vlgmr.msra.gmra.mxu0 %v332_v43 }
 0x114   : > { %v367_v61 = vpop.f32.mrf.mxu0 }
 0x115   : > { %v368_v62 = vadd.f32 %v367_v61, %v349_v60 }
 0x117   : > { %v524_v63 = vmul.f32 -1.442695, %v368_v62 }
 0x119   : > { %558 = vpow2.f32 %v524_v63 }
 0x11f   : > { %v559_v0 = vpop.eup %558 }
 0x120   : > { %v373_v1 = vadd.f32 1.0, %v559_v0 }
 0x122   : > { %560 = vrcp.f32 %v373_v1  ;;  %v385_v5 = vand.u32 2147483648, %v373_v1  ;;  %v383_v7 = vand.u32 2147483647, %v373_v1  ;;  %vm379_vm5 = vweird.f32 %v373_v1 }
 0x124   : > { %v386_v9 = vor.u32 1.1754944e-38, %v385_v5  ;;  %vm384_vm7 = vcmp.eq.f32.partialorder %v383_v7, 8.507059e+37 }
 0x128   : > { %v561_v2 = vpop.eup %560 }
 0x129   : > { %v375_v3 = vmul.f32 %v561_v2, %v373_v1  ;;  %vm380_vm4 = vweird.f32 %v561_v2 }
 0x12a   : > { %vm381_vm6 = vmor %vm379_vm5, %vm380_vm4 }
 0x12b   : > { %v376_v4 = vsub.f32 1.0, %v375_v3 }
 0x12d   : > { %v377_v6 = vmul.f32 %v561_v2, %v376_v4 }
 0x12f   : > { %v378_v8 = vadd.f32 %v561_v2, %v377_v6 }
 0x131   : > { %v382_v10 = vsel %vm381_vm6, %v561_v2, %v378_v8 }
 0x132   : > { %v387_v11 = vsel %vm384_vm7, %v386_v9, %v382_v10 }
 0x133   : > { %v389_v12 = vmul.f32 %v387_v11, %v368_v62 }
 0x135   : > { %423 = vmatmul.f32.vlgmr.msra.gmra.mxu1 %v389_v12 }
 0x1b2   : > { %v424_v14 = vpop.f32.mrf.mxu1 }
 0x1b3   : > { %v425_v15 = vadd.f32 %v424_v14, %v406_v13 }
 0x1b5   : > { %v525_v16 = vmul.f32 -1.442695, %v425_v15 }
 0x1b7   : > { %562 = vpow2.f32 %v525_v16 }
 0x1bd   : > { %v563_v17 = vpop.eup %562 }
 0x1be   : > { %v430_v18 = vadd.f32 1.0, %v563_v17 }
 0x1c0   : > { %564 = vrcp.f32 %v430_v18  ;;  %v442_v22 = vand.u32 2147483648, %v430_v18  ;;  %v440_v24 = vand.u32 2147483647, %v430_v18  ;;  %vm436_vm9 = vweird.f32 %v430_v18 }
 0x1c2   : > { %v443_v26 = vor.u32 1.1754944e-38, %v442_v22  ;;  %vm441_vm11 = vcmp.eq.f32.partialorder %v440_v24, 8.507059e+37 }
 0x1c6   : > { %v565_v19 = vpop.eup %564 }
 0x1c7   : > { %v432_v20 = vmul.f32 %v565_v19, %v430_v18  ;;  %vm437_vm8 = vweird.f32 %v565_v19 }
 0x1c8   : > { %vm438_vm10 = vmor %vm436_vm9, %vm437_vm8 }
 0x1c9   : > { %v433_v21 = vsub.f32 1.0, %v432_v20 }
 0x1cb   : > { %v434_v23 = vmul.f32 %v565_v19, %v433_v21 }
 0x1cd   : > { %v435_v25 = vadd.f32 %v565_v19, %v434_v23 }
 0x1cf   : > { %v439_v27 = vsel %vm438_vm10, %v565_v19, %v435_v25 }
 0x1d0   : > { %v444_v28 = vsel %vm441_vm11, %v443_v26, %v439_v27 }
 0x1d1   : > { %446 = vst [vmem:[%s289_s18] sm:$0x1] %v444_v28 }
 0x1d2 PF: > { %s16_s23 = sadd.s32 1, %s588_s23   ;;  %s777_s21 = smov %s584_s22 }
 0x1d3   : > { %p13_p5 = scmp.ge.s32.totalorder %s16_s23, 4   ;;  %s778_s22 = smov %s780_s24 }
 0x1d5   :  { %15 = sbr.rel (!%p13_p5) target bundleno = 2 (0x2), region = 85 }

// kernel: forward.125
= control target key start
LH: loop header
LB: loop body
LE: loop exit
PB: predicated region body
PF: predicated region fallthrough
CT: control target
= control target key end

     0   :  { %s1091_s1 = inlined_call_operand.vmem [shape: bf16[640,128], index: 1, kind: input, shape index: {}]   ;;  %s1092_s2 = inlined_call_operand.vmem [shape: f32[1,128], index: 2, kind: input, shape index: {}]   ;;  %s1093_s0 = inlined_call_operand.vmem [shape: bf16[32,640], index: 0, kind: input, shape index: {}]   ;;  %s1094_s3 = inlined_call_operand.vmem [shape: f32[32,128], index: 3, kind: output, shape index: {}]  }
   0x1   :  { %v806_v0 = vld [vmem:[%s1091_s1 + $0x38] sm:$0xff]  ;;  %v805_v4 = vld [vmem:[%s1091_s1 + $0x30] sm:$0xff]  ;;  %v804_v8 = vld [vmem:[%s1091_s1 + $0x28] sm:$0xff] }
   0x2   :  { %v814_v1 = vld [vmem:[%s1091_s1 + $0x78] sm:$0xff]  ;;  %402 = vmatpush.bf16.msra.mxu0 %v806_v0  ;;  %v813_v5 = vld [vmem:[%s1091_s1 + $0x70] sm:$0xff]  ;;  %v812_v9 = vld [vmem:[%s1091_s1 + $0x68] sm:$0xff] }
   0x3   :  { %v822_v2 = vld [vmem:[%s1091_s1 + $0xb8] sm:$0xff]  ;;  %421 = vmatpush.bf16.msra.mxu1 %v814_v1  ;;  %v821_v6 = vld [vmem:[%s1091_s1 + $0xb0] sm:$0xff]  ;;  %v820_v10 = vld [vmem:[%s1091_s1 + $0xa8] sm:$0xff] }
   0x4   :  { %v830_v3 = vld [vmem:[%s1091_s1 + $0xf8] sm:$0xff]  ;;  %440 = vmatpush.bf16.msra.mxu2 %v822_v2  ;;  %v829_v7 = vld [vmem:[%s1091_s1 + $0xf0] sm:$0xff]  ;;  %v828_v11 = vld [vmem:[%s1091_s1 + $0xe8] sm:$0xff] }
   0x5   :  { %459 = vmatpush.bf16.msra.mxu3 %v830_v3  ;;  %v803_v12 = vld [vmem:[%s1091_s1 + $0x20] sm:$0xff]  ;;  %v802_v16 = vld [vmem:[%s1091_s1 + $0x18] sm:$0xff]  ;;  %v801_v20 = vld [vmem:[%s1091_s1 + $0x10] sm:$0xff] }
   0x6   :  { %403 = vmatpush.bf16.msra.mxu0 %v805_v4  ;;  %v811_v13 = vld [vmem:[%s1091_s1 + $0x60] sm:$0xff]  ;;  %v810_v17 = vld [vmem:[%s1091_s1 + $0x58] sm:$0xff]  ;;  %v809_v21 = vld [vmem:[%s1091_s1 + $0x50] sm:$0xff] }
   0x7   :  { %422 = vmatpush.bf16.msra.mxu1 %v813_v5  ;;  %v819_v14 = vld [vmem:[%s1091_s1 + $0xa0] sm:$0xff]  ;;  %v818_v18 = vld [vmem:[%s1091_s1 + $0x98] sm:$0xff]  ;;  %v817_v22 = vld [vmem:[%s1091_s1 + $0x90] sm:$0xff] }
   0x8   :  { %441 = vmatpush.bf16.msra.mxu2 %v821_v6  ;;  %v827_v15 = vld [vmem:[%s1091_s1 + $0xe0] sm:$0xff]  ;;  %v826_v19 = vld [vmem:[%s1091_s1 + $0xd8] sm:$0xff]  ;;  %v825_v23 = vld [vmem:[%s1091_s1 + $0xd0] sm:$0xff] }
   0x9   :  { %460 = vmatpush.bf16.msra.mxu3 %v829_v7  ;;  %v800_v24 = vld [vmem:[%s1091_s1 + $0x8] sm:$0xff]  ;;  %v799_v28 = vld [vmem:[%s1091_s1] sm:$0xff]  ;;  %v791_v33 = vld [vmem:[%s1093_s0 + $0x10] sm:$0xf0] }
   0xa   :  { %404 = vmatpush.bf16.msra.mxu0 %v804_v8  ;;  %v808_v25 = vld [vmem:[%s1091_s1 + $0x48] sm:$0xff]  ;;  %v807_v29 = vld [vmem:[%s1091_s1 + $0x40] sm:$0xff]  ;;  %v589_v35 = vld [vmem:[%s1093_s0 + $0x14] sm:$0xf0] }
   0xb   :  { %423 = vmatpush.bf16.msra.mxu1 %v812_v9  ;;  %v816_v26 = vld [vmem:[%s1091_s1 + $0x88] sm:$0xff]  ;;  %v815_v30 = vld [vmem:[%s1091_s1 + $0x80] sm:$0xff]  ;;  %v792_v37 = vld [vmem:[%s1093_s0 + $0x18] sm:$0xf0] }
   0xc   :  { %442 = vmatpush.bf16.msra.mxu2 %v820_v10  ;;  %v824_v27 = vld [vmem:[%s1091_s1 + $0xc8] sm:$0xff]  ;;  %v823_v31 = vld [vmem:[%s1091_s1 + $0xc0] sm:$0xff]  ;;  %v838_v40 = vld [vmem:[%s1091_s1 + $0x138] sm:$0xff] }
   0xd   :  { %461 = vmatpush.bf16.msra.mxu3 %v828_v11  ;;  %v587_v32 = vld [vmem:[%s1093_s0] sm:$0xf]  ;;  %v789_v34 = vld [vmem:[%s1093_s0 + $0x4] sm:$0xf]  ;;  %v595_v36 = vld [vmem:[%s1093_s0 + $0x8] sm:$0xf] }
   0xe   :  { %405 = vmatpush.bf16.msra.mxu0 %v803_v12  ;;  %v790_v38 = vld [vmem:[%s1093_s0 + $0xc] sm:$0xf]  ;;  %v597_v39 = vld [vmem:[%s1093_s0 + $0x1c] sm:$0xf0]  ;;  %v588_v41 = vor.u32 %v791_v33, %v587_v32  ;;  %v592_v42 = vor.u32 %v789_v34, %v589_v35  ;;  %v596_v43 = vor.u32 %v792_v37, %v595_v36  ;;  %v837_v45 = vld [vmem:[%s1091_s1 + $0x130] sm:$0xff] }
   0xf   :  { %424 = vmatpush.bf16.msra.mxu1 %v811_v13  ;;  %v600_v44 = vor.u32 %v790_v38, %v597_v39  ;;  %v836_v46 = vld [vmem:[%s1091_s1 + $0x128] sm:$0xff]  ;;  %v835_v47 = vld [vmem:[%s1091_s1 + $0x120] sm:$0xff]  ;;  %v796_v49 = vld [vmem:[%s1093_s0 + $0x38] sm:$0xf0] }
  0x10   :  { %443 = vmatpush.bf16.msra.mxu2 %v819_v14  ;;  %v607_v48 = vld [vmem:[%s1093_s0 + $0x28] sm:$0xf]  ;;  %v794_v50 = vld [vmem:[%s1093_s0 + $0x2c] sm:$0xf]  ;;  %v609_v51 = vld [vmem:[%s1093_s0 + $0x3c] sm:$0xf0] }
  0x11   :  { %462 = vmatpush.bf16.msra.mxu3 %v827_v15  ;;  %v615_v52 = vld [vmem:[%s1093_s0 + $0x30] sm:$0xf]  ;;  %v797_v53 = vld [vmem:[%s1093_s0 + $0x40] sm:$0xf0]  ;;  %v795_v54 = vld [vmem:[%s1093_s0 + $0x34] sm:$0xf]  ;;  %v608_v57 = vor.u32 %v796_v49, %v607_v48  ;;  %v612_v58 = vor.u32 %v794_v50, %v609_v51 }
  0x12   :  { %406 = vmatpush.bf16.msra.mxu0 %v802_v16  ;;  %v617_v55 = vld [vmem:[%s1093_s0 + $0x44] sm:$0xf0]  ;;  %v834_v56 = vld [vmem:[%s1091_s1 + $0x118] sm:$0xff]  ;;  %v616_v59 = vor.u32 %v797_v53, %v615_v52  ;;  %v833_v61 = vld [vmem:[%s1091_s1 + $0x110] sm:$0xff] }
  0x13   :  { %425 = vmatpush.bf16.msra.mxu1 %v810_v17  ;;  %v620_v60 = vor.u32 %v795_v54, %v617_v55  ;;  %v832_v62 = vld [vmem:[%s1091_s1 + $0x108] sm:$0xff]  ;;  %v831_v63 = vld [vmem:[%s1091_s1 + $0x100] sm:$0xff]  ;;  %v603_v0 = vld [vmem:[%s1093_s0 + $0x10] sm:$0xf] }
  0x14   :  { %444 = vmatpush.bf16.msra.mxu2 %v818_v18  ;;  %v793_v1 = vld [vmem:[%s1093_s0 + $0x20] sm:$0xf0]  ;;  %v623_v2 = vld [vmem:[%s1093_s0 + $0x38] sm:$0xf]  ;;  %v798_v3 = vld [vmem:[%s1093_s0 + $0x48] sm:$0xf0] }
  0x15   :  { %463 = vmatpush.bf16.msra.mxu3 %v826_v19  ;;  %v604_v4 = vor.u32 %v793_v1, %v603_v0  ;;  %v624_v5 = vor.u32 %v798_v3, %v623_v2  ;;  %v847_v15 = vld [vmem:[%s1092_s2] ss:$0 sm:$0xff] }
  0x16   :  { %407 = vmatpush.bf16.msra.mxu0 %v801_v20 }
  0x17   :  { %426 = vmatpush.bf16.msra.mxu1 %v809_v21 }
  0x18   :  { %445 = vmatpush.bf16.msra.mxu2 %v817_v22 }
  0x19   :  { %464 = vmatpush.bf16.msra.mxu3 %v825_v23 }
  0x1a   :  { %408 = vmatpush.bf16.msra.mxu0 %v800_v24 }
  0x1b   :  { %427 = vmatpush.bf16.msra.mxu1 %v808_v25 }
  0x1c   :  { %446 = vmatpush.bf16.msra.mxu2 %v816_v26 }
  0x1d   :  { %465 = vmatpush.bf16.msra.mxu3 %v824_v27 }
  0x1e   :  { %409 = vmatpush.bf16.msra.mxu0 %v799_v28 }
  0x1f   :  { %428 = vmatpush.bf16.msra.mxu1 %v807_v29 }
  0x20   :  { %447 = vmatpush.bf16.msra.mxu2 %v815_v30 }
  0x21   :  { %466 = vmatpush.bf16.msra.mxu3 %v823_v31  ;;  %410 = vmatmul.bf16.vlgmr.msra.gmra.mxu0 %v588_v41 }
  0x22   :  { %478 = vmatpush.bf16.msrb.mxu0 %v838_v40  ;;  %429 = vmatmul.bf16.vlgmr.msra.gmra.mxu1 %v592_v42 }
  0x23   :  { %839 = vmatpush.bf16.msrb.mxu1 %v838_v40  ;;  %448 = vmatmul.bf16.vlgmr.msra.gmra.mxu2 %v596_v43 }
  0x24   :  { %467 = vmatmul.bf16.vlgmr.msra.gmra.mxu3 %v600_v44 }
  0x26   :  { %479 = vmatpush.bf16.msrb.mxu0 %v837_v45 }
  0x27   :  { %840 = vmatpush.bf16.msrb.mxu1 %v837_v45 }
  0x2a   :  { %480 = vmatpush.bf16.msrb.mxu0 %v836_v46 }
  0x2b   :  { %841 = vmatpush.bf16.msrb.mxu1 %v836_v46 }
  0x2e   :  { %481 = vmatpush.bf16.msrb.mxu0 %v835_v47 }
  0x2f   :  { %842 = vmatpush.bf16.msrb.mxu1 %v835_v47 }
  0x31   :  { %415 = vmatmul.bf16.gmra.mxu0 %v608_v57 }
  0x32   :  { %482 = vmatpush.bf16.msrb.mxu0 %v834_v56  ;;  %434 = vmatmul.bf16.gmra.mxu1 %v612_v58 }
  0x33   :  { %843 = vmatpush.bf16.msrb.mxu1 %v834_v56  ;;  %453 = vmatmul.bf16.gmra.mxu2 %v616_v59 }
  0x34   :  { %472 = vmatmul.bf16.gmra.mxu3 %v620_v60 }
  0x36   :  { %483 = vmatpush.bf16.msrb.mxu0 %v833_v61 }
  0x37   :  { %844 = vmatpush.bf16.msrb.mxu1 %v833_v61 }
  0x3a   :  { %484 = vmatpush.bf16.msrb.mxu0 %v832_v62 }
  0x3b   :  { %845 = vmatpush.bf16.msrb.mxu1 %v832_v62 }
  0x3e   :  { %485 = vmatpush.bf16.msrb.mxu0 %v831_v63 }
  0x3f   :  { %846 = vmatpush.bf16.msrb.mxu1 %v831_v63 }
  0x41   :  { %486 = vmatmul.bf16.vlgmr.msrb.gmra.mxu0 %v604_v4 }
  0x42   :  { %491 = vmatmul.bf16.vlgmr.msrb.gmra.mxu1 %v624_v5 }
  0x9e   :  { %v411_v6 = vpop.f32.mrf.mxu0 }
  0x9f   :  { %v430_v7 = vpop.f32.mrf.mxu1  ;;  %v412_v17 = vadd.f32 %v847_v15, %v411_v6 }
  0xa1   :  { %v431_v22 = vadd.f32 %v430_v7, %v412_v17 }
  0xa6   :  { %v449_v8 = vpop.f32.mrf.mxu2  ;;  %v413_v10 = vpop.f32.mrf.mxu0 }
  0xa7   :  { %v468_v9 = vpop.f32.mrf.mxu3  ;;  %v432_v11 = vpop.f32.mrf.mxu1  ;;  %v450_v24 = vadd.f32 %v449_v8, %v431_v22  ;;  %v414_v27 = vadd.f32 %v847_v15, %v413_v10 }
  0xa9   :  { %v469_v29 = vadd.f32 %v468_v9, %v450_v24  ;;  %v433_v34 = vadd.f32 %v432_v11, %v414_v27 }
  0xae   :  { %v451_v12 = vpop.f32.mrf.mxu2  ;;  %v416_v13 = vpop.f32.mrf.mxu0 }
  0xaf   :  { %v435_v14 = vpop.f32.mrf.mxu1  ;;  %v470_v16 = vpop.f32.mrf.mxu3  ;;  %v417_v18 = vadd.f32 %v847_v15, %v416_v13  ;;  %v452_v38 = vadd.f32 %v451_v12, %v433_v34 }
  0xb1   :  { %v436_v23 = vadd.f32 %v435_v14, %v417_v18  ;;  %v471_v43 = vadd.f32 %v470_v16, %v452_v38 }
  0xb6   :  { %v454_v19 = vpop.f32.mrf.mxu2  ;;  %v418_v20 = vpop.f32.mrf.mxu0 }
  0xb7   :  { %v437_v21 = vpop.f32.mrf.mxu1  ;;  %v455_v25 = vadd.f32 %v454_v19, %v436_v23  ;;  %v473_v26 = vpop.f32.mrf.mxu3  ;;  %v419_v28 = vadd.f32 %v847_v15, %v418_v20 }
  0xb9   :  { %v474_v30 = vadd.f32 %v473_v26, %v455_v25  ;;  %v438_v35 = vadd.f32 %v437_v21, %v419_v28 }
  0xbe   :  { %v456_v31 = vpop.f32.mrf.mxu2  ;;  %v487_v32 = vpop.f32.mrf.mxu0 }
  0xbf   :  { %v492_v33 = vpop.f32.mrf.mxu1  ;;  %v488_v36 = vadd.f32 %v487_v32, %v469_v29  ;;  %v457_v39 = vadd.f32 %v456_v31, %v438_v35  ;;  %v475_v42 = vpop.f32.mrf.mxu3 }
  0xc0   :  { %v1067_v37 = vadd.f32 %v492_v33, %v474_v30 }
  0xc1   :  { %v785_v40 = vmul.f32 -1.442695, %v488_v36  ;;  %v476_v44 = vadd.f32 %v475_v42, %v457_v39 }
  0xc2   :  { %v787_v41 = vmul.f32 -1.442695, %v1067_v37 }
  0xc3   :  { %848 = vpow2.f32 %v785_v40 }
  0xc4   :  { %850 = vpow2.f32 %v787_v41 }
  0xc6   :  { %v489_v45 = vpop.f32.mrf.mxu0 }
  0xc7   :  { %v494_v46 = vpop.f32.mrf.mxu1  ;;  %v1070_v47 = vadd.f32 %v489_v45, %v471_v43 }
  0xc8   :  { %v1072_v48 = vadd.f32 %v494_v46, %v476_v44 }
  0xc9   :  { %v849_v49 = vpop.eup %848  ;;  %v786_v50 = vmul.f32 -1.442695, %v1070_v47 }
  0xca   :  { %v851_v51 = vpop.eup %850  ;;  %v509_v52 = vadd.f32 1.0, %v849_v49  ;;  %v788_v53 = vmul.f32 -1.442695, %v1072_v48 }
  0xcb   :  { %v511_v54 = vadd.f32 1.0, %v851_v51  ;;  %852 = vpow2.f32 %v786_v50 }
  0xcc   :  { %854 = vrcp.f32 %v509_v52  ;;  %v522_v0 = vand.u32 2147483647, %v509_v52  ;;  %v524_v1 = vand.u32 2147483648, %v509_v52  ;;  %vm518_vm2 = vweird.f32 %v509_v52 }
  0xcd   :  { %856 = vrcp.f32 %v511_v54  ;;  %v554_v4 = vand.u32 2147483648, %v511_v54  ;;  %v552_v6 = vand.u32 2147483647, %v511_v54  ;;  %vm548_vm4 = vweird.f32 %v511_v54 }
  0xce   :  { %858 = vpow2.f32 %v788_v53  ;;  %v525_v9 = vor.u32 1.1754944e-38, %v524_v1  ;;  %vm523_vm5 = vcmp.eq.f32.partialorder %v522_v0, 8.507059e+37 }
  0xcf   :  { %v555_v12 = vor.u32 1.1754944e-38, %v554_v4  ;;  %vm553_vm7 = vcmp.eq.f32.partialorder %v552_v6, 8.507059e+37 }
  0xd1   :  { %v853_v55 = vpop.eup %852 }
  0xd2   :  { %v855_v56 = vpop.eup %854  ;;  %v510_v57 = vadd.f32 1.0, %v853_v55 }
  0xd3   :  { %v857_v58 = vpop.eup %856  ;;  %v514_v59 = vmul.f32 %v855_v56, %v509_v52  ;;  %vm519_vm0 = vweird.f32 %v855_v56 }
  0xd4   :  { %v859_v60 = vpop.eup %858  ;;  %v544_v61 = vmul.f32 %v857_v58, %v511_v54  ;;  %860 = vrcp.f32 %v510_v57  ;;  %vm549_vm1 = vweird.f32 %v857_v58  ;;  %vm520_vm3 = vmor %vm518_vm2, %vm519_vm0  ;;  %v539_v21 = vand.u32 2147483648, %v510_v57 }
  0xd5   :  { %v515_v62 = vsub.f32 1.0, %v514_v59  ;;  %v512_v63 = vadd.f32 1.0, %v859_v60  ;;  %vm550_vm6 = vmor %vm548_vm4, %vm549_vm1  ;;  %v537_v24 = vand.u32 2147483647, %v510_v57  ;;  %vm533_vm9 = vweird.f32 %v510_v57 }
  0xd6   :  { %v545_v2 = vsub.f32 1.0, %v544_v61  ;;  %v540_v28 = vor.u32 1.1754944e-38, %v539_v21 }
  0xd7   :  { %v516_v3 = vmul.f32 %v855_v56, %v515_v62  ;;  %862 = vrcp.f32 %v512_v63  ;;  %v569_v27 = vand.u32 2147483648, %v512_v63  ;;  %v567_v30 = vand.u32 2147483647, %v512_v63 }
  0xd8   :  { %v546_v5 = vmul.f32 %v857_v58, %v545_v2  ;;  %vm538_vm12 = vcmp.eq.f32.partialorder %v537_v24, 8.507059e+37  ;;  %vm563_vm13 = vweird.f32 %v512_v63 }
  0xd9   :  { %v517_v7 = vadd.f32 %v855_v56, %v516_v3  ;;  %v570_v35 = vor.u32 1.1754944e-38, %v569_v27  ;;  %vm568_vm15 = vcmp.eq.f32.partialorder %v567_v30, 8.507059e+37 }
  0xda   :  { %v861_v8 = vpop.eup %860  ;;  %v547_v10 = vadd.f32 %v857_v58, %v546_v5 }
  0xdb   :  { %v521_v11 = vsel %vm520_vm3, %v855_v56, %v517_v7  ;;  %v529_v13 = vmul.f32 %v861_v8, %v510_v57  ;;  %vm534_vm8 = vweird.f32 %v861_v8 }
  0xdc   :  { %v526_v14 = vsel %vm523_vm5, %v525_v9, %v521_v11  ;;  %v551_v15 = vsel %vm550_vm6, %v857_v58, %v547_v10  ;;  %vm535_vm10 = vmor %vm533_vm9, %vm534_vm8 }
  0xdd   :  { %v863_v16 = vpop.eup %862  ;;  %v573_v17 = vmul.f32 %v526_v14, %v488_v36  ;;  %v556_v18 = vsel %vm553_vm7, %v555_v12, %v551_v15  ;;  %v530_v19 = vsub.f32 1.0, %v529_v13 }
  0xde   :  { %v575_v20 = vmul.f32 %v556_v18, %v1067_v37  ;;  %v559_v22 = vmul.f32 %v863_v16, %v512_v63  ;;  %vm564_vm11 = vweird.f32 %v863_v16 }
  0xdf   :  { %577 = vst [vmem:[%s1094_s3] sm:$0xff] %v573_v17  ;;  %v531_v23 = vmul.f32 %v861_v8, %v530_v19  ;;  %vm565_vm14 = vmor %vm563_vm13, %vm564_vm11 }
  0xe0   :  { %579 = vst [vmem:[%s1094_s3 + $0x10] sm:$0xff] %v575_v20  ;;  %v560_v25 = vsub.f32 1.0, %v559_v22 }
  0xe1   :  { %v532_v26 = vadd.f32 %v861_v8, %v531_v23 }
  0xe2   :  { %v561_v29 = vmul.f32 %v863_v16, %v560_v25 }
  0xe3   :  { %v536_v31 = vsel %vm535_vm10, %v861_v8, %v532_v26 }
  0xe4   :  { %v541_v32 = vsel %vm538_vm12, %v540_v28, %v536_v31  ;;  %v562_v33 = vadd.f32 %v863_v16, %v561_v29 }
  0xe5   :  { %v574_v34 = vmul.f32 %v541_v32, %v1070_v47 }
  0xe6   :  { %v566_v36 = vsel %vm565_vm14, %v863_v16, %v562_v33 }
  0xe7   :  { %578 = vst [vmem:[%s1094_s3 + $0x8] sm:$0xff] %v574_v34  ;;  %v571_v37 = vsel %vm568_vm15, %v570_v35, %v566_v36 }
  0xe8   :  { %v576_v38 = vmul.f32 %v571_v37, %v1072_v48 }
  0xea   :  { %580 = vst [vmem:[%s1094_s3 + $0x18] sm:$0xff] %v576_v38 }

// kernel: forward.128
= control target key start
LH: loop header
LB: loop body
LE: loop exit
PB: predicated region body
PF: predicated region fallthrough
CT: control target
= control target key end

     0   :  { %s523_s12 = smov 0   ;;  %s525_s13 = smov 0   ;;  %s567_s0 = inlined_call_operand.vmem [shape: f32[2,16,128], index: 0, kind: input, shape index: {}]   ;;  %s568_s1 = inlined_call_operand.vmem [shape: f32[2,1,128], index: 1, kind: input, shape index: {}]   ;;  %s569_s2 = inlined_call_operand.vmem [shape: f32[2,16,128], index: 2, kind: input, shape index: {}]   ;;  %s570_s3 = inlined_call_operand.vmem [shape: f32[2,16,128], index: 3, kind: output, shape index: {}]  }
   0x1   :  { %s527_s14 = smov 0  }
   0x2 LB: > { %s25_s15 = sadd.s32 1, %s497_s13  ;;  %p432_p0 = scmp.ge.s32.totalorder %s501_s14, 1  ;;  %s501_s14 = sphi %s527_s14, %s13_s14   ;;  %s497_s13 = sphi %s525_s13, %s572_s13   ;;  %s493_s12 = sphi %s523_s12, %s571_s12  }
   0x3   : > { %p27_p1 = scmp.ge.s32.totalorder %s25_s15, 2  ;;  %p183_p2 = scmp.lt.s32.totalorder %s501_s14, 3 }
   0x5   : > { %s574_s15 = smov (%p27_p1, %s25_s15), 0  ;;  %p184_p3 = pnand %p432_p0, %p183_p2 }
   0x6   : > { %p228_p4 = scmp.lt.s32.totalorder (!%p184_p3), %s493_s12, 1 }
   0x7   : > { %187 = sbr.rel (%p184_p3) target bundleno = 52 (0x34), region = 32 }
   0xc   : > { %s576_s12 = smov (!%p228_p4, %s493_s12), 1 }
   0xd   : > { %s541_s16 = sshll.u32 %s576_s12, 4  ;;  %s239_s19 = scalar_lea.vmem %s568_s1, %s576_s12 }
   0xe   : > { %s235_s22 = scalar_lea.vmem %s567_s0, %s541_s16  ;;  %s248_s25 = scalar_lea.vmem %s569_s2, %s541_s16  ;;  %v470_v0 = vld [vmem:[%s239_s19] ss:$0 sm:$0xff] }
   0xf   : > { %v260_v1 = vld [vmem:[%s235_s22] sm:$0xff]  ;;  %v261_v2 = vld [vmem:[%s235_s22 + $0x8] sm:$0xff]  ;;  %s258_s28 = scalar_lea.vmem %s570_s3, %s541_s16 }
  0x10   : > { %v268_v3 = vld [vmem:[%s248_s25] sm:$0xff]  ;;  %v266_v4 = vmul.f32 %v470_v0, %v260_v1  ;;  %v267_v5 = vmul.f32 %v470_v0, %v261_v2  ;;  %v269_v6 = vld [vmem:[%s248_s25 + $0x8] sm:$0xff] }
  0x12   : > { %v270_v7 = vadd.f32 %v268_v3, %v266_v4  ;;  %v271_v8 = vadd.f32 %v269_v6, %v267_v5 }
  0x14   : > { %v439_v9 = vmul.f32 -1.442695, %v270_v7  ;;  %v440_v10 = vmul.f32 -1.442695, %v271_v8 }
  0x16   : > { %471 = vpow2.f32 %v439_v9 }
  0x17   : > { %473 = vpow2.f32 %v440_v10 }
  0x1c   : > { %v472_v11 = vpop.eup %471 }
  0x1d   : > { %v474_v12 = vpop.eup %473  ;;  %v278_v13 = vadd.f32 1.0, %v472_v11 }
  0x1e   : > { %v279_v14 = vadd.f32 1.0, %v474_v12 }
  0x1f   : > { %475 = vrcp.f32 %v278_v13  ;;  %vm285_vm0 = vweird.f32 %v278_v13  ;;  %v291_v18 = vand.u32 2147483648, %v278_v13  ;;  %v289_v21 = vand.u32 2147483647, %v278_v13 }
  0x20   : > { %477 = vrcp.f32 %v279_v14  ;;  %v306_v22 = vand.u32 2147483648, %v279_v14  ;;  %vm300_vm2 = vweird.f32 %v279_v14  ;;  %v304_v24 = vand.u32 2147483647, %v279_v14 }
  0x21   : > { %v292_v26 = vor.u32 1.1754944e-38, %v291_v18  ;;  %vm290_vm5 = vcmp.eq.f32.partialorder %v289_v21, 8.507059e+37 }
  0x22   : > { %v307_v29 = vor.u32 1.1754944e-38, %v306_v22  ;;  %vm305_vm7 = vcmp.eq.f32.partialorder %v304_v24, 8.507059e+37 }
  0x25   : > { %v476_v15 = vpop.eup %475 }
  0x26   : > { %v478_v16 = vpop.eup %477  ;;  %v281_v17 = vmul.f32 %v476_v15, %v278_v13  ;;  %vm286_vm1 = vweird.f32 %v476_v15 }
  0x27   : > { %v296_v19 = vmul.f32 %v478_v16, %v279_v14  ;;  %vm301_vm3 = vweird.f32 %v478_v16  ;;  %vm287_vm4 = vmor %vm285_vm0, %vm286_vm1 }
  0x28   : > { %v282_v20 = vsub.f32 1.0, %v281_v17  ;;  %vm302_vm6 = vmor %vm300_vm2, %vm301_vm3 }
  0x29   : > { %v297_v23 = vsub.f32 1.0, %v296_v19 }
  0x2a   : > { %v283_v25 = vmul.f32 %v476_v15, %v282_v20 }
  0x2b   : > { %v298_v27 = vmul.f32 %v478_v16, %v297_v23 }
  0x2c   : > { %v284_v28 = vadd.f32 %v476_v15, %v283_v25 }
  0x2d   : > { %v299_v30 = vadd.f32 %v478_v16, %v298_v27 }
  0x2e   : > { %v288_v31 = vsel %vm287_vm4, %v476_v15, %v284_v28 }
  0x2f   : > { %v293_v32 = vsel %vm290_vm5, %v292_v26, %v288_v31  ;;  %v303_v33 = vsel %vm302_vm6, %v478_v16, %v299_v30 }
  0x30   : > { %v310_v34 = vmul.f32 %v293_v32, %v270_v7  ;;  %v308_v35 = vsel %vm305_vm7, %v307_v29, %v303_v33 }
  0x31   : > { %v311_v36 = vmul.f32 %v308_v35, %v271_v8 }
  0x32   : > { %312 = vst [vmem:[%s258_s28] sm:$0xff] %v310_v34 }
  0x33   : > { %313 = vst [vmem:[%s258_s28 + $0x8] sm:$0xff] %v311_v36 }
  0x34 PF: > { %s13_s14 = sadd.s32 1, %s501_s14   ;;  %s571_s12 = smov %s497_s13 }
  0x35   : > { %p10_p5 = scmp.ge.s32.totalorder %s13_s14, 4   ;;  %s572_s13 = smov %s574_s15 }
  0x37   :  { %12 = sbr.rel (!%p10_p5) target bundleno = 2 (0x2), region = 68 }

// kernel: forward.148
= control target key start
LH: loop header
LB: loop body
LE: loop exit
PB: predicated region body
PF: predicated region fallthrough
CT: control target
= control target key end

     0   :  { %s450_s12 = smov 0   ;;  %s452_s13 = smov 0   ;;  %s494_s0 = inlined_call_operand.vmem [shape: f32[2,8,128], index: 0, kind: input, shape index: {}]   ;;  %s495_s1 = inlined_call_operand.vmem [shape: f32[2,1,128], index: 1, kind: input, shape index: {}]   ;;  %s496_s2 = inlined_call_operand.vmem [shape: f32[2,8,128], index: 2, kind: input, shape index: {}]   ;;  %s497_s3 = inlined_call_operand.vmem [shape: f32[2,8,128], index: 3, kind: output, shape index: {}]  }
   0x1   :  { %s454_s14 = smov 0  }
   0x2 LB: > { %s25_s15 = sadd.s32 1, %s424_s13  ;;  %p370_p0 = scmp.ge.s32.totalorder %s428_s14, 1  ;;  %s428_s14 = sphi %s454_s14, %s13_s14   ;;  %s424_s13 = sphi %s452_s13, %s499_s13   ;;  %s420_s12 = sphi %s450_s12, %s498_s12  }
   0x3   : > { %p27_p1 = scmp.ge.s32.totalorder %s25_s15, 2  ;;  %p177_p2 = scmp.lt.s32.totalorder %s428_s14, 3 }
   0x5   : > { %s501_s15 = smov (%p27_p1, %s25_s15), 0  ;;  %p178_p3 = pnand %p370_p0, %p177_p2 }
   0x6   : > { %p215_p4 = scmp.lt.s32.totalorder (!%p178_p3), %s420_s12, 1 }
   0x7   : > { %181 = sbr.rel (%p178_p3) target bundleno = 51 (0x33), region = 32 }
   0xc   : > { %s503_s12 = smov (!%p215_p4, %s420_s12), 1 }
   0xd   : > { %s468_s16 = sshll.u32 %s503_s12, 3  ;;  %s224_s19 = scalar_lea.vmem %s495_s1, %s503_s12 }
   0xe   : > { %s221_s22 = scalar_lea.vmem %s494_s0, %s468_s16  ;;  %s231_s25 = scalar_lea.vmem %s496_s2, %s468_s16  ;;  %v401_v0 = vld [vmem:[%s224_s19] ss:$0 sm:$0xff] }
   0xf   : > { %v239_v1 = vld [vmem:[%s221_s22] sm:$0xff]  ;;  %s238_s28 = scalar_lea.vmem %s497_s3, %s468_s16 }
  0x10   : > { %v245_v2 = vld [vmem:[%s231_s25] sm:$0xff]  ;;  %v244_v3 = vmul.f32 %v401_v0, %v239_v1 }
  0x12   : > { %v246_v4 = vadd.f32 %v245_v2, %v244_v3 }
  0x14   : > { %v374_v5 = vmul.f32 -1.442695, %v246_v4 }
  0x16   : > { %402 = vpow2.f32 %v374_v5 }
  0x1c   : > { %v403_v6 = vpop.eup %402 }
  0x1d   : > { %v250_v7 = vadd.f32 1.0, %v403_v6 }
  0x1f   : > { %404 = vrcp.f32 %v250_v7  ;;  %v262_v10 = vand.u32 2147483648, %v250_v7  ;;  %vm256_vm0 = vweird.f32 %v250_v7  ;;  %v260_v12 = vand.u32 2147483647, %v250_v7 }
  0x21   : > { %v263_v14 = vor.u32 1.1754944e-38, %v262_v10  ;;  %vm261_vm3 = vcmp.eq.f32.partialorder %v260_v12, 8.507059e+37 }
  0x25   : > { %v405_v8 = vpop.eup %404 }
  0x26   : > { %v252_v9 = vmul.f32 %v405_v8, %v250_v7  ;;  %vm257_vm1 = vweird.f32 %v405_v8 }
  0x27   : > { %vm258_vm2 = vmor %vm256_vm0, %vm257_vm1 }
  0x28   : > { %v253_v11 = vsub.f32 1.0, %v252_v9 }
  0x2a   : > { %v254_v13 = vmul.f32 %v405_v8, %v253_v11 }
  0x2c   : > { %v255_v15 = vadd.f32 %v405_v8, %v254_v13 }
  0x2e   : > { %v259_v16 = vsel %vm258_vm2, %v405_v8, %v255_v15 }
  0x2f   : > { %v264_v17 = vsel %vm261_vm3, %v263_v14, %v259_v16 }
  0x30   : > { %v266_v18 = vmul.f32 %v264_v17, %v246_v4 }
  0x32   : > { %267 = vst [vmem:[%s238_s28] sm:$0xff] %v266_v18 }
  0x33 PF: > { %s13_s14 = sadd.s32 1, %s428_s14   ;;  %s498_s12 = smov %s424_s13 }
  0x34   : > { %p10_p5 = scmp.ge.s32.totalorder %s13_s14, 4   ;;  %s499_s13 = smov %s501_s15 }
  0x36   :  { %12 = sbr.rel (!%p10_p5) target bundleno = 2 (0x2), region = 68 }

// kernel: forward.147
= control target key start
LH: loop header
LB: loop body
LE: loop exit
PB: predicated region body
PF: predicated region fallthrough
CT: control target
= control target key end

     0   :  { %s612_s21 = smov 0   ;;  %s614_s22 = smov 0   ;;  %s755_s0 = inlined_call_operand.vmem [shape: f32[2,8,128], index: 0, kind: input, shape index: {}]   ;;  %s756_s1 = inlined_call_operand.vmem [shape: f32[2,1,1], index: 1, kind: input, shape index: {}]   ;;  %s757_s2 = inlined_call_operand.vmem [shape: f32[128,128], index: 2, kind: input, shape index: {}]   ;;  %s758_s3 = inlined_call_operand.vmem [shape: f32[1,128], index: 3, kind: input, shape index: {}]   ;;  %s759_s4 = inlined_call_operand.vmem [shape: f32[128,128], index: 4, kind: input, shape index: {}]   ;;  %s760_s5 = inlined_call_operand.vmem [shape: f32[1,128], index: 5, kind: input, shape index: {}]   ;;  %s761_s6 = inlined_call_operand.vmem [shape: f32[2,1,128], index: 6, kind: output, shape index: {}]  }
   0x1   :  { %s616_s23 = smov 0  }
   0x2 LB: > { %s28_s24 = sadd.s32 1, %s569_s22  ;;  %p508_p0 = scmp.ge.s32.totalorder %s573_s23, 1  ;;  %s573_s23 = sphi %s616_s23, %s16_s23   ;;  %s569_s22 = sphi %s614_s22, %s763_s22   ;;  %s565_s21 = sphi %s612_s21, %s762_s21  }
   0x3   : > { %p30_p1 = scmp.ge.s32.totalorder %s28_s24, 2  ;;  %p236_p2 = scmp.lt.s32.totalorder %s573_s23, 3 }
   0x5   : > { %s765_s24 = smov (%p30_p1, %s28_s24), 0  ;;  %p237_p3 = pnand %p508_p0, %p236_p2 }
   0x6   : > { %p269_p4 = scmp.lt.s32.totalorder (!%p237_p3), %s565_s21, 1 }
   0x7   : > { %240 = sbr.rel (%p237_p3) target bundleno = 466 (0x1d2), region = 44 }
   0xc   : > { %v338_v0 = vld [vmem:[%s757_s2 + $0x78] sm:$0xff]  ;;  %v337_v1 = vld [vmem:[%s757_s2 + $0x70] sm:$0xff]  ;;  %v575_v2 = vmov 0   ;;  %v576_v3 = vmov 0.0   ;;  %s767_s21 = smov (!%p269_p4, %s565_s21), 1  ;;  %v336_v4 = vld [vmem:[%s757_s2 + $0x68] sm:$0xff] }
   0xd   : > { %540 = vset.pattern.permute.xlu0 %v575_v2  ;;  %286 = vst [vmem:[#allocation2] sm:$0x1] %v576_v3  ;;  %340 = vmatpush.msra.mxu0 %v338_v0  ;;  %s278_s9 = scalar_lea.vmem %s756_s1, %s767_s21  ;;  %v335_v5 = vld [vmem:[%s757_s2 + $0x60] sm:$0xff]  ;;  %s509_s12 = sshll.u32 %s767_s21, 3  ;;  %v334_v7 = vld [vmem:[%s757_s2 + $0x58] sm:$0xff]  ;;  %v333_v17 = vld [vmem:[%s757_s2 + $0x50] sm:$0xff] }
   0xe   : > { %v301_v6 = vld [vmem:[%s278_s9] sm:$0x1]  ;;  %s275_s15 = scalar_lea.vmem %s755_s0, %s509_s12  ;;  %v332_v18 = vld [vmem:[%s757_s2 + $0x48] sm:$0xff]  ;;  %v330_v20 = vld [vmem:[%s757_s2 + $0x38] sm:$0xff]  ;;  %s281_s18 = scalar_lea.vmem %s761_s6, %s767_s21 }
   0xf   : > { %341 = vmatpush.msra.mxu0 %v337_v1  ;;  %304 = vperm.xlu0 %540, %v301_v6   ;;  %v288_v8 = vld [vmem:[%s275_s15] sm:$0xff]  ;;  %v329_v21 = vld [vmem:[%s757_s2 + $0x30] sm:$0xff]  ;;  %v328_v22 = vld [vmem:[%s757_s2 + $0x28] sm:$0xff] }
  0x10   : > { %v289_v9 = vrot.slane %v288_v8, 4  ;;  %v331_v19 = vld [vmem:[%s757_s2 + $0x40] sm:$0xff]  ;;  %v326_v24 = vld [vmem:[%s757_s2 + $0x18] sm:$0xff]  ;;  %v325_v25 = vld [vmem:[%s757_s2 + $0x10] sm:$0xff] }
  0x11   : > { %342 = vmatpush.msra.mxu0 %v336_v4  ;;  %v327_v23 = vld [vmem:[%s757_s2 + $0x20] sm:$0xff]  ;;  %v324_v26 = vld [vmem:[%s757_s2 + $0x8] sm:$0xff]  ;;  %v395_v42 = vld [vmem:[%s759_s4 + $0x78] sm:$0xff] }
  0x12   : > { %v290_v10 = vadd.f32 %v289_v9, %v288_v8  ;;  %v323_v27 = vld [vmem:[%s757_s2] sm:$0xff]  ;;  %397 = vmatpush.msra.mxu1 %v395_v42  ;;  %v394_v43 = vld [vmem:[%s759_s4 + $0x70] sm:$0xff]  ;;  %v393_v44 = vld [vmem:[%s759_s4 + $0x68] sm:$0xff] }
  0x13   : > { %343 = vmatpush.msra.mxu0 %v335_v5  ;;  %v392_v45 = vld [vmem:[%s759_s4 + $0x60] sm:$0xff]  ;;  %v391_v46 = vld [vmem:[%s759_s4 + $0x58] sm:$0xff]  ;;  %v390_v47 = vld [vmem:[%s759_s4 + $0x50] sm:$0xff] }
  0x14   : > { %v291_v11 = vrot.slane %v290_v10, 2  ;;  %v287_v14 = vld [vmem:[#allocation2] sm:$0x1]  ;;  %398 = vmatpush.msra.mxu1 %v394_v43  ;;  %v389_v48 = vld [vmem:[%s759_s4 + $0x48] sm:$0xff]  ;;  %v387_v50 = vld [vmem:[%s759_s4 + $0x38] sm:$0xff] }
  0x15   : > { %344 = vmatpush.msra.mxu0 %v334_v7  ;;  %v388_v49 = vld [vmem:[%s759_s4 + $0x40] sm:$0xff]  ;;  %v386_v51 = vld [vmem:[%s759_s4 + $0x30] sm:$0xff]  ;;  %v385_v52 = vld [vmem:[%s759_s4 + $0x28] sm:$0xff] }
  0x16   : > { %v292_v12 = vadd.f32 %v291_v11, %v290_v10  ;;  %399 = vmatpush.msra.mxu1 %v393_v44  ;;  %v384_v53 = vld [vmem:[%s759_s4 + $0x20] sm:$0xff]  ;;  %v383_v54 = vld [vmem:[%s759_s4 + $0x18] sm:$0xff]  ;;  %v382_v55 = vld [vmem:[%s759_s4 + $0x10] sm:$0xff] }
  0x17   : > { %345 = vmatpush.msra.mxu0 %v333_v17  ;;  %v381_v56 = vld [vmem:[%s759_s4 + $0x8] sm:$0xff]  ;;  %v380_v57 = vld [vmem:[%s759_s4] sm:$0xff] }
  0x18   : > { %v293_v13 = vrot.slane %v292_v12, 1  ;;  %400 = vmatpush.msra.mxu1 %v392_v45  ;;  %v339_v58 = vld [vmem:[%s758_s3] sm:$0x1] }
  0x19   : > { %346 = vmatpush.msra.mxu0 %v332_v18  ;;  %v396_v11 = vld [vmem:[%s760_s5] sm:$0x1] }
  0x1a   : > { %v294_v15 = vadd.f32 %v293_v13, %v292_v12  ;;  %401 = vmatpush.msra.mxu1 %v391_v46 }
  0x1b   : > { %347 = vmatpush.msra.mxu0 %v331_v19 }
  0x1c   : > { %v295_v16 = vadd.f32 %v294_v15, %v287_v14  ;;  %402 = vmatpush.msra.mxu1 %v390_v47 }
  0x1d   : > { %348 = vmatpush.msra.mxu0 %v330_v20 }
  0x1e   : > { %296 = vst [vmem:[#allocation2] sm:$0x1] %v295_v16  ;;  %403 = vmatpush.msra.mxu1 %v389_v48 }
  0x1f   : > { %349 = vmatpush.msra.mxu0 %v329_v21 }
  0x20   : > { %404 = vmatpush.msra.mxu1 %v388_v49 }
  0x21   : > { %350 = vmatpush.msra.mxu0 %v328_v22 }
  0x22   : > { %405 = vmatpush.msra.mxu1 %v387_v50 }
  0x23   : > { %351 = vmatpush.msra.mxu0 %v327_v23 }
  0x24   : > { %406 = vmatpush.msra.mxu1 %v386_v51 }
  0x25   : > { %352 = vmatpush.msra.mxu0 %v326_v24  ;;  %v300_v37 = vld [vmem:[#allocation2] sm:$0x1] }
  0x26   : > { %407 = vmatpush.msra.mxu1 %v385_v52 }
  0x27   : > { %353 = vmatpush.msra.mxu0 %v325_v25 }
  0x28   : > { %408 = vmatpush.msra.mxu1 %v384_v53 }
  0x29   : > { %354 = vmatpush.msra.mxu0 %v324_v26 }
  0x2a   : > { %409 = vmatpush.msra.mxu1 %v383_v54 }
  0x2b   : > { %355 = vmatpush.msra.mxu0 %v323_v27 }
  0x2c   : > { %410 = vmatpush.msra.mxu1 %v382_v55 }
  0x2e   : > { %411 = vmatpush.msra.mxu1 %v381_v56 }
  0x30   : > { %412 = vmatpush.msra.mxu1 %v380_v57 }
  0x81   : > { %v305_v28 = vpop.permute.xlu0 %304 }
  0x82   : > { %v307_v29 = vperm.slane %v305_v28, 0 }
  0x84   : > { %541 = vrcp.f32 %v307_v29  ;;  %v319_v33 = vand.u32 2147483648, %v307_v29  ;;  %v317_v35 = vand.u32 2147483647, %v307_v29  ;;  %vm313_vm1 = vweird.f32 %v307_v29 }
  0x86   : > { %v320_v38 = vor.u32 1.1754944e-38, %v319_v33  ;;  %vm318_vm3 = vcmp.eq.f32.partialorder %v317_v35, 8.507059e+37 }
  0x8a   : > { %v542_v30 = vpop.eup %541 }
  0x8b   : > { %v309_v31 = vmul.f32 %v542_v30, %v307_v29  ;;  %vm314_vm0 = vweird.f32 %v542_v30 }
  0x8c   : > { %vm315_vm2 = vmor %vm313_vm1, %vm314_vm0 }
  0x8d   : > { %v310_v32 = vsub.f32 1.0, %v309_v31 }
  0x8f   : > { %v311_v34 = vmul.f32 %v542_v30, %v310_v32 }
  0x91   : > { %v312_v36 = vadd.f32 %v542_v30, %v311_v34 }
  0x93   : > { %v316_v39 = vsel %vm315_vm2, %v542_v30, %v312_v36 }
  0x94   : > { %v321_v40 = vsel %vm318_vm3, %v320_v38, %v316_v39 }
  0x95   : > { %v322_v41 = vmul.f32 %v321_v40, %v300_v37 }
  0x97   : > { %356 = vmatmul.f32.vlgmr.msra.gmra.mxu0 %v322_v41 }
 0x114   : > { %v357_v59 = vpop.f32.mrf.mxu0 }
 0x115   : > { %v358_v60 = vadd.f32 %v357_v59, %v339_v58 }
 0x117   : > { %v510_v61 = vmul.f32 -1.442695, %v358_v60 }
 0x119   : > { %543 = vpow2.f32 %v510_v61 }
 0x11f   : > { %v544_v62 = vpop.eup %543 }
 0x120   : > { %v363_v63 = vadd.f32 1.0, %v544_v62 }
 0x122   : > { %545 = vrcp.f32 %v363_v63  ;;  %v375_v3 = vand.u32 2147483648, %v363_v63  ;;  %v373_v5 = vand.u32 2147483647, %v363_v63  ;;  %vm369_vm5 = vweird.f32 %v363_v63 }
 0x124   : > { %v376_v7 = vor.u32 1.1754944e-38, %v375_v3  ;;  %vm374_vm7 = vcmp.eq.f32.partialorder %v373_v5, 8.507059e+37 }
 0x128   : > { %v546_v0 = vpop.eup %545 }
 0x129   : > { %v365_v1 = vmul.f32 %v546_v0, %v363_v63  ;;  %vm370_vm4 = vweird.f32 %v546_v0 }
 0x12a   : > { %vm371_vm6 = vmor %vm369_vm5, %vm370_vm4 }
 0x12b   : > { %v366_v2 = vsub.f32 1.0, %v365_v1 }
 0x12d   : > { %v367_v4 = vmul.f32 %v546_v0, %v366_v2 }
 0x12f   : > { %v368_v6 = vadd.f32 %v546_v0, %v367_v4 }
 0x131   : > { %v372_v8 = vsel %vm371_vm6, %v546_v0, %v368_v6 }
 0x132   : > { %v377_v9 = vsel %vm374_vm7, %v376_v7, %v372_v8 }
 0x133   : > { %v379_v10 = vmul.f32 %v377_v9, %v358_v60 }
 0x135   : > { %413 = vmatmul.f32.vlgmr.msra.gmra.mxu1 %v379_v10 }
 0x1b2   : > { %v414_v12 = vpop.f32.mrf.mxu1 }
 0x1b3   : > { %v415_v13 = vadd.f32 %v414_v12, %v396_v11 }
 0x1b5   : > { %v511_v14 = vmul.f32 -1.442695, %v415_v13 }
 0x1b7   : > { %547 = vpow2.f32 %v511_v14 }
 0x1bd   : > { %v548_v15 = vpop.eup %547 }
 0x1be   : > { %v420_v16 = vadd.f32 1.0, %v548_v15 }
 0x1c0   : > { %549 = vrcp.f32 %v420_v16  ;;  %v432_v20 = vand.u32 2147483648, %v420_v16  ;;  %v430_v22 = vand.u32 2147483647, %v420_v16  ;;  %vm426_vm9 = vweird.f32 %v420_v16 }
 0x1c2   : > { %v433_v24 = vor.u32 1.1754944e-38, %v432_v20  ;;  %vm431_vm11 = vcmp.eq.f32.partialorder %v430_v22, 8.507059e+37 }
 0x1c6   : > { %v550_v17 = vpop.eup %549 }
 0x1c7   : > { %v422_v18 = vmul.f32 %v550_v17, %v420_v16  ;;  %vm427_vm8 = vweird.f32 %v550_v17 }
 0x1c8   : > { %vm428_vm10 = vmor %vm426_vm9, %vm427_vm8 }
 0x1c9   : > { %v423_v19 = vsub.f32 1.0, %v422_v18 }
 0x1cb   : > { %v424_v21 = vmul.f32 %v550_v17, %v423_v19 }
 0x1cd   : > { %v425_v23 = vadd.f32 %v550_v17, %v424_v21 }
 0x1cf   : > { %v429_v25 = vsel %vm428_vm10, %v550_v17, %v425_v23 }
 0x1d0   : > { %v434_v26 = vsel %vm431_vm11, %v433_v24, %v429_v25 }
 0x1d1   : > { %436 = vst [vmem:[%s281_s18] sm:$0x1] %v434_v26 }
 0x1d2 PF: > { %s16_s23 = sadd.s32 1, %s573_s23   ;;  %s762_s21 = smov %s569_s22 }
 0x1d3   : > { %p13_p5 = scmp.ge.s32.totalorder %s16_s23, 4   ;;  %s763_s22 = smov %s765_s24 }
 0x1d5   :  { %15 = sbr.rel (!%p13_p5) target bundleno = 2 (0x2), region = 85 }

// kernel: forward.146
= control target key start
LH: loop header
LB: loop body
LE: loop exit
PB: predicated region body
PF: predicated region fallthrough
CT: control target
= control target key end

     0   :  { %s851_s1 = inlined_call_operand.vmem [shape: bf16[640,128], index: 1, kind: input, shape index: {}]   ;;  %s852_s2 = inlined_call_operand.vmem [shape: f32[1,128], index: 2, kind: input, shape index: {}]   ;;  %s853_s0 = inlined_call_operand.vmem [shape: bf16[16,640], index: 0, kind: input, shape index: {}]   ;;  %s854_s3 = inlined_call_operand.vmem [shape: f32[16,128], index: 3, kind: output, shape index: {}]  }
   0x1   :  { %v638_v0 = vld [vmem:[%s851_s1 + $0x38] sm:$0xff]  ;;  %v637_v4 = vld [vmem:[%s851_s1 + $0x30] sm:$0xff]  ;;  %v636_v8 = vld [vmem:[%s851_s1 + $0x28] sm:$0xff] }
   0x2   :  { %v654_v1 = vld [vmem:[%s851_s1 + $0xb8] sm:$0xff]  ;;  %370 = vmatpush.bf16.msra.mxu0 %v638_v0  ;;  %v653_v5 = vld [vmem:[%s851_s1 + $0xb0] sm:$0xff]  ;;  %v652_v9 = vld [vmem:[%s851_s1 + $0xa8] sm:$0xff] }
   0x3   :  { %v662_v2 = vld [vmem:[%s851_s1 + $0xf8] sm:$0xff]  ;;  %398 = vmatpush.bf16.msra.mxu2 %v654_v1  ;;  %v661_v6 = vld [vmem:[%s851_s1 + $0xf0] sm:$0xff]  ;;  %v660_v10 = vld [vmem:[%s851_s1 + $0xe8] sm:$0xff] }
   0x4   :  { %v646_v3 = vld [vmem:[%s851_s1 + $0x78] sm:$0xff]  ;;  %412 = vmatpush.bf16.msra.mxu3 %v662_v2  ;;  %v645_v7 = vld [vmem:[%s851_s1 + $0x70] sm:$0xff]  ;;  %v644_v11 = vld [vmem:[%s851_s1 + $0x68] sm:$0xff] }
   0x5   :  { %384 = vmatpush.bf16.msra.mxu1 %v646_v3  ;;  %v635_v12 = vld [vmem:[%s851_s1 + $0x20] sm:$0xff]  ;;  %v634_v16 = vld [vmem:[%s851_s1 + $0x18] sm:$0xff]  ;;  %v633_v20 = vld [vmem:[%s851_s1 + $0x10] sm:$0xff] }
   0x6   :  { %371 = vmatpush.bf16.msra.mxu0 %v637_v4  ;;  %v651_v13 = vld [vmem:[%s851_s1 + $0xa0] sm:$0xff]  ;;  %v650_v17 = vld [vmem:[%s851_s1 + $0x98] sm:$0xff]  ;;  %v649_v21 = vld [vmem:[%s851_s1 + $0x90] sm:$0xff] }
   0x7   :  { %399 = vmatpush.bf16.msra.mxu2 %v653_v5  ;;  %v659_v14 = vld [vmem:[%s851_s1 + $0xe0] sm:$0xff]  ;;  %v658_v18 = vld [vmem:[%s851_s1 + $0xd8] sm:$0xff]  ;;  %v657_v22 = vld [vmem:[%s851_s1 + $0xd0] sm:$0xff] }
   0x8   :  { %413 = vmatpush.bf16.msra.mxu3 %v661_v6  ;;  %v643_v15 = vld [vmem:[%s851_s1 + $0x60] sm:$0xff]  ;;  %v642_v19 = vld [vmem:[%s851_s1 + $0x58] sm:$0xff]  ;;  %v641_v23 = vld [vmem:[%s851_s1 + $0x50] sm:$0xff] }
   0x9   :  { %385 = vmatpush.bf16.msra.mxu1 %v645_v7  ;;  %v632_v24 = vld [vmem:[%s851_s1 + $0x8] sm:$0xff]  ;;  %v631_v28 = vld [vmem:[%s851_s1] sm:$0xff]  ;;  %v670_v29 = vld [vmem:[%s851_s1 + $0x138] sm:$0xff] }
   0xa   :  { %372 = vmatpush.bf16.msra.mxu0 %v636_v8  ;;  %v648_v25 = vld [vmem:[%s851_s1 + $0x88] sm:$0xff]  ;;  %v647_v30 = vld [vmem:[%s851_s1 + $0x80] sm:$0xff]  ;;  %v629_v32 = vld [vmem:[%s853_s0 + $0x18] sm:$0xf0] }
   0xb   :  { %400 = vmatpush.bf16.msra.mxu2 %v652_v9  ;;  %v656_v26 = vld [vmem:[%s851_s1 + $0xc8] sm:$0xff]  ;;  %v448_v33 = vld [vmem:[%s853_s0] sm:$0xf]  ;;  %v628_v34 = vld [vmem:[%s853_s0 + $0x10] sm:$0xf0] }
   0xc   :  { %414 = vmatpush.bf16.msra.mxu3 %v660_v10  ;;  %v640_v27 = vld [vmem:[%s851_s1 + $0x48] sm:$0xff]  ;;  %v655_v35 = vld [vmem:[%s851_s1 + $0xc0] sm:$0xff]  ;;  %v450_v40 = vld [vmem:[%s853_s0 + $0x14] sm:$0xf0]  ;;  %v449_v42 = vor.u32 %v628_v34, %v448_v33 }
   0xd   :  { %386 = vmatpush.bf16.msra.mxu1 %v644_v11  ;;  %v456_v31 = vld [vmem:[%s853_s0 + $0x8] sm:$0xf]  ;;  %v627_v36 = vld [vmem:[%s853_s0 + $0xc] sm:$0xf]  ;;  %v458_v37 = vld [vmem:[%s853_s0 + $0x1c] sm:$0xf0] }
   0xe   :  { %373 = vmatpush.bf16.msra.mxu0 %v635_v12  ;;  %v639_v38 = vld [vmem:[%s851_s1 + $0x40] sm:$0xff]  ;;  %v457_v41 = vor.u32 %v629_v32, %v456_v31  ;;  %v461_v43 = vor.u32 %v627_v36, %v458_v37  ;;  %v669_v44 = vld [vmem:[%s851_s1 + $0x130] sm:$0xff]  ;;  %v668_v46 = vld [vmem:[%s851_s1 + $0x128] sm:$0xff] }
   0xf   :  { %401 = vmatpush.bf16.msra.mxu2 %v651_v13  ;;  %v626_v39 = vld [vmem:[%s853_s0 + $0x4] sm:$0xf]  ;;  %v666_v48 = vld [vmem:[%s851_s1 + $0x118] sm:$0xff]  ;;  %v665_v49 = vld [vmem:[%s851_s1 + $0x110] sm:$0xff] }
  0x10   :  { %415 = vmatpush.bf16.msra.mxu3 %v659_v14  ;;  %v453_v45 = vor.u32 %v626_v39, %v450_v40  ;;  %v667_v47 = vld [vmem:[%s851_s1 + $0x120] sm:$0xff]  ;;  %v664_v50 = vld [vmem:[%s851_s1 + $0x108] sm:$0xff]  ;;  %v464_v52 = vld [vmem:[%s853_s0 + $0x10] sm:$0xf] }
  0x11   :  { %387 = vmatpush.bf16.msra.mxu1 %v643_v15  ;;  %v663_v51 = vld [vmem:[%s851_s1 + $0x100] sm:$0xff] }
  0x12   :  { %374 = vmatpush.bf16.msra.mxu0 %v634_v16  ;;  %v630_v53 = vld [vmem:[%s853_s0 + $0x20] sm:$0xf0]  ;;  %v671_v56 = vld [vmem:[%s852_s2] ss:$0 sm:$0xff] }
  0x13   :  { %402 = vmatpush.bf16.msra.mxu2 %v650_v17  ;;  %v465_v54 = vor.u32 %v630_v53, %v464_v52 }
  0x14   :  { %416 = vmatpush.bf16.msra.mxu3 %v658_v18 }
  0x15   :  { %388 = vmatpush.bf16.msra.mxu1 %v642_v19 }
  0x16   :  { %375 = vmatpush.bf16.msra.mxu0 %v633_v20 }
  0x17   :  { %403 = vmatpush.bf16.msra.mxu2 %v649_v21 }
  0x18   :  { %417 = vmatpush.bf16.msra.mxu3 %v657_v22 }
  0x19   :  { %389 = vmatpush.bf16.msra.mxu1 %v641_v23 }
  0x1a   :  { %376 = vmatpush.bf16.msra.mxu0 %v632_v24 }
  0x1b   :  { %404 = vmatpush.bf16.msra.mxu2 %v648_v25 }
  0x1c   :  { %418 = vmatpush.bf16.msra.mxu3 %v656_v26 }
  0x1d   :  { %390 = vmatpush.bf16.msra.mxu1 %v640_v27 }
  0x1e   :  { %377 = vmatpush.bf16.msra.mxu0 %v631_v28 }
  0x1f   :  { %405 = vmatpush.bf16.msra.mxu2 %v647_v30 }
  0x20   :  { %419 = vmatpush.bf16.msra.mxu3 %v655_v35 }
  0x21   :  { %391 = vmatpush.bf16.msra.mxu1 %v639_v38  ;;  %378 = vmatmul.bf16.vlgmr.msra.gmra.mxu0 %v449_v42 }
  0x22   :  { %426 = vmatpush.bf16.msrb.mxu0 %v670_v29  ;;  %406 = vmatmul.bf16.vlgmr.msra.gmra.mxu2 %v457_v41 }
  0x23   :  { %420 = vmatmul.bf16.vlgmr.msra.gmra.mxu3 %v461_v43 }
  0x24   :  { %392 = vmatmul.bf16.vlgmr.msra.gmra.mxu1 %v453_v45 }
  0x26   :  { %427 = vmatpush.bf16.msrb.mxu0 %v669_v44 }
  0x2a   :  { %428 = vmatpush.bf16.msrb.mxu0 %v668_v46 }
  0x2e   :  { %429 = vmatpush.bf16.msrb.mxu0 %v667_v47 }
  0x32   :  { %430 = vmatpush.bf16.msrb.mxu0 %v666_v48 }
  0x36   :  { %431 = vmatpush.bf16.msrb.mxu0 %v665_v49 }
  0x3a   :  { %432 = vmatpush.bf16.msrb.mxu0 %v664_v50 }
  0x3e   :  { %433 = vmatpush.bf16.msrb.mxu0 %v663_v51 }
  0x41   :  { %434 = vmatmul.bf16.vlgmr.msrb.gmra.mxu0 %v465_v54 }
  0x9e   :  { %v379_v55 = vpop.f32.mrf.mxu0 }
  0x9f   :  { %v380_v58 = vadd.f32 %v671_v56, %v379_v55 }
  0xa1   :  { %v393_v57 = vpop.f32.mrf.mxu1 }
  0xa2   :  { %v394_v60 = vadd.f32 %v393_v57, %v380_v58 }
  0xa5   :  { %v407_v59 = vpop.f32.mrf.mxu2 }
  0xa6   :  { %v381_v61 = vpop.f32.mrf.mxu0  ;;  %v421_v62 = vpop.f32.mrf.mxu3  ;;  %v408_v63 = vadd.f32 %v407_v59, %v394_v60 }
  0xa7   :  { %v382_v0 = vadd.f32 %v671_v56, %v381_v61 }
  0xa8   :  { %v422_v2 = vadd.f32 %v421_v62, %v408_v63 }
  0xa9   :  { %v395_v1 = vpop.f32.mrf.mxu1 }
  0xaa   :  { %v396_v3 = vadd.f32 %v395_v1, %v382_v0 }
  0xad   :  { %v409_v4 = vpop.f32.mrf.mxu2 }
  0xae   :  { %v410_v7 = vadd.f32 %v409_v4, %v396_v3  ;;  %v423_v8 = vpop.f32.mrf.mxu3 }
  0xb0   :  { %v424_v9 = vadd.f32 %v423_v8, %v410_v7 }
  0xbe   :  { %v435_v5 = vpop.f32.mrf.mxu0 }
  0xbf   :  { %v436_v6 = vadd.f32 %v435_v5, %v422_v2 }
  0xc1   :  { %440 = vst [vmem:[%s854_s3] sm:$0xff] %v436_v6 }
  0xc6   :  { %v437_v10 = vpop.f32.mrf.mxu0 }
  0xc7   :  { %v438_v11 = vadd.f32 %v437_v10, %v424_v9 }
  0xc9   :  { %441 = vst [vmem:[%s854_s3 + $0x8] sm:$0xff] %v438_v11 }

// kernel: forward.145
= control target key start
LH: loop header
LB: loop body
LE: loop exit
PB: predicated region body
PF: predicated region fallthrough
CT: control target
= control target key end

     0   :  { %s901_s1 = inlined_call_operand.vmem [shape: bf16[640,128], index: 1, kind: input, shape index: {}]   ;;  %s902_s2 = inlined_call_operand.vmem [shape: f32[1,128], index: 2, kind: input, shape index: {}]   ;;  %s903_s0 = inlined_call_operand.vmem [shape: bf16[16,640], index: 0, kind: input, shape index: {}]   ;;  %s904_s3 = inlined_call_operand.vmem [shape: f32[16,128], index: 3, kind: output, shape index: {}]  }
   0x1   :  { %v680_v0 = vld [vmem:[%s901_s1 + $0x38] sm:$0xff]  ;;  %v679_v4 = vld [vmem:[%s901_s1 + $0x30] sm:$0xff]  ;;  %v678_v8 = vld [vmem:[%s901_s1 + $0x28] sm:$0xff] }
   0x2   :  { %v696_v1 = vld [vmem:[%s901_s1 + $0xb8] sm:$0xff]  ;;  %370 = vmatpush.bf16.msra.mxu0 %v680_v0  ;;  %v695_v5 = vld [vmem:[%s901_s1 + $0xb0] sm:$0xff]  ;;  %v694_v9 = vld [vmem:[%s901_s1 + $0xa8] sm:$0xff] }
   0x3   :  { %v704_v2 = vld [vmem:[%s901_s1 + $0xf8] sm:$0xff]  ;;  %398 = vmatpush.bf16.msra.mxu2 %v696_v1  ;;  %v703_v6 = vld [vmem:[%s901_s1 + $0xf0] sm:$0xff]  ;;  %v702_v10 = vld [vmem:[%s901_s1 + $0xe8] sm:$0xff] }
   0x4   :  { %v688_v3 = vld [vmem:[%s901_s1 + $0x78] sm:$0xff]  ;;  %412 = vmatpush.bf16.msra.mxu3 %v704_v2  ;;  %v687_v7 = vld [vmem:[%s901_s1 + $0x70] sm:$0xff]  ;;  %v686_v11 = vld [vmem:[%s901_s1 + $0x68] sm:$0xff] }
   0x5   :  { %384 = vmatpush.bf16.msra.mxu1 %v688_v3  ;;  %v677_v12 = vld [vmem:[%s901_s1 + $0x20] sm:$0xff]  ;;  %v676_v16 = vld [vmem:[%s901_s1 + $0x18] sm:$0xff]  ;;  %v675_v20 = vld [vmem:[%s901_s1 + $0x10] sm:$0xff] }
   0x6   :  { %371 = vmatpush.bf16.msra.mxu0 %v679_v4  ;;  %v693_v13 = vld [vmem:[%s901_s1 + $0xa0] sm:$0xff]  ;;  %v692_v17 = vld [vmem:[%s901_s1 + $0x98] sm:$0xff]  ;;  %v691_v21 = vld [vmem:[%s901_s1 + $0x90] sm:$0xff] }
   0x7   :  { %399 = vmatpush.bf16.msra.mxu2 %v695_v5  ;;  %v701_v14 = vld [vmem:[%s901_s1 + $0xe0] sm:$0xff]  ;;  %v700_v18 = vld [vmem:[%s901_s1 + $0xd8] sm:$0xff]  ;;  %v699_v22 = vld [vmem:[%s901_s1 + $0xd0] sm:$0xff] }
   0x8   :  { %413 = vmatpush.bf16.msra.mxu3 %v703_v6  ;;  %v685_v15 = vld [vmem:[%s901_s1 + $0x60] sm:$0xff]  ;;  %v684_v19 = vld [vmem:[%s901_s1 + $0x58] sm:$0xff]  ;;  %v683_v23 = vld [vmem:[%s901_s1 + $0x50] sm:$0xff] }
   0x9   :  { %385 = vmatpush.bf16.msra.mxu1 %v687_v7  ;;  %v674_v24 = vld [vmem:[%s901_s1 + $0x8] sm:$0xff]  ;;  %v673_v28 = vld [vmem:[%s901_s1] sm:$0xff]  ;;  %v712_v29 = vld [vmem:[%s901_s1 + $0x138] sm:$0xff] }
   0xa   :  { %372 = vmatpush.bf16.msra.mxu0 %v678_v8  ;;  %v690_v25 = vld [vmem:[%s901_s1 + $0x88] sm:$0xff]  ;;  %v689_v30 = vld [vmem:[%s901_s1 + $0x80] sm:$0xff]  ;;  %v671_v32 = vld [vmem:[%s903_s0 + $0x18] sm:$0xf0] }
   0xb   :  { %400 = vmatpush.bf16.msra.mxu2 %v694_v9  ;;  %v698_v26 = vld [vmem:[%s901_s1 + $0xc8] sm:$0xff]  ;;  %v488_v33 = vld [vmem:[%s903_s0] sm:$0xf]  ;;  %v670_v34 = vld [vmem:[%s903_s0 + $0x10] sm:$0xf0] }
   0xc   :  { %414 = vmatpush.bf16.msra.mxu3 %v702_v10  ;;  %v682_v27 = vld [vmem:[%s901_s1 + $0x48] sm:$0xff]  ;;  %v697_v35 = vld [vmem:[%s901_s1 + $0xc0] sm:$0xff]  ;;  %v490_v40 = vld [vmem:[%s903_s0 + $0x14] sm:$0xf0]  ;;  %v489_v42 = vor.u32 %v670_v34, %v488_v33 }
   0xd   :  { %386 = vmatpush.bf16.msra.mxu1 %v686_v11  ;;  %v496_v31 = vld [vmem:[%s903_s0 + $0x8] sm:$0xf]  ;;  %v669_v36 = vld [vmem:[%s903_s0 + $0xc] sm:$0xf]  ;;  %v498_v37 = vld [vmem:[%s903_s0 + $0x1c] sm:$0xf0] }
   0xe   :  { %373 = vmatpush.bf16.msra.mxu0 %v677_v12  ;;  %v681_v38 = vld [vmem:[%s901_s1 + $0x40] sm:$0xff]  ;;  %v497_v41 = vor.u32 %v671_v32, %v496_v31  ;;  %v501_v43 = vor.u32 %v669_v36, %v498_v37  ;;  %v711_v44 = vld [vmem:[%s901_s1 + $0x130] sm:$0xff]  ;;  %v710_v46 = vld [vmem:[%s901_s1 + $0x128] sm:$0xff] }
   0xf   :  { %401 = vmatpush.bf16.msra.mxu2 %v693_v13  ;;  %v668_v39 = vld [vmem:[%s903_s0 + $0x4] sm:$0xf]  ;;  %v708_v48 = vld [vmem:[%s901_s1 + $0x118] sm:$0xff]  ;;  %v707_v49 = vld [vmem:[%s901_s1 + $0x110] sm:$0xff] }
  0x10   :  { %415 = vmatpush.bf16.msra.mxu3 %v701_v14  ;;  %v493_v45 = vor.u32 %v668_v39, %v490_v40  ;;  %v709_v47 = vld [vmem:[%s901_s1 + $0x120] sm:$0xff]  ;;  %v706_v50 = vld [vmem:[%s901_s1 + $0x108] sm:$0xff]  ;;  %v504_v52 = vld [vmem:[%s903_s0 + $0x10] sm:$0xf] }
  0x11   :  { %387 = vmatpush.bf16.msra.mxu1 %v685_v15  ;;  %v705_v51 = vld [vmem:[%s901_s1 + $0x100] sm:$0xff] }
  0x12   :  { %374 = vmatpush.bf16.msra.mxu0 %v676_v16  ;;  %v672_v53 = vld [vmem:[%s903_s0 + $0x20] sm:$0xf0]  ;;  %v713_v56 = vld [vmem:[%s902_s2] ss:$0 sm:$0xff] }
  0x13   :  { %402 = vmatpush.bf16.msra.mxu2 %v692_v17  ;;  %v505_v54 = vor.u32 %v672_v53, %v504_v52 }
  0x14   :  { %416 = vmatpush.bf16.msra.mxu3 %v700_v18 }
  0x15   :  { %388 = vmatpush.bf16.msra.mxu1 %v684_v19 }
  0x16   :  { %375 = vmatpush.bf16.msra.mxu0 %v675_v20 }
  0x17   :  { %403 = vmatpush.bf16.msra.mxu2 %v691_v21 }
  0x18   :  { %417 = vmatpush.bf16.msra.mxu3 %v699_v22 }
  0x19   :  { %389 = vmatpush.bf16.msra.mxu1 %v683_v23 }
  0x1a   :  { %376 = vmatpush.bf16.msra.mxu0 %v674_v24 }
  0x1b   :  { %404 = vmatpush.bf16.msra.mxu2 %v690_v25 }
  0x1c   :  { %418 = vmatpush.bf16.msra.mxu3 %v698_v26 }
  0x1d   :  { %390 = vmatpush.bf16.msra.mxu1 %v682_v27 }
  0x1e   :  { %377 = vmatpush.bf16.msra.mxu0 %v673_v28 }
  0x1f   :  { %405 = vmatpush.bf16.msra.mxu2 %v689_v30 }
  0x20   :  { %419 = vmatpush.bf16.msra.mxu3 %v697_v35 }
  0x21   :  { %391 = vmatpush.bf16.msra.mxu1 %v681_v38  ;;  %378 = vmatmul.bf16.vlgmr.msra.gmra.mxu0 %v489_v42 }
  0x22   :  { %426 = vmatpush.bf16.msrb.mxu0 %v712_v29  ;;  %406 = vmatmul.bf16.vlgmr.msra.gmra.mxu2 %v497_v41 }
  0x23   :  { %420 = vmatmul.bf16.vlgmr.msra.gmra.mxu3 %v501_v43 }
  0x24   :  { %392 = vmatmul.bf16.vlgmr.msra.gmra.mxu1 %v493_v45 }
  0x26   :  { %427 = vmatpush.bf16.msrb.mxu0 %v711_v44 }
  0x2a   :  { %428 = vmatpush.bf16.msrb.mxu0 %v710_v46 }
  0x2e   :  { %429 = vmatpush.bf16.msrb.mxu0 %v709_v47 }
  0x32   :  { %430 = vmatpush.bf16.msrb.mxu0 %v708_v48 }
  0x36   :  { %431 = vmatpush.bf16.msrb.mxu0 %v707_v49 }
  0x3a   :  { %432 = vmatpush.bf16.msrb.mxu0 %v706_v50 }
  0x3e   :  { %433 = vmatpush.bf16.msrb.mxu0 %v705_v51 }
  0x41   :  { %434 = vmatmul.bf16.vlgmr.msrb.gmra.mxu0 %v505_v54 }
  0x9e   :  { %v379_v55 = vpop.f32.mrf.mxu0 }
  0x9f   :  { %v380_v58 = vadd.f32 %v713_v56, %v379_v55 }
  0xa1   :  { %v393_v57 = vpop.f32.mrf.mxu1 }
  0xa2   :  { %v394_v60 = vadd.f32 %v393_v57, %v380_v58 }
  0xa5   :  { %v407_v59 = vpop.f32.mrf.mxu2 }
  0xa6   :  { %v381_v61 = vpop.f32.mrf.mxu0  ;;  %v421_v62 = vpop.f32.mrf.mxu3  ;;  %v408_v63 = vadd.f32 %v407_v59, %v394_v60 }
  0xa7   :  { %v382_v0 = vadd.f32 %v713_v56, %v381_v61 }
  0xa8   :  { %v422_v2 = vadd.f32 %v421_v62, %v408_v63 }
  0xa9   :  { %v395_v1 = vpop.f32.mrf.mxu1 }
  0xaa   :  { %v396_v3 = vadd.f32 %v395_v1, %v382_v0 }
  0xad   :  { %v409_v4 = vpop.f32.mrf.mxu2 }
  0xae   :  { %v410_v7 = vadd.f32 %v409_v4, %v396_v3  ;;  %v423_v9 = vpop.f32.mrf.mxu3 }
  0xb0   :  { %v424_v10 = vadd.f32 %v423_v9, %v410_v7 }
  0xbe   :  { %v435_v5 = vpop.f32.mrf.mxu0 }
  0xbf   :  { %v436_v6 = vadd.f32 %v435_v5, %v422_v2 }
  0xc1   :  { %v666_v8 = vmul.f32 -1.442695, %v436_v6 }
  0xc3   :  { %714 = vpow2.f32 %v666_v8 }
  0xc6   :  { %v437_v11 = vpop.f32.mrf.mxu0 }
  0xc7   :  { %v438_v12 = vadd.f32 %v437_v11, %v424_v10 }
  0xc9   :  { %v715_v13 = vpop.eup %714  ;;  %v667_v14 = vmul.f32 -1.442695, %v438_v12 }
  0xca   :  { %v446_v15 = vadd.f32 1.0, %v715_v13 }
  0xcb   :  { %716 = vpow2.f32 %v667_v14 }
  0xcc   :  { %718 = vrcp.f32 %v446_v15  ;;  %v459_v21 = vand.u32 2147483648, %v446_v15  ;;  %v457_v23 = vand.u32 2147483647, %v446_v15  ;;  %vm453_vm1 = vweird.f32 %v446_v15 }
  0xce   :  { %v460_v26 = vor.u32 1.1754944e-38, %v459_v21  ;;  %vm458_vm3 = vcmp.eq.f32.partialorder %v457_v23, 8.507059e+37 }
  0xd1   :  { %v717_v16 = vpop.eup %716 }
  0xd2   :  { %v719_v17 = vpop.eup %718  ;;  %v447_v18 = vadd.f32 1.0, %v717_v16 }
  0xd3   :  { %v449_v19 = vmul.f32 %v719_v17, %v446_v15  ;;  %vm454_vm0 = vweird.f32 %v719_v17 }
  0xd4   :  { %720 = vrcp.f32 %v447_v18  ;;  %vm455_vm2 = vmor %vm453_vm1, %vm454_vm0  ;;  %v474_v32 = vand.u32 2147483648, %v447_v18  ;;  %v472_v34 = vand.u32 2147483647, %v447_v18  ;;  %vm468_vm5 = vweird.f32 %v447_v18 }
  0xd5   :  { %v450_v20 = vsub.f32 1.0, %v449_v19 }
  0xd6   :  { %v475_v36 = vor.u32 1.1754944e-38, %v474_v32  ;;  %vm473_vm7 = vcmp.eq.f32.partialorder %v472_v34, 8.507059e+37 }
  0xd7   :  { %v451_v22 = vmul.f32 %v719_v17, %v450_v20 }
  0xd9   :  { %v452_v24 = vadd.f32 %v719_v17, %v451_v22 }
  0xda   :  { %v721_v25 = vpop.eup %720 }
  0xdb   :  { %v456_v27 = vsel %vm455_vm2, %v719_v17, %v452_v24  ;;  %v464_v28 = vmul.f32 %v721_v25, %v447_v18  ;;  %vm469_vm4 = vweird.f32 %v721_v25 }
  0xdc   :  { %v461_v29 = vsel %vm458_vm3, %v460_v26, %v456_v27  ;;  %vm470_vm6 = vmor %vm468_vm5, %vm469_vm4 }
  0xdd   :  { %v478_v30 = vmul.f32 %v461_v29, %v436_v6  ;;  %v465_v31 = vsub.f32 1.0, %v464_v28 }
  0xdf   :  { %480 = vst [vmem:[%s904_s3] sm:$0xff] %v478_v30  ;;  %v466_v33 = vmul.f32 %v721_v25, %v465_v31 }
  0xe1   :  { %v467_v35 = vadd.f32 %v721_v25, %v466_v33 }
  0xe3   :  { %v471_v37 = vsel %vm470_vm6, %v721_v25, %v467_v35 }
  0xe4   :  { %v476_v38 = vsel %vm473_vm7, %v475_v36, %v471_v37 }
  0xe5   :  { %v479_v39 = vmul.f32 %v476_v38, %v438_v12 }
  0xe7   :  { %481 = vst [vmem:[%s904_s3 + $0x8] sm:$0xff] %v479_v39 }

// kernel: forward.181
= control target key start
LH: loop header
LB: loop body
LE: loop exit
PB: predicated region body
PF: predicated region fallthrough
CT: control target
= control target key end

     0   :  { %s785_s1 = inlined_call_operand.vmem [shape: bf16[640,128], index: 1, kind: input, shape index: {}]   ;;  %s786_s2 = inlined_call_operand.vmem [shape: f32[1,128], index: 2, kind: input, shape index: {}]   ;;  %s787_s0 = inlined_call_operand.vmem [shape: bf16[8,640], index: 0, kind: input, shape index: {}]   ;;  %s788_s3 = inlined_call_operand.vmem [shape: f32[8,128], index: 3, kind: output, shape index: {}]  }
   0x1   :  { %v596_v0 = vld [vmem:[%s785_s1 + $0x38] sm:$0xff]  ;;  %v595_v3 = vld [vmem:[%s785_s1 + $0x30] sm:$0xff]  ;;  %v594_v8 = vld [vmem:[%s785_s1 + $0x28] sm:$0xff] }
   0x2   :  { %v612_v1 = vld [vmem:[%s785_s1 + $0xb8] sm:$0xff]  ;;  %359 = vmatpush.bf16.msra.mxu0 %v596_v0  ;;  %v611_v5 = vld [vmem:[%s785_s1 + $0xb0] sm:$0xff]  ;;  %v610_v9 = vld [vmem:[%s785_s1 + $0xa8] sm:$0xff] }
   0x3   :  { %v620_v2 = vld [vmem:[%s785_s1 + $0xf8] sm:$0xff]  ;;  %385 = vmatpush.bf16.msra.mxu2 %v612_v1  ;;  %v619_v6 = vld [vmem:[%s785_s1 + $0xf0] sm:$0xff]  ;;  %v618_v10 = vld [vmem:[%s785_s1 + $0xe8] sm:$0xff] }
   0x4   :  { %v604_v4 = vld [vmem:[%s785_s1 + $0x78] sm:$0xff]  ;;  %398 = vmatpush.bf16.msra.mxu3 %v620_v2  ;;  %v603_v7 = vld [vmem:[%s785_s1 + $0x70] sm:$0xff]  ;;  %v602_v11 = vld [vmem:[%s785_s1 + $0x68] sm:$0xff] }
   0x5   :  { %372 = vmatpush.bf16.msra.mxu1 %v604_v4  ;;  %v593_v12 = vld [vmem:[%s785_s1 + $0x20] sm:$0xff]  ;;  %v592_v16 = vld [vmem:[%s785_s1 + $0x18] sm:$0xff]  ;;  %v591_v20 = vld [vmem:[%s785_s1 + $0x10] sm:$0xff] }
   0x6   :  { %360 = vmatpush.bf16.msra.mxu0 %v595_v3  ;;  %v609_v13 = vld [vmem:[%s785_s1 + $0xa0] sm:$0xff]  ;;  %v608_v17 = vld [vmem:[%s785_s1 + $0x98] sm:$0xff]  ;;  %v607_v21 = vld [vmem:[%s785_s1 + $0x90] sm:$0xff] }
   0x7   :  { %386 = vmatpush.bf16.msra.mxu2 %v611_v5  ;;  %v617_v14 = vld [vmem:[%s785_s1 + $0xe0] sm:$0xff]  ;;  %v616_v18 = vld [vmem:[%s785_s1 + $0xd8] sm:$0xff]  ;;  %v615_v22 = vld [vmem:[%s785_s1 + $0xd0] sm:$0xff] }
   0x8   :  { %399 = vmatpush.bf16.msra.mxu3 %v619_v6  ;;  %v601_v15 = vld [vmem:[%s785_s1 + $0x60] sm:$0xff]  ;;  %v600_v19 = vld [vmem:[%s785_s1 + $0x58] sm:$0xff]  ;;  %v599_v23 = vld [vmem:[%s785_s1 + $0x50] sm:$0xff] }
   0x9   :  { %373 = vmatpush.bf16.msra.mxu1 %v603_v7  ;;  %v590_v24 = vld [vmem:[%s785_s1 + $0x8] sm:$0xff]  ;;  %v14_v25 = vld [vmem:[%s787_s0] sm:$0xff]  ;;  %v628_v33 = vld [vmem:[%s785_s1 + $0x138] sm:$0xff] }
   0xa   :  { %361 = vmatpush.bf16.msra.mxu0 %v594_v8  ;;  %v606_v26 = vld [vmem:[%s785_s1 + $0x88] sm:$0xff]  ;;  %v104_v30 = vunpack.c.l.b16 %v14_v25  ;;  %v589_v31 = vld [vmem:[%s785_s1] sm:$0xff]  ;;  %v105_v38 = vunpack.c.h.b16 %v14_v25  ;;  %v627_v41 = vld [vmem:[%s785_s1 + $0x130] sm:$0xff] }
   0xb   :  { %387 = vmatpush.bf16.msra.mxu2 %v610_v9  ;;  %v614_v27 = vld [vmem:[%s785_s1 + $0xc8] sm:$0xff]  ;;  %v605_v34 = vld [vmem:[%s785_s1 + $0x80] sm:$0xff]  ;;  %v624_v46 = vld [vmem:[%s785_s1 + $0x118] sm:$0xff] }
   0xc   :  { %400 = vmatpush.bf16.msra.mxu3 %v618_v10  ;;  %v15_v28 = vld [vmem:[%s787_s0 + $0x8] sm:$0xff]  ;;  %v613_v36 = vld [vmem:[%s785_s1 + $0xc0] sm:$0xff]  ;;  %v109_v39 = vpack.c.b16 %v104_v30, %v104_v30  ;;  %v110_v43 = vpack.c.b16 %v105_v38, %v105_v38  ;;  %v623_v47 = vld [vmem:[%s785_s1 + $0x110] sm:$0xff] }
   0xd   :  { %374 = vmatpush.bf16.msra.mxu1 %v602_v11  ;;  %v598_v29 = vld [vmem:[%s785_s1 + $0x48] sm:$0xff]  ;;  %v106_v32 = vunpack.c.l.b16 %v15_v28  ;;  %v107_v35 = vunpack.c.h.b16 %v15_v28  ;;  %v597_v37 = vld [vmem:[%s785_s1 + $0x40] sm:$0xff]  ;;  %v16_v49 = vld [vmem:[%s787_s0 + $0x10] sm:$0xf] }
   0xe   :  { %362 = vmatpush.bf16.msra.mxu0 %v593_v12  ;;  %v626_v44 = vld [vmem:[%s785_s1 + $0x128] sm:$0xff]  ;;  %v625_v45 = vld [vmem:[%s785_s1 + $0x120] sm:$0xff]  ;;  %v108_v50 = vunpack.c.l.b16 %v16_v49 }
   0xf   :  { %388 = vmatpush.bf16.msra.mxu2 %v609_v13  ;;  %v111_v40 = vpack.c.b16 %v106_v32, %v106_v32  ;;  %v112_v42 = vpack.c.b16 %v107_v35, %v107_v35  ;;  %v622_v48 = vld [vmem:[%s785_s1 + $0x108] sm:$0xff]  ;;  %v621_v51 = vld [vmem:[%s785_s1 + $0x100] sm:$0xff] }
  0x10   :  { %401 = vmatpush.bf16.msra.mxu3 %v617_v14  ;;  %v113_v52 = vpack.c.b16 %v108_v50, %v108_v50  ;;  %v629_v59 = vld [vmem:[%s786_s2] ss:$0 sm:$0xff] }
  0x11   :  { %375 = vmatpush.bf16.msra.mxu1 %v601_v15 }
  0x12   :  { %363 = vmatpush.bf16.msra.mxu0 %v592_v16 }
  0x13   :  { %389 = vmatpush.bf16.msra.mxu2 %v608_v17 }
  0x14   :  { %402 = vmatpush.bf16.msra.mxu3 %v616_v18 }
  0x15   :  { %376 = vmatpush.bf16.msra.mxu1 %v600_v19 }
  0x16   :  { %364 = vmatpush.bf16.msra.mxu0 %v591_v20 }
  0x17   :  { %390 = vmatpush.bf16.msra.mxu2 %v607_v21 }
  0x18   :  { %403 = vmatpush.bf16.msra.mxu3 %v615_v22 }
  0x19   :  { %377 = vmatpush.bf16.msra.mxu1 %v599_v23 }
  0x1a   :  { %365 = vmatpush.bf16.msra.mxu0 %v590_v24 }
  0x1b   :  { %391 = vmatpush.bf16.msra.mxu2 %v606_v26 }
  0x1c   :  { %404 = vmatpush.bf16.msra.mxu3 %v614_v27 }
  0x1d   :  { %378 = vmatpush.bf16.msra.mxu1 %v598_v29 }
  0x1e   :  { %366 = vmatpush.bf16.msra.mxu0 %v589_v31 }
  0x1f   :  { %392 = vmatpush.bf16.msra.mxu2 %v605_v34 }
  0x20   :  { %405 = vmatpush.bf16.msra.mxu3 %v613_v36 }
  0x21   :  { %379 = vmatpush.bf16.msra.mxu1 %v597_v37  ;;  %367 = vmatmul.bf16.vlgmr.msra.gmra.mxu0 %v109_v39 }
  0x22   :  { %411 = vmatpush.bf16.msrb.mxu0 %v628_v33  ;;  %393 = vmatmul.bf16.vlgmr.msra.gmra.mxu2 %v111_v40 }
  0x23   :  { %406 = vmatmul.bf16.vlgmr.msra.gmra.mxu3 %v112_v42 }
  0x24   :  { %380 = vmatmul.bf16.vlgmr.msra.gmra.mxu1 %v110_v43 }
  0x26   :  { %412 = vmatpush.bf16.msrb.mxu0 %v627_v41 }
  0x2a   :  { %413 = vmatpush.bf16.msrb.mxu0 %v626_v44 }
  0x2e   :  { %414 = vmatpush.bf16.msrb.mxu0 %v625_v45 }
  0x32   :  { %415 = vmatpush.bf16.msrb.mxu0 %v624_v46 }
  0x36   :  { %416 = vmatpush.bf16.msrb.mxu0 %v623_v47 }
  0x3a   :  { %417 = vmatpush.bf16.msrb.mxu0 %v622_v48 }
  0x3e   :  { %418 = vmatpush.bf16.msrb.mxu0 %v621_v51 }
  0x41   :  { %419 = vmatmul.bf16.vlgmr.msrb.gmra.mxu0 %v113_v52 }
  0x9e   :  { %v368_v53 = vpop.f32.mrf.mxu0 }
  0x9f   :  { %v369_v61 = vadd.f32 %v629_v59, %v368_v53 }
  0xa1   :  { %v381_v54 = vpop.f32.mrf.mxu1 }
  0xa2   :  { %v382_v63 = vadd.f32 %v381_v54, %v369_v61 }
  0xa5   :  { %v394_v55 = vpop.f32.mrf.mxu2 }
  0xa6   :  { %v370_v56 = vpop.f32.mrf.mxu0  ;;  %v407_v57 = vpop.f32.mrf.mxu3  ;;  %v395_v0 = vadd.f32 %v394_v55, %v382_v63 }
  0xa8   :  { %v408_v1 = vadd.f32 %v407_v57, %v395_v0 }
  0xa9   :  { %v383_v58 = vpop.f32.mrf.mxu1 }
  0xad   :  { %v396_v60 = vpop.f32.mrf.mxu2 }
  0xae   :  { %v409_v62 = vpop.f32.mrf.mxu3 }
  0xbe   :  { %v420_v2 = vpop.f32.mrf.mxu0 }
  0xbf   :  { %v421_v3 = vadd.f32 %v420_v2, %v408_v1 }
  0xc1   :  { %424 = vst [vmem:[%s788_s3] sm:$0xff] %v421_v3 }
  0xc6   :  { %v422_v4 = vpop.f32.mrf.mxu0 }

// kernel: forward.150
= control target key start
LH: loop header
LB: loop body
LE: loop exit
PB: predicated region body
PF: predicated region fallthrough
CT: control target
= control target key end

     0   :  { %8 = vsyncpa [#allocation3], 0  ;;  %s768_s15 = smov [#allocation2]   ;;  %s769_s17 = smov 320   ;;  %s923_s0 = inlined_call_operand.hbm [shape: bf16[16,640], index: 0, kind: input, shape index: {}]   ;;  %s924_s1 = inlined_call_operand.vmem [shape: bf16[640,128], index: 1, kind: input, shape index: {}]   ;;  %s925_s2 = inlined_call_operand.vmem [shape: f32[1,128], index: 2, kind: input, shape index: {}]   ;;  %s926_s3 = inlined_call_operand.vmem [shape: f32[16,128], index: 3, kind: output, shape index: {}]  }
   0x1   :  { %s13_s14 = sshll.u32 %s923_s0, 4  ;;  %s15_s16 = sshll.u32 %s768_s15, 4  ;;  %s14_s14 = int_to_ptr.hbm [resolvable:$true] %s13_s14  ;;  %s16_s16 = int_to_ptr.vmem [resolvable:$true] %s15_s16 }
   0x2   :  { %s770_s18 = smov 20  }
   0x3   :  { %21 = dma.hbm_to_vmem [thread:$0]  %s14_s14, 640, %s16_s16, [#allocation3], %s769_s17, %s769_s17, %s770_s18  }
   0x4   :  { %766 = dma.done.wait [#allocation3], 640  }
   0x5   :  { %767 = vsyncadd [#allocation3], 4294966656  ;;  %v697_v0 = vld [vmem:[%s924_s1 + $0x38] sm:$0xff]  ;;  %v696_v4 = vld [vmem:[%s924_s1 + $0x30] sm:$0xff] }
   0x6   :  { %v713_v1 = vld [vmem:[%s924_s1 + $0xb8] sm:$0xff]  ;;  %386 = vmatpush.bf16.msra.mxu0 %v697_v0  ;;  %v712_v5 = vld [vmem:[%s924_s1 + $0xb0] sm:$0xff]  ;;  %v695_v8 = vld [vmem:[%s924_s1 + $0x28] sm:$0xff] }
   0x7   :  { %v721_v2 = vld [vmem:[%s924_s1 + $0xf8] sm:$0xff]  ;;  %414 = vmatpush.bf16.msra.mxu2 %v713_v1  ;;  %v720_v6 = vld [vmem:[%s924_s1 + $0xf0] sm:$0xff]  ;;  %v711_v9 = vld [vmem:[%s924_s1 + $0xa8] sm:$0xff] }
   0x8   :  { %v705_v3 = vld [vmem:[%s924_s1 + $0x78] sm:$0xff]  ;;  %428 = vmatpush.bf16.msra.mxu3 %v721_v2  ;;  %v704_v7 = vld [vmem:[%s924_s1 + $0x70] sm:$0xff]  ;;  %v719_v10 = vld [vmem:[%s924_s1 + $0xe8] sm:$0xff] }
   0x9   :  { %400 = vmatpush.bf16.msra.mxu1 %v705_v3  ;;  %v703_v11 = vld [vmem:[%s924_s1 + $0x68] sm:$0xff]  ;;  %v694_v12 = vld [vmem:[%s924_s1 + $0x20] sm:$0xff]  ;;  %v693_v16 = vld [vmem:[%s924_s1 + $0x18] sm:$0xff] }
   0xa   :  { %387 = vmatpush.bf16.msra.mxu0 %v696_v4  ;;  %v710_v13 = vld [vmem:[%s924_s1 + $0xa0] sm:$0xff]  ;;  %v709_v17 = vld [vmem:[%s924_s1 + $0x98] sm:$0xff]  ;;  %v692_v20 = vld [vmem:[%s924_s1 + $0x10] sm:$0xff] }
   0xb   :  { %415 = vmatpush.bf16.msra.mxu2 %v712_v5  ;;  %v718_v14 = vld [vmem:[%s924_s1 + $0xe0] sm:$0xff]  ;;  %v717_v18 = vld [vmem:[%s924_s1 + $0xd8] sm:$0xff]  ;;  %v708_v21 = vld [vmem:[%s924_s1 + $0x90] sm:$0xff] }
   0xc   :  { %429 = vmatpush.bf16.msra.mxu3 %v720_v6  ;;  %v702_v15 = vld [vmem:[%s924_s1 + $0x60] sm:$0xff]  ;;  %v701_v19 = vld [vmem:[%s924_s1 + $0x58] sm:$0xff]  ;;  %v716_v22 = vld [vmem:[%s924_s1 + $0xd0] sm:$0xff] }
   0xd   :  { %401 = vmatpush.bf16.msra.mxu1 %v704_v7  ;;  %v700_v23 = vld [vmem:[%s924_s1 + $0x50] sm:$0xff]  ;;  %v691_v24 = vld [vmem:[%s924_s1 + $0x8] sm:$0xff]  ;;  %v690_v28 = vld [vmem:[%s924_s1] sm:$0xff] }
   0xe   :  { %388 = vmatpush.bf16.msra.mxu0 %v695_v8  ;;  %v707_v25 = vld [vmem:[%s924_s1 + $0x88] sm:$0xff]  ;;  %v729_v29 = vld [vmem:[%s924_s1 + $0x138] sm:$0xff]  ;;  %v706_v30 = vld [vmem:[%s924_s1 + $0x80] sm:$0xff] }
   0xf   :  { %416 = vmatpush.bf16.msra.mxu2 %v711_v9  ;;  %v715_v26 = vld [vmem:[%s924_s1 + $0xc8] sm:$0xff]  ;;  %v688_v32 = vld [vmem:[#allocation2 + $0x18] sm:$0xf0]  ;;  %v505_v33 = vld [vmem:[#allocation2] sm:$0xf] }
  0x10   :  { %430 = vmatpush.bf16.msra.mxu3 %v719_v10  ;;  %v699_v27 = vld [vmem:[%s924_s1 + $0x48] sm:$0xff]  ;;  %v687_v34 = vld [vmem:[#allocation2 + $0x10] sm:$0xf0]  ;;  %v714_v35 = vld [vmem:[%s924_s1 + $0xc0] sm:$0xff] }
  0x11   :  { %402 = vmatpush.bf16.msra.mxu1 %v703_v11  ;;  %v513_v31 = vld [vmem:[#allocation2 + $0x8] sm:$0xf]  ;;  %v686_v36 = vld [vmem:[#allocation2 + $0xc] sm:$0xf]  ;;  %v515_v37 = vld [vmem:[#allocation2 + $0x1c] sm:$0xf0]  ;;  %v506_v42 = vor.u32 %v687_v34, %v505_v33 }
  0x12   :  { %389 = vmatpush.bf16.msra.mxu0 %v694_v12  ;;  %v698_v38 = vld [vmem:[%s924_s1 + $0x40] sm:$0xff]  ;;  %v507_v40 = vld [vmem:[#allocation2 + $0x14] sm:$0xf0]  ;;  %v514_v41 = vor.u32 %v688_v32, %v513_v31  ;;  %v518_v43 = vor.u32 %v686_v36, %v515_v37  ;;  %v728_v44 = vld [vmem:[%s924_s1 + $0x130] sm:$0xff] }
  0x13   :  { %417 = vmatpush.bf16.msra.mxu2 %v710_v13  ;;  %v685_v39 = vld [vmem:[#allocation2 + $0x4] sm:$0xf]  ;;  %v727_v46 = vld [vmem:[%s924_s1 + $0x128] sm:$0xff]  ;;  %v725_v48 = vld [vmem:[%s924_s1 + $0x118] sm:$0xff] }
  0x14   :  { %431 = vmatpush.bf16.msra.mxu3 %v718_v14  ;;  %v510_v45 = vor.u32 %v685_v39, %v507_v40  ;;  %v726_v47 = vld [vmem:[%s924_s1 + $0x120] sm:$0xff]  ;;  %v724_v49 = vld [vmem:[%s924_s1 + $0x110] sm:$0xff]  ;;  %v723_v50 = vld [vmem:[%s924_s1 + $0x108] sm:$0xff] }
  0x15   :  { %403 = vmatpush.bf16.msra.mxu1 %v702_v15  ;;  %v722_v51 = vld [vmem:[%s924_s1 + $0x100] sm:$0xff]  ;;  %v521_v52 = vld [vmem:[#allocation2 + $0x10] sm:$0xf] }
  0x16   :  { %390 = vmatpush.bf16.msra.mxu0 %v693_v16  ;;  %v689_v53 = vld [vmem:[#allocation2 + $0x20] sm:$0xf0]  ;;  %v733_v56 = vld [vmem:[%s925_s2] ss:$0 sm:$0xff] }
  0x17   :  { %418 = vmatpush.bf16.msra.mxu2 %v709_v17  ;;  %v522_v54 = vor.u32 %v689_v53, %v521_v52 }
  0x18   :  { %432 = vmatpush.bf16.msra.mxu3 %v717_v18 }
  0x19   :  { %404 = vmatpush.bf16.msra.mxu1 %v701_v19 }
  0x1a   :  { %391 = vmatpush.bf16.msra.mxu0 %v692_v20 }
  0x1b   :  { %419 = vmatpush.bf16.msra.mxu2 %v708_v21 }
  0x1c   :  { %433 = vmatpush.bf16.msra.mxu3 %v716_v22 }
  0x1d   :  { %405 = vmatpush.bf16.msra.mxu1 %v700_v23 }
  0x1e   :  { %392 = vmatpush.bf16.msra.mxu0 %v691_v24 }
  0x1f   :  { %420 = vmatpush.bf16.msra.mxu2 %v707_v25 }
  0x20   :  { %434 = vmatpush.bf16.msra.mxu3 %v715_v26 }
  0x21   :  { %406 = vmatpush.bf16.msra.mxu1 %v699_v27 }
  0x22   :  { %393 = vmatpush.bf16.msra.mxu0 %v690_v28 }
  0x23   :  { %421 = vmatpush.bf16.msra.mxu2 %v706_v30 }
  0x24   :  { %435 = vmatpush.bf16.msra.mxu3 %v714_v35 }
  0x25   :  { %407 = vmatpush.bf16.msra.mxu1 %v698_v38  ;;  %394 = vmatmul.bf16.vlgmr.msra.gmra.mxu0 %v506_v42 }
  0x26   :  { %442 = vmatpush.bf16.msrb.mxu0 %v729_v29  ;;  %422 = vmatmul.bf16.vlgmr.msra.gmra.mxu2 %v514_v41 }
  0x27   :  { %436 = vmatmul.bf16.vlgmr.msra.gmra.mxu3 %v518_v43 }
  0x28   :  { %408 = vmatmul.bf16.vlgmr.msra.gmra.mxu1 %v510_v45 }
  0x2a   :  { %443 = vmatpush.bf16.msrb.mxu0 %v728_v44 }
  0x2e   :  { %444 = vmatpush.bf16.msrb.mxu0 %v727_v46 }
  0x32   :  { %445 = vmatpush.bf16.msrb.mxu0 %v726_v47 }
  0x36   :  { %446 = vmatpush.bf16.msrb.mxu0 %v725_v48 }
  0x3a   :  { %447 = vmatpush.bf16.msrb.mxu0 %v724_v49 }
  0x3e   :  { %448 = vmatpush.bf16.msrb.mxu0 %v723_v50 }
  0x42   :  { %449 = vmatpush.bf16.msrb.mxu0 %v722_v51 }
  0x45   :  { %450 = vmatmul.bf16.vlgmr.msrb.gmra.mxu0 %v522_v54 }
  0xa2   :  { %v395_v55 = vpop.f32.mrf.mxu0 }
  0xa3   :  { %v396_v58 = vadd.f32 %v733_v56, %v395_v55 }
  0xa5   :  { %v409_v57 = vpop.f32.mrf.mxu1 }
  0xa6   :  { %v410_v60 = vadd.f32 %v409_v57, %v396_v58 }
  0xa9   :  { %v423_v59 = vpop.f32.mrf.mxu2 }
  0xaa   :  { %v397_v61 = vpop.f32.mrf.mxu0  ;;  %v437_v62 = vpop.f32.mrf.mxu3  ;;  %v424_v63 = vadd.f32 %v423_v59, %v410_v60 }
  0xab   :  { %v398_v0 = vadd.f32 %v733_v56, %v397_v61 }
  0xac   :  { %v438_v2 = vadd.f32 %v437_v62, %v424_v63 }
  0xad   :  { %v411_v1 = vpop.f32.mrf.mxu1 }
  0xae   :  { %v412_v3 = vadd.f32 %v411_v1, %v398_v0 }
  0xb1   :  { %v425_v4 = vpop.f32.mrf.mxu2 }
  0xb2   :  { %v426_v7 = vadd.f32 %v425_v4, %v412_v3  ;;  %v439_v9 = vpop.f32.mrf.mxu3 }
  0xb4   :  { %v440_v10 = vadd.f32 %v439_v9, %v426_v7 }
  0xc2   :  { %v451_v5 = vpop.f32.mrf.mxu0 }
  0xc3   :  { %v452_v6 = vadd.f32 %v451_v5, %v438_v2 }
  0xc5   :  { %v683_v8 = vmul.f32 -1.442695, %v452_v6 }
  0xc7   :  { %734 = vpow2.f32 %v683_v8 }
  0xca   :  { %v453_v11 = vpop.f32.mrf.mxu0 }
  0xcb   :  { %v454_v12 = vadd.f32 %v453_v11, %v440_v10 }
  0xcd   :  { %v735_v13 = vpop.eup %734  ;;  %v684_v14 = vmul.f32 -1.442695, %v454_v12 }
  0xce   :  { %v462_v15 = vadd.f32 1.0, %v735_v13 }
  0xcf   :  { %736 = vpow2.f32 %v684_v14 }
  0xd0   :  { %738 = vrcp.f32 %v462_v15  ;;  %v475_v21 = vand.u32 2147483648, %v462_v15  ;;  %v473_v23 = vand.u32 2147483647, %v462_v15  ;;  %vm469_vm1 = vweird.f32 %v462_v15 }
  0xd2   :  { %v476_v26 = vor.u32 1.1754944e-38, %v475_v21  ;;  %vm474_vm3 = vcmp.eq.f32.partialorder %v473_v23, 8.507059e+37 }
  0xd5   :  { %v737_v16 = vpop.eup %736 }
  0xd6   :  { %v739_v17 = vpop.eup %738  ;;  %v463_v18 = vadd.f32 1.0, %v737_v16 }
  0xd7   :  { %v465_v19 = vmul.f32 %v739_v17, %v462_v15  ;;  %vm470_vm0 = vweird.f32 %v739_v17 }
  0xd8   :  { %740 = vrcp.f32 %v463_v18  ;;  %vm471_vm2 = vmor %vm469_vm1, %vm470_vm0  ;;  %v490_v32 = vand.u32 2147483648, %v463_v18  ;;  %v488_v34 = vand.u32 2147483647, %v463_v18  ;;  %vm484_vm5 = vweird.f32 %v463_v18 }
  0xd9   :  { %v466_v20 = vsub.f32 1.0, %v465_v19 }
  0xda   :  { %v491_v36 = vor.u32 1.1754944e-38, %v490_v32  ;;  %vm489_vm7 = vcmp.eq.f32.partialorder %v488_v34, 8.507059e+37 }
  0xdb   :  { %v467_v22 = vmul.f32 %v739_v17, %v466_v20 }
  0xdd   :  { %v468_v24 = vadd.f32 %v739_v17, %v467_v22 }
  0xde   :  { %v741_v25 = vpop.eup %740 }
  0xdf   :  { %v472_v27 = vsel %vm471_vm2, %v739_v17, %v468_v24  ;;  %v480_v28 = vmul.f32 %v741_v25, %v463_v18  ;;  %vm485_vm4 = vweird.f32 %v741_v25 }
  0xe0   :  { %v477_v29 = vsel %vm474_vm3, %v476_v26, %v472_v27  ;;  %vm486_vm6 = vmor %vm484_vm5, %vm485_vm4 }
  0xe1   :  { %v494_v30 = vmul.f32 %v477_v29, %v452_v6  ;;  %v481_v31 = vsub.f32 1.0, %v480_v28 }
  0xe3   :  { %496 = vst [vmem:[%s926_s3] sm:$0xff] %v494_v30  ;;  %v482_v33 = vmul.f32 %v741_v25, %v481_v31 }
  0xe5   :  { %v483_v35 = vadd.f32 %v741_v25, %v482_v33 }
  0xe7   :  { %v487_v37 = vsel %vm486_vm6, %v741_v25, %v483_v35 }
  0xe8   :  { %v492_v38 = vsel %vm489_vm7, %v491_v36, %v487_v37 }
  0xe9   :  { %v495_v39 = vmul.f32 %v492_v38, %v454_v12 }
  0xeb   :  { %497 = vst [vmem:[%s926_s3 + $0x8] sm:$0xff] %v495_v39 }
  0xec   :  { %502 = vsyncpa [#allocation3], 1 }

// kernel: forward.180
= control target key start
LH: loop header
LB: loop body
LE: loop exit
PB: predicated region body
PF: predicated region fallthrough
CT: control target
= control target key end

     0   :  { %s810_s1 = inlined_call_operand.vmem [shape: bf16[640,128], index: 1, kind: input, shape index: {}]   ;;  %s811_s2 = inlined_call_operand.vmem [shape: f32[1,128], index: 2, kind: input, shape index: {}]   ;;  %s812_s0 = inlined_call_operand.vmem [shape: bf16[8,640], index: 0, kind: input, shape index: {}]   ;;  %s813_s3 = inlined_call_operand.vmem [shape: f32[8,128], index: 3, kind: output, shape index: {}]  }
   0x1   :  { %v617_v0 = vld [vmem:[%s810_s1 + $0x38] sm:$0xff]  ;;  %v616_v3 = vld [vmem:[%s810_s1 + $0x30] sm:$0xff]  ;;  %v615_v8 = vld [vmem:[%s810_s1 + $0x28] sm:$0xff] }
   0x2   :  { %v633_v1 = vld [vmem:[%s810_s1 + $0xb8] sm:$0xff]  ;;  %359 = vmatpush.bf16.msra.mxu0 %v617_v0  ;;  %v632_v5 = vld [vmem:[%s810_s1 + $0xb0] sm:$0xff]  ;;  %v631_v9 = vld [vmem:[%s810_s1 + $0xa8] sm:$0xff] }
   0x3   :  { %v641_v2 = vld [vmem:[%s810_s1 + $0xf8] sm:$0xff]  ;;  %385 = vmatpush.bf16.msra.mxu2 %v633_v1  ;;  %v640_v6 = vld [vmem:[%s810_s1 + $0xf0] sm:$0xff]  ;;  %v639_v10 = vld [vmem:[%s810_s1 + $0xe8] sm:$0xff] }
   0x4   :  { %v625_v4 = vld [vmem:[%s810_s1 + $0x78] sm:$0xff]  ;;  %398 = vmatpush.bf16.msra.mxu3 %v641_v2  ;;  %v624_v7 = vld [vmem:[%s810_s1 + $0x70] sm:$0xff]  ;;  %v623_v11 = vld [vmem:[%s810_s1 + $0x68] sm:$0xff] }
   0x5   :  { %372 = vmatpush.bf16.msra.mxu1 %v625_v4  ;;  %v614_v12 = vld [vmem:[%s810_s1 + $0x20] sm:$0xff]  ;;  %v613_v16 = vld [vmem:[%s810_s1 + $0x18] sm:$0xff]  ;;  %v612_v20 = vld [vmem:[%s810_s1 + $0x10] sm:$0xff] }
   0x6   :  { %360 = vmatpush.bf16.msra.mxu0 %v616_v3  ;;  %v630_v13 = vld [vmem:[%s810_s1 + $0xa0] sm:$0xff]  ;;  %v629_v17 = vld [vmem:[%s810_s1 + $0x98] sm:$0xff]  ;;  %v628_v21 = vld [vmem:[%s810_s1 + $0x90] sm:$0xff] }
   0x7   :  { %386 = vmatpush.bf16.msra.mxu2 %v632_v5  ;;  %v638_v14 = vld [vmem:[%s810_s1 + $0xe0] sm:$0xff]  ;;  %v637_v18 = vld [vmem:[%s810_s1 + $0xd8] sm:$0xff]  ;;  %v636_v22 = vld [vmem:[%s810_s1 + $0xd0] sm:$0xff] }
   0x8   :  { %399 = vmatpush.bf16.msra.mxu3 %v640_v6  ;;  %v622_v15 = vld [vmem:[%s810_s1 + $0x60] sm:$0xff]  ;;  %v621_v19 = vld [vmem:[%s810_s1 + $0x58] sm:$0xff]  ;;  %v620_v23 = vld [vmem:[%s810_s1 + $0x50] sm:$0xff] }
   0x9   :  { %373 = vmatpush.bf16.msra.mxu1 %v624_v7  ;;  %v611_v24 = vld [vmem:[%s810_s1 + $0x8] sm:$0xff]  ;;  %v14_v25 = vld [vmem:[%s812_s0] sm:$0xff]  ;;  %v649_v33 = vld [vmem:[%s810_s1 + $0x138] sm:$0xff] }
   0xa   :  { %361 = vmatpush.bf16.msra.mxu0 %v615_v8  ;;  %v627_v26 = vld [vmem:[%s810_s1 + $0x88] sm:$0xff]  ;;  %v104_v30 = vunpack.c.l.b16 %v14_v25  ;;  %v610_v31 = vld [vmem:[%s810_s1] sm:$0xff]  ;;  %v105_v38 = vunpack.c.h.b16 %v14_v25  ;;  %v648_v41 = vld [vmem:[%s810_s1 + $0x130] sm:$0xff] }
   0xb   :  { %387 = vmatpush.bf16.msra.mxu2 %v631_v9  ;;  %v635_v27 = vld [vmem:[%s810_s1 + $0xc8] sm:$0xff]  ;;  %v626_v34 = vld [vmem:[%s810_s1 + $0x80] sm:$0xff]  ;;  %v645_v46 = vld [vmem:[%s810_s1 + $0x118] sm:$0xff] }
   0xc   :  { %400 = vmatpush.bf16.msra.mxu3 %v639_v10  ;;  %v15_v28 = vld [vmem:[%s812_s0 + $0x8] sm:$0xff]  ;;  %v634_v36 = vld [vmem:[%s810_s1 + $0xc0] sm:$0xff]  ;;  %v109_v39 = vpack.c.b16 %v104_v30, %v104_v30  ;;  %v110_v43 = vpack.c.b16 %v105_v38, %v105_v38  ;;  %v644_v47 = vld [vmem:[%s810_s1 + $0x110] sm:$0xff] }
   0xd   :  { %374 = vmatpush.bf16.msra.mxu1 %v623_v11  ;;  %v619_v29 = vld [vmem:[%s810_s1 + $0x48] sm:$0xff]  ;;  %v106_v32 = vunpack.c.l.b16 %v15_v28  ;;  %v107_v35 = vunpack.c.h.b16 %v15_v28  ;;  %v618_v37 = vld [vmem:[%s810_s1 + $0x40] sm:$0xff]  ;;  %v16_v49 = vld [vmem:[%s812_s0 + $0x10] sm:$0xf] }
   0xe   :  { %362 = vmatpush.bf16.msra.mxu0 %v614_v12  ;;  %v647_v44 = vld [vmem:[%s810_s1 + $0x128] sm:$0xff]  ;;  %v646_v45 = vld [vmem:[%s810_s1 + $0x120] sm:$0xff]  ;;  %v108_v50 = vunpack.c.l.b16 %v16_v49 }
   0xf   :  { %388 = vmatpush.bf16.msra.mxu2 %v630_v13  ;;  %v111_v40 = vpack.c.b16 %v106_v32, %v106_v32  ;;  %v112_v42 = vpack.c.b16 %v107_v35, %v107_v35  ;;  %v643_v48 = vld [vmem:[%s810_s1 + $0x108] sm:$0xff]  ;;  %v642_v51 = vld [vmem:[%s810_s1 + $0x100] sm:$0xff] }
  0x10   :  { %401 = vmatpush.bf16.msra.mxu3 %v638_v14  ;;  %v113_v52 = vpack.c.b16 %v108_v50, %v108_v50  ;;  %v650_v59 = vld [vmem:[%s811_s2] ss:$0 sm:$0xff] }
  0x11   :  { %375 = vmatpush.bf16.msra.mxu1 %v622_v15 }
  0x12   :  { %363 = vmatpush.bf16.msra.mxu0 %v613_v16 }
  0x13   :  { %389 = vmatpush.bf16.msra.mxu2 %v629_v17 }
  0x14   :  { %402 = vmatpush.bf16.msra.mxu3 %v637_v18 }
  0x15   :  { %376 = vmatpush.bf16.msra.mxu1 %v621_v19 }
  0x16   :  { %364 = vmatpush.bf16.msra.mxu0 %v612_v20 }
  0x17   :  { %390 = vmatpush.bf16.msra.mxu2 %v628_v21 }
  0x18   :  { %403 = vmatpush.bf16.msra.mxu3 %v636_v22 }
  0x19   :  { %377 = vmatpush.bf16.msra.mxu1 %v620_v23 }
  0x1a   :  { %365 = vmatpush.bf16.msra.mxu0 %v611_v24 }
  0x1b   :  { %391 = vmatpush.bf16.msra.mxu2 %v627_v26 }
  0x1c   :  { %404 = vmatpush.bf16.msra.mxu3 %v635_v27 }
  0x1d   :  { %378 = vmatpush.bf16.msra.mxu1 %v619_v29 }
  0x1e   :  { %366 = vmatpush.bf16.msra.mxu0 %v610_v31 }
  0x1f   :  { %392 = vmatpush.bf16.msra.mxu2 %v626_v34 }
  0x20   :  { %405 = vmatpush.bf16.msra.mxu3 %v634_v36 }
  0x21   :  { %379 = vmatpush.bf16.msra.mxu1 %v618_v37  ;;  %367 = vmatmul.bf16.vlgmr.msra.gmra.mxu0 %v109_v39 }
  0x22   :  { %411 = vmatpush.bf16.msrb.mxu0 %v649_v33  ;;  %393 = vmatmul.bf16.vlgmr.msra.gmra.mxu2 %v111_v40 }
  0x23   :  { %406 = vmatmul.bf16.vlgmr.msra.gmra.mxu3 %v112_v42 }
  0x24   :  { %380 = vmatmul.bf16.vlgmr.msra.gmra.mxu1 %v110_v43 }
  0x26   :  { %412 = vmatpush.bf16.msrb.mxu0 %v648_v41 }
  0x2a   :  { %413 = vmatpush.bf16.msrb.mxu0 %v647_v44 }
  0x2e   :  { %414 = vmatpush.bf16.msrb.mxu0 %v646_v45 }
  0x32   :  { %415 = vmatpush.bf16.msrb.mxu0 %v645_v46 }
  0x36   :  { %416 = vmatpush.bf16.msrb.mxu0 %v644_v47 }
  0x3a   :  { %417 = vmatpush.bf16.msrb.mxu0 %v643_v48 }
  0x3e   :  { %418 = vmatpush.bf16.msrb.mxu0 %v642_v51 }
  0x41   :  { %419 = vmatmul.bf16.vlgmr.msrb.gmra.mxu0 %v113_v52 }
  0x9e   :  { %v368_v53 = vpop.f32.mrf.mxu0 }
  0x9f   :  { %v369_v61 = vadd.f32 %v650_v59, %v368_v53 }
  0xa1   :  { %v381_v54 = vpop.f32.mrf.mxu1 }
  0xa2   :  { %v382_v63 = vadd.f32 %v381_v54, %v369_v61 }
  0xa5   :  { %v394_v55 = vpop.f32.mrf.mxu2 }
  0xa6   :  { %v370_v56 = vpop.f32.mrf.mxu0  ;;  %v407_v57 = vpop.f32.mrf.mxu3  ;;  %v395_v0 = vadd.f32 %v394_v55, %v382_v63 }
  0xa8   :  { %v408_v1 = vadd.f32 %v407_v57, %v395_v0 }
  0xa9   :  { %v383_v58 = vpop.f32.mrf.mxu1 }
  0xad   :  { %v396_v60 = vpop.f32.mrf.mxu2 }
  0xae   :  { %v409_v62 = vpop.f32.mrf.mxu3 }
  0xbe   :  { %v420_v2 = vpop.f32.mrf.mxu0 }
  0xbf   :  { %v421_v3 = vadd.f32 %v420_v2, %v408_v1 }
  0xc1   :  { %v609_v4 = vmul.f32 -1.442695, %v421_v3 }
  0xc3   :  { %651 = vpow2.f32 %v609_v4 }
  0xc6   :  { %v422_v5 = vpop.f32.mrf.mxu0 }
  0xc9   :  { %v652_v6 = vpop.eup %651 }
  0xca   :  { %v427_v7 = vadd.f32 1.0, %v652_v6 }
  0xcc   :  { %653 = vrcp.f32 %v427_v7  ;;  %v439_v11 = vand.u32 2147483648, %v427_v7  ;;  %v437_v13 = vand.u32 2147483647, %v427_v7  ;;  %vm433_vm1 = vweird.f32 %v427_v7 }
  0xce   :  { %v440_v15 = vor.u32 1.1754944e-38, %v439_v11  ;;  %vm438_vm3 = vcmp.eq.f32.partialorder %v437_v13, 8.507059e+37 }
  0xd2   :  { %v654_v8 = vpop.eup %653 }
  0xd3   :  { %v429_v9 = vmul.f32 %v654_v8, %v427_v7  ;;  %vm434_vm0 = vweird.f32 %v654_v8 }
  0xd4   :  { %vm435_vm2 = vmor %vm433_vm1, %vm434_vm0 }
  0xd5   :  { %v430_v10 = vsub.f32 1.0, %v429_v9 }
  0xd7   :  { %v431_v12 = vmul.f32 %v654_v8, %v430_v10 }
  0xd9   :  { %v432_v14 = vadd.f32 %v654_v8, %v431_v12 }
  0xdb   :  { %v436_v16 = vsel %vm435_vm2, %v654_v8, %v432_v14 }
  0xdc   :  { %v441_v17 = vsel %vm438_vm3, %v440_v15, %v436_v16 }
  0xdd   :  { %v443_v18 = vmul.f32 %v441_v17, %v421_v3 }
  0xdf   :  { %444 = vst [vmem:[%s813_s3] sm:$0xff] %v443_v18 }

// kernel: forward.184
= control target key start
LH: loop header
LB: loop body
LE: loop exit
PB: predicated region body
PF: predicated region fallthrough
CT: control target
= control target key end

     0   :  { %8 = vsyncpa [#allocation3], 0  ;;  %s697_s15 = smov [#allocation2]   ;;  %s847_s0 = inlined_call_operand.hbm [shape: bf16[8,640], index: 0, kind: input, shape index: {}]   ;;  %s848_s1 = inlined_call_operand.vmem [shape: bf16[640,128], index: 1, kind: input, shape index: {}]   ;;  %s849_s2 = inlined_call_operand.vmem [shape: f32[1,128], index: 2, kind: input, shape index: {}]   ;;  %s850_s3 = inlined_call_operand.vmem [shape: f32[8,128], index: 3, kind: output, shape index: {}]  }
   0x1   :  { %s14_s14 = sshll.u32 %s847_s0, 4  ;;  %s16_s16 = sshll.u32 %s697_s15, 4  ;;  %s15_s14 = int_to_ptr.hbm [resolvable:$true] %s14_s14  ;;  %s17_s16 = int_to_ptr.vmem [resolvable:$true] %s16_s16 }
   0x2   :  { %19 = dma.hbm_to_vmem [thread:$0]  %s15_s14, 320, %s17_s16, [#allocation3]  }
   0x3   :  { %695 = dma.done.wait [#allocation3], 320  }
   0x4   :  { %696 = vsyncadd [#allocation3], 4294966976  ;;  %v632_v0 = vld [vmem:[%s848_s1 + $0x38] sm:$0xff]  ;;  %v631_v3 = vld [vmem:[%s848_s1 + $0x30] sm:$0xff] }
   0x5   :  { %v648_v1 = vld [vmem:[%s848_s1 + $0xb8] sm:$0xff]  ;;  %373 = vmatpush.bf16.msra.mxu0 %v632_v0  ;;  %v647_v5 = vld [vmem:[%s848_s1 + $0xb0] sm:$0xff]  ;;  %v630_v8 = vld [vmem:[%s848_s1 + $0x28] sm:$0xff] }
   0x6   :  { %v656_v2 = vld [vmem:[%s848_s1 + $0xf8] sm:$0xff]  ;;  %399 = vmatpush.bf16.msra.mxu2 %v648_v1  ;;  %v655_v6 = vld [vmem:[%s848_s1 + $0xf0] sm:$0xff]  ;;  %v646_v9 = vld [vmem:[%s848_s1 + $0xa8] sm:$0xff] }
   0x7   :  { %v640_v4 = vld [vmem:[%s848_s1 + $0x78] sm:$0xff]  ;;  %412 = vmatpush.bf16.msra.mxu3 %v656_v2  ;;  %v639_v7 = vld [vmem:[%s848_s1 + $0x70] sm:$0xff]  ;;  %v654_v10 = vld [vmem:[%s848_s1 + $0xe8] sm:$0xff] }
   0x8   :  { %386 = vmatpush.bf16.msra.mxu1 %v640_v4  ;;  %v638_v11 = vld [vmem:[%s848_s1 + $0x68] sm:$0xff]  ;;  %v629_v12 = vld [vmem:[%s848_s1 + $0x20] sm:$0xff]  ;;  %v628_v16 = vld [vmem:[%s848_s1 + $0x18] sm:$0xff] }
   0x9   :  { %374 = vmatpush.bf16.msra.mxu0 %v631_v3  ;;  %v645_v13 = vld [vmem:[%s848_s1 + $0xa0] sm:$0xff]  ;;  %v644_v17 = vld [vmem:[%s848_s1 + $0x98] sm:$0xff]  ;;  %v627_v20 = vld [vmem:[%s848_s1 + $0x10] sm:$0xff] }
   0xa   :  { %400 = vmatpush.bf16.msra.mxu2 %v647_v5  ;;  %v653_v14 = vld [vmem:[%s848_s1 + $0xe0] sm:$0xff]  ;;  %v652_v18 = vld [vmem:[%s848_s1 + $0xd8] sm:$0xff]  ;;  %v643_v21 = vld [vmem:[%s848_s1 + $0x90] sm:$0xff] }
   0xb   :  { %413 = vmatpush.bf16.msra.mxu3 %v655_v6  ;;  %v637_v15 = vld [vmem:[%s848_s1 + $0x60] sm:$0xff]  ;;  %v636_v19 = vld [vmem:[%s848_s1 + $0x58] sm:$0xff]  ;;  %v651_v22 = vld [vmem:[%s848_s1 + $0xd0] sm:$0xff] }
   0xc   :  { %387 = vmatpush.bf16.msra.mxu1 %v639_v7  ;;  %v635_v23 = vld [vmem:[%s848_s1 + $0x50] sm:$0xff]  ;;  %v626_v24 = vld [vmem:[%s848_s1 + $0x8] sm:$0xff]  ;;  %v28_v25 = vld [vmem:[#allocation2] sm:$0xff] }
   0xd   :  { %375 = vmatpush.bf16.msra.mxu0 %v630_v8  ;;  %v642_v26 = vld [vmem:[%s848_s1 + $0x88] sm:$0xff]  ;;  %v118_v30 = vunpack.c.l.b16 %v28_v25  ;;  %v625_v31 = vld [vmem:[%s848_s1] sm:$0xff]  ;;  %v664_v33 = vld [vmem:[%s848_s1 + $0x138] sm:$0xff]  ;;  %v119_v38 = vunpack.c.h.b16 %v28_v25 }
   0xe   :  { %401 = vmatpush.bf16.msra.mxu2 %v646_v9  ;;  %v650_v27 = vld [vmem:[%s848_s1 + $0xc8] sm:$0xff]  ;;  %v641_v34 = vld [vmem:[%s848_s1 + $0x80] sm:$0xff]  ;;  %v663_v41 = vld [vmem:[%s848_s1 + $0x130] sm:$0xff] }
   0xf   :  { %414 = vmatpush.bf16.msra.mxu3 %v654_v10  ;;  %v29_v28 = vld [vmem:[#allocation2 + $0x8] sm:$0xff]  ;;  %v649_v36 = vld [vmem:[%s848_s1 + $0xc0] sm:$0xff]  ;;  %v123_v39 = vpack.c.b16 %v118_v30, %v118_v30  ;;  %v124_v43 = vpack.c.b16 %v119_v38, %v119_v38  ;;  %v660_v46 = vld [vmem:[%s848_s1 + $0x118] sm:$0xff] }
  0x10   :  { %388 = vmatpush.bf16.msra.mxu1 %v638_v11  ;;  %v634_v29 = vld [vmem:[%s848_s1 + $0x48] sm:$0xff]  ;;  %v120_v32 = vunpack.c.l.b16 %v29_v28  ;;  %v121_v35 = vunpack.c.h.b16 %v29_v28  ;;  %v633_v37 = vld [vmem:[%s848_s1 + $0x40] sm:$0xff]  ;;  %v659_v47 = vld [vmem:[%s848_s1 + $0x110] sm:$0xff] }
  0x11   :  { %376 = vmatpush.bf16.msra.mxu0 %v629_v12  ;;  %v662_v44 = vld [vmem:[%s848_s1 + $0x128] sm:$0xff]  ;;  %v661_v45 = vld [vmem:[%s848_s1 + $0x120] sm:$0xff]  ;;  %v30_v49 = vld [vmem:[#allocation2 + $0x10] sm:$0xf] }
  0x12   :  { %402 = vmatpush.bf16.msra.mxu2 %v645_v13  ;;  %v125_v40 = vpack.c.b16 %v120_v32, %v120_v32  ;;  %v126_v42 = vpack.c.b16 %v121_v35, %v121_v35  ;;  %v658_v48 = vld [vmem:[%s848_s1 + $0x108] sm:$0xff]  ;;  %v122_v50 = vunpack.c.l.b16 %v30_v49  ;;  %v657_v51 = vld [vmem:[%s848_s1 + $0x100] sm:$0xff] }
  0x13   :  { %415 = vmatpush.bf16.msra.mxu3 %v653_v14  ;;  %v666_v59 = vld [vmem:[%s849_s2] ss:$0 sm:$0xff] }
  0x14   :  { %389 = vmatpush.bf16.msra.mxu1 %v637_v15  ;;  %v127_v52 = vpack.c.b16 %v122_v50, %v122_v50 }
  0x15   :  { %377 = vmatpush.bf16.msra.mxu0 %v628_v16 }
  0x16   :  { %403 = vmatpush.bf16.msra.mxu2 %v644_v17 }
  0x17   :  { %416 = vmatpush.bf16.msra.mxu3 %v652_v18 }
  0x18   :  { %390 = vmatpush.bf16.msra.mxu1 %v636_v19 }
  0x19   :  { %378 = vmatpush.bf16.msra.mxu0 %v627_v20 }
  0x1a   :  { %404 = vmatpush.bf16.msra.mxu2 %v643_v21 }
  0x1b   :  { %417 = vmatpush.bf16.msra.mxu3 %v651_v22 }
  0x1c   :  { %391 = vmatpush.bf16.msra.mxu1 %v635_v23 }
  0x1d   :  { %379 = vmatpush.bf16.msra.mxu0 %v626_v24 }
  0x1e   :  { %405 = vmatpush.bf16.msra.mxu2 %v642_v26 }
  0x1f   :  { %418 = vmatpush.bf16.msra.mxu3 %v650_v27 }
  0x20   :  { %392 = vmatpush.bf16.msra.mxu1 %v634_v29 }
  0x21   :  { %380 = vmatpush.bf16.msra.mxu0 %v625_v31 }
  0x22   :  { %406 = vmatpush.bf16.msra.mxu2 %v641_v34 }
  0x23   :  { %419 = vmatpush.bf16.msra.mxu3 %v649_v36 }
  0x24   :  { %393 = vmatpush.bf16.msra.mxu1 %v633_v37  ;;  %381 = vmatmul.bf16.vlgmr.msra.gmra.mxu0 %v123_v39 }
  0x25   :  { %425 = vmatpush.bf16.msrb.mxu0 %v664_v33  ;;  %407 = vmatmul.bf16.vlgmr.msra.gmra.mxu2 %v125_v40 }
  0x26   :  { %420 = vmatmul.bf16.vlgmr.msra.gmra.mxu3 %v126_v42 }
  0x27   :  { %394 = vmatmul.bf16.vlgmr.msra.gmra.mxu1 %v124_v43 }
  0x29   :  { %426 = vmatpush.bf16.msrb.mxu0 %v663_v41 }
  0x2d   :  { %427 = vmatpush.bf16.msrb.mxu0 %v662_v44 }
  0x31   :  { %428 = vmatpush.bf16.msrb.mxu0 %v661_v45 }
  0x35   :  { %429 = vmatpush.bf16.msrb.mxu0 %v660_v46 }
  0x39   :  { %430 = vmatpush.bf16.msrb.mxu0 %v659_v47 }
  0x3d   :  { %431 = vmatpush.bf16.msrb.mxu0 %v658_v48 }
  0x41   :  { %432 = vmatpush.bf16.msrb.mxu0 %v657_v51 }
  0x44   :  { %433 = vmatmul.bf16.vlgmr.msrb.gmra.mxu0 %v127_v52 }
  0xa1   :  { %v382_v53 = vpop.f32.mrf.mxu0 }
  0xa2   :  { %v383_v61 = vadd.f32 %v666_v59, %v382_v53 }
  0xa4   :  { %v395_v54 = vpop.f32.mrf.mxu1 }
  0xa5   :  { %v396_v63 = vadd.f32 %v395_v54, %v383_v61 }
  0xa8   :  { %v408_v55 = vpop.f32.mrf.mxu2 }
  0xa9   :  { %v384_v56 = vpop.f32.mrf.mxu0  ;;  %v421_v57 = vpop.f32.mrf.mxu3  ;;  %v409_v0 = vadd.f32 %v408_v55, %v396_v63 }
  0xab   :  { %v422_v1 = vadd.f32 %v421_v57, %v409_v0 }
  0xac   :  { %v397_v58 = vpop.f32.mrf.mxu1 }
  0xb0   :  { %v410_v60 = vpop.f32.mrf.mxu2 }
  0xb1   :  { %v423_v62 = vpop.f32.mrf.mxu3 }
  0xc1   :  { %v434_v2 = vpop.f32.mrf.mxu0 }
  0xc2   :  { %v435_v3 = vadd.f32 %v434_v2, %v422_v1 }
  0xc4   :  { %v624_v4 = vmul.f32 -1.442695, %v435_v3 }
  0xc6   :  { %667 = vpow2.f32 %v624_v4 }
  0xc9   :  { %v436_v5 = vpop.f32.mrf.mxu0 }
  0xcc   :  { %v668_v6 = vpop.eup %667 }
  0xcd   :  { %v441_v7 = vadd.f32 1.0, %v668_v6 }
  0xcf   :  { %669 = vrcp.f32 %v441_v7  ;;  %v453_v11 = vand.u32 2147483648, %v441_v7  ;;  %v451_v13 = vand.u32 2147483647, %v441_v7  ;;  %vm447_vm1 = vweird.f32 %v441_v7 }
  0xd1   :  { %v454_v15 = vor.u32 1.1754944e-38, %v453_v11  ;;  %vm452_vm3 = vcmp.eq.f32.partialorder %v451_v13, 8.507059e+37 }
  0xd5   :  { %v670_v8 = vpop.eup %669 }
  0xd6   :  { %v443_v9 = vmul.f32 %v670_v8, %v441_v7  ;;  %vm448_vm0 = vweird.f32 %v670_v8 }
  0xd7   :  { %vm449_vm2 = vmor %vm447_vm1, %vm448_vm0 }
  0xd8   :  { %v444_v10 = vsub.f32 1.0, %v443_v9 }
  0xda   :  { %v445_v12 = vmul.f32 %v670_v8, %v444_v10 }
  0xdc   :  { %v446_v14 = vadd.f32 %v670_v8, %v445_v12 }
  0xde   :  { %v450_v16 = vsel %vm449_vm2, %v670_v8, %v446_v14 }
  0xdf   :  { %v455_v17 = vsel %vm452_vm3, %v454_v15, %v450_v16 }
  0xe0   :  { %v457_v18 = vmul.f32 %v455_v17, %v435_v3 }
  0xe2   :  { %458 = vst [vmem:[%s850_s3] sm:$0xff] %v457_v18 }
  0xe3   :  { %463 = vsyncpa [#allocation3], 1 }

// kernel: forward.221
= control target key start
LH: loop header
LB: loop body
LE: loop exit
PB: predicated region body
PF: predicated region fallthrough
CT: control target
= control target key end

     0   :  { %s372_s9 = smov 0   ;;  %s374_s10 = smov 0   ;;  %s408_s0 = inlined_call_operand.vmem [shape: f32[2,8,128], index: 0, kind: input, shape index: {}]   ;;  %s409_s1 = inlined_call_operand.vmem [shape: f32[2,1,128], index: 1, kind: input, shape index: {}]   ;;  %s410_s2 = inlined_call_operand.vmem [shape: f32[2,8,128], index: 2, kind: output, shape index: {}]  }
   0x1   :  { %s376_s11 = smov 0  }
   0x2 LB: > { %s24_s12 = sadd.s32 1, %s351_s10  ;;  %p298_p0 = scmp.ge.s32.totalorder %s355_s11, 1  ;;  %s355_s11 = sphi %s376_s11, %s12_s11   ;;  %s351_s10 = sphi %s374_s10, %s412_s10   ;;  %s347_s9 = sphi %s372_s9, %s411_s9  }
   0x3   : > { %p26_p1 = scmp.ge.s32.totalorder %s24_s12, 2  ;;  %p138_p2 = scmp.lt.s32.totalorder %s355_s11, 3 }
   0x5   : > { %s414_s12 = smov (%p26_p1, %s24_s12), 0  ;;  %p139_p3 = pnand %p298_p0, %p138_p2 }
   0x6   : > { %p167_p4 = scmp.lt.s32.totalorder (!%p139_p3), %s347_s9, 1 }
   0x7   : > { %142 = sbr.rel (%p139_p3) target bundleno = 49 (0x31), region = 28 }
   0xc   : > { %s416_s9 = smov (!%p167_p4, %s347_s9), 1 }
   0xd   : > { %s299_s13 = sshll.u32 %s416_s9, 3  ;;  %s176_s16 = scalar_lea.vmem %s409_s1, %s416_s9 }
   0xe   : > { %s173_s19 = scalar_lea.vmem %s408_s0, %s299_s13  ;;  %v328_v0 = vld [vmem:[%s176_s16] ss:$0 sm:$0xff]  ;;  %s183_s22 = scalar_lea.vmem %s410_s2, %s299_s13 }
   0xf   : > { %v184_v1 = vld [vmem:[%s173_s19] sm:$0xff] }
  0x10   : > { %v189_v2 = vmul.f32 %v328_v0, %v184_v1 }
  0x12   : > { %v301_v3 = vmul.f32 -1.442695, %v189_v2 }
  0x14   : > { %329 = vpow2.f32 %v301_v3 }
  0x1a   : > { %v330_v4 = vpop.eup %329 }
  0x1b   : > { %v193_v5 = vadd.f32 1.0, %v330_v4 }
  0x1d   : > { %331 = vrcp.f32 %v193_v5  ;;  %v205_v8 = vand.u32 2147483648, %v193_v5  ;;  %vm199_vm0 = vweird.f32 %v193_v5  ;;  %v203_v10 = vand.u32 2147483647, %v193_v5 }
  0x1f   : > { %v206_v12 = vor.u32 1.1754944e-38, %v205_v8  ;;  %vm204_vm3 = vcmp.eq.f32.partialorder %v203_v10, 8.507059e+37 }
  0x23   : > { %v332_v6 = vpop.eup %331 }
  0x24   : > { %v195_v7 = vmul.f32 %v332_v6, %v193_v5  ;;  %vm200_vm1 = vweird.f32 %v332_v6 }
  0x25   : > { %vm201_vm2 = vmor %vm199_vm0, %vm200_vm1 }
  0x26   : > { %v196_v9 = vsub.f32 1.0, %v195_v7 }
  0x28   : > { %v197_v11 = vmul.f32 %v332_v6, %v196_v9 }
  0x2a   : > { %v198_v13 = vadd.f32 %v332_v6, %v197_v11 }
  0x2c   : > { %v202_v14 = vsel %vm201_vm2, %v332_v6, %v198_v13 }
  0x2d   : > { %v207_v15 = vsel %vm204_vm3, %v206_v12, %v202_v14 }
  0x2e   : > { %v209_v16 = vmul.f32 %v207_v15, %v189_v2 }
  0x30   : > { %210 = vst [vmem:[%s183_s22] sm:$0xff] %v209_v16 }
  0x31 PF: > { %s12_s11 = sadd.s32 1, %s355_s11   ;;  %s411_s9 = smov %s351_s10 }
  0x32   : > { %p9_p5 = scmp.ge.s32.totalorder %s12_s11, 4   ;;  %s412_s10 = smov %s414_s12 }
  0x34   :  { %11 = sbr.rel (!%p9_p5) target bundleno = 2 (0x2), region = 61 }

// kernel: forward.186
= control target key start
LH: loop header
LB: loop body
LE: loop exit
PB: predicated region body
PF: predicated region fallthrough
CT: control target
= control target key end

     0   :  { %8 = vsyncpa [#allocation3], 0  ;;  %s672_s15 = smov [#allocation2]   ;;  %s822_s0 = inlined_call_operand.hbm [shape: bf16[8,640], index: 0, kind: input, shape index: {}]   ;;  %s823_s1 = inlined_call_operand.vmem [shape: bf16[640,128], index: 1, kind: input, shape index: {}]   ;;  %s824_s2 = inlined_call_operand.vmem [shape: f32[1,128], index: 2, kind: input, shape index: {}]   ;;  %s825_s3 = inlined_call_operand.vmem [shape: f32[8,128], index: 3, kind: output, shape index: {}]  }
   0x1   :  { %s14_s14 = sshll.u32 %s822_s0, 4  ;;  %s16_s16 = sshll.u32 %s672_s15, 4  ;;  %s15_s14 = int_to_ptr.hbm [resolvable:$true] %s14_s14  ;;  %s17_s16 = int_to_ptr.vmem [resolvable:$true] %s16_s16 }
   0x2   :  { %19 = dma.hbm_to_vmem [thread:$0]  %s15_s14, 320, %s17_s16, [#allocation3]  }
   0x3   :  { %670 = dma.done.wait [#allocation3], 320  }
   0x4   :  { %671 = vsyncadd [#allocation3], 4294966976  ;;  %v611_v0 = vld [vmem:[%s823_s1 + $0x38] sm:$0xff]  ;;  %v610_v3 = vld [vmem:[%s823_s1 + $0x30] sm:$0xff] }
   0x5   :  { %v627_v1 = vld [vmem:[%s823_s1 + $0xb8] sm:$0xff]  ;;  %373 = vmatpush.bf16.msra.mxu0 %v611_v0  ;;  %v626_v5 = vld [vmem:[%s823_s1 + $0xb0] sm:$0xff]  ;;  %v609_v8 = vld [vmem:[%s823_s1 + $0x28] sm:$0xff] }
   0x6   :  { %v635_v2 = vld [vmem:[%s823_s1 + $0xf8] sm:$0xff]  ;;  %399 = vmatpush.bf16.msra.mxu2 %v627_v1  ;;  %v634_v6 = vld [vmem:[%s823_s1 + $0xf0] sm:$0xff]  ;;  %v625_v9 = vld [vmem:[%s823_s1 + $0xa8] sm:$0xff] }
   0x7   :  { %v619_v4 = vld [vmem:[%s823_s1 + $0x78] sm:$0xff]  ;;  %412 = vmatpush.bf16.msra.mxu3 %v635_v2  ;;  %v618_v7 = vld [vmem:[%s823_s1 + $0x70] sm:$0xff]  ;;  %v633_v10 = vld [vmem:[%s823_s1 + $0xe8] sm:$0xff] }
   0x8   :  { %386 = vmatpush.bf16.msra.mxu1 %v619_v4  ;;  %v617_v11 = vld [vmem:[%s823_s1 + $0x68] sm:$0xff]  ;;  %v608_v12 = vld [vmem:[%s823_s1 + $0x20] sm:$0xff]  ;;  %v607_v16 = vld [vmem:[%s823_s1 + $0x18] sm:$0xff] }
   0x9   :  { %374 = vmatpush.bf16.msra.mxu0 %v610_v3  ;;  %v624_v13 = vld [vmem:[%s823_s1 + $0xa0] sm:$0xff]  ;;  %v623_v17 = vld [vmem:[%s823_s1 + $0x98] sm:$0xff]  ;;  %v606_v20 = vld [vmem:[%s823_s1 + $0x10] sm:$0xff] }
   0xa   :  { %400 = vmatpush.bf16.msra.mxu2 %v626_v5  ;;  %v632_v14 = vld [vmem:[%s823_s1 + $0xe0] sm:$0xff]  ;;  %v631_v18 = vld [vmem:[%s823_s1 + $0xd8] sm:$0xff]  ;;  %v622_v21 = vld [vmem:[%s823_s1 + $0x90] sm:$0xff] }
   0xb   :  { %413 = vmatpush.bf16.msra.mxu3 %v634_v6  ;;  %v616_v15 = vld [vmem:[%s823_s1 + $0x60] sm:$0xff]  ;;  %v615_v19 = vld [vmem:[%s823_s1 + $0x58] sm:$0xff]  ;;  %v630_v22 = vld [vmem:[%s823_s1 + $0xd0] sm:$0xff] }
   0xc   :  { %387 = vmatpush.bf16.msra.mxu1 %v618_v7  ;;  %v614_v23 = vld [vmem:[%s823_s1 + $0x50] sm:$0xff]  ;;  %v605_v24 = vld [vmem:[%s823_s1 + $0x8] sm:$0xff]  ;;  %v28_v25 = vld [vmem:[#allocation2] sm:$0xff] }
   0xd   :  { %375 = vmatpush.bf16.msra.mxu0 %v609_v8  ;;  %v621_v26 = vld [vmem:[%s823_s1 + $0x88] sm:$0xff]  ;;  %v118_v30 = vunpack.c.l.b16 %v28_v25  ;;  %v604_v31 = vld [vmem:[%s823_s1] sm:$0xff]  ;;  %v643_v33 = vld [vmem:[%s823_s1 + $0x138] sm:$0xff]  ;;  %v119_v38 = vunpack.c.h.b16 %v28_v25 }
   0xe   :  { %401 = vmatpush.bf16.msra.mxu2 %v625_v9  ;;  %v629_v27 = vld [vmem:[%s823_s1 + $0xc8] sm:$0xff]  ;;  %v620_v34 = vld [vmem:[%s823_s1 + $0x80] sm:$0xff]  ;;  %v642_v41 = vld [vmem:[%s823_s1 + $0x130] sm:$0xff] }
   0xf   :  { %414 = vmatpush.bf16.msra.mxu3 %v633_v10  ;;  %v29_v28 = vld [vmem:[#allocation2 + $0x8] sm:$0xff]  ;;  %v628_v36 = vld [vmem:[%s823_s1 + $0xc0] sm:$0xff]  ;;  %v123_v39 = vpack.c.b16 %v118_v30, %v118_v30  ;;  %v124_v43 = vpack.c.b16 %v119_v38, %v119_v38  ;;  %v639_v46 = vld [vmem:[%s823_s1 + $0x118] sm:$0xff] }
  0x10   :  { %388 = vmatpush.bf16.msra.mxu1 %v617_v11  ;;  %v613_v29 = vld [vmem:[%s823_s1 + $0x48] sm:$0xff]  ;;  %v120_v32 = vunpack.c.l.b16 %v29_v28  ;;  %v121_v35 = vunpack.c.h.b16 %v29_v28  ;;  %v612_v37 = vld [vmem:[%s823_s1 + $0x40] sm:$0xff]  ;;  %v638_v47 = vld [vmem:[%s823_s1 + $0x110] sm:$0xff] }
  0x11   :  { %376 = vmatpush.bf16.msra.mxu0 %v608_v12  ;;  %v641_v44 = vld [vmem:[%s823_s1 + $0x128] sm:$0xff]  ;;  %v640_v45 = vld [vmem:[%s823_s1 + $0x120] sm:$0xff]  ;;  %v30_v49 = vld [vmem:[#allocation2 + $0x10] sm:$0xf] }
  0x12   :  { %402 = vmatpush.bf16.msra.mxu2 %v624_v13  ;;  %v125_v40 = vpack.c.b16 %v120_v32, %v120_v32  ;;  %v126_v42 = vpack.c.b16 %v121_v35, %v121_v35  ;;  %v637_v48 = vld [vmem:[%s823_s1 + $0x108] sm:$0xff]  ;;  %v122_v50 = vunpack.c.l.b16 %v30_v49  ;;  %v636_v51 = vld [vmem:[%s823_s1 + $0x100] sm:$0xff] }
  0x13   :  { %415 = vmatpush.bf16.msra.mxu3 %v632_v14  ;;  %v645_v59 = vld [vmem:[%s824_s2] ss:$0 sm:$0xff] }
  0x14   :  { %389 = vmatpush.bf16.msra.mxu1 %v616_v15  ;;  %v127_v52 = vpack.c.b16 %v122_v50, %v122_v50 }
  0x15   :  { %377 = vmatpush.bf16.msra.mxu0 %v607_v16 }
  0x16   :  { %403 = vmatpush.bf16.msra.mxu2 %v623_v17 }
  0x17   :  { %416 = vmatpush.bf16.msra.mxu3 %v631_v18 }
  0x18   :  { %390 = vmatpush.bf16.msra.mxu1 %v615_v19 }
  0x19   :  { %378 = vmatpush.bf16.msra.mxu0 %v606_v20 }
  0x1a   :  { %404 = vmatpush.bf16.msra.mxu2 %v622_v21 }
  0x1b   :  { %417 = vmatpush.bf16.msra.mxu3 %v630_v22 }
  0x1c   :  { %391 = vmatpush.bf16.msra.mxu1 %v614_v23 }
  0x1d   :  { %379 = vmatpush.bf16.msra.mxu0 %v605_v24 }
  0x1e   :  { %405 = vmatpush.bf16.msra.mxu2 %v621_v26 }
  0x1f   :  { %418 = vmatpush.bf16.msra.mxu3 %v629_v27 }
  0x20   :  { %392 = vmatpush.bf16.msra.mxu1 %v613_v29 }
  0x21   :  { %380 = vmatpush.bf16.msra.mxu0 %v604_v31 }
  0x22   :  { %406 = vmatpush.bf16.msra.mxu2 %v620_v34 }
  0x23   :  { %419 = vmatpush.bf16.msra.mxu3 %v628_v36 }
  0x24   :  { %393 = vmatpush.bf16.msra.mxu1 %v612_v37  ;;  %381 = vmatmul.bf16.vlgmr.msra.gmra.mxu0 %v123_v39 }
  0x25   :  { %425 = vmatpush.bf16.msrb.mxu0 %v643_v33  ;;  %407 = vmatmul.bf16.vlgmr.msra.gmra.mxu2 %v125_v40 }
  0x26   :  { %420 = vmatmul.bf16.vlgmr.msra.gmra.mxu3 %v126_v42 }
  0x27   :  { %394 = vmatmul.bf16.vlgmr.msra.gmra.mxu1 %v124_v43 }
  0x29   :  { %426 = vmatpush.bf16.msrb.mxu0 %v642_v41 }
  0x2d   :  { %427 = vmatpush.bf16.msrb.mxu0 %v641_v44 }
  0x31   :  { %428 = vmatpush.bf16.msrb.mxu0 %v640_v45 }
  0x35   :  { %429 = vmatpush.bf16.msrb.mxu0 %v639_v46 }
  0x39   :  { %430 = vmatpush.bf16.msrb.mxu0 %v638_v47 }
  0x3d   :  { %431 = vmatpush.bf16.msrb.mxu0 %v637_v48 }
  0x41   :  { %432 = vmatpush.bf16.msrb.mxu0 %v636_v51 }
  0x44   :  { %433 = vmatmul.bf16.vlgmr.msrb.gmra.mxu0 %v127_v52 }
  0xa1   :  { %v382_v53 = vpop.f32.mrf.mxu0 }
  0xa2   :  { %v383_v61 = vadd.f32 %v645_v59, %v382_v53 }
  0xa4   :  { %v395_v54 = vpop.f32.mrf.mxu1 }
  0xa5   :  { %v396_v63 = vadd.f32 %v395_v54, %v383_v61 }
  0xa8   :  { %v408_v55 = vpop.f32.mrf.mxu2 }
  0xa9   :  { %v384_v56 = vpop.f32.mrf.mxu0  ;;  %v421_v57 = vpop.f32.mrf.mxu3  ;;  %v409_v0 = vadd.f32 %v408_v55, %v396_v63 }
  0xab   :  { %v422_v1 = vadd.f32 %v421_v57, %v409_v0 }
  0xac   :  { %v397_v58 = vpop.f32.mrf.mxu1 }
  0xb0   :  { %v410_v60 = vpop.f32.mrf.mxu2 }
  0xb1   :  { %v423_v62 = vpop.f32.mrf.mxu3 }
  0xc1   :  { %v434_v2 = vpop.f32.mrf.mxu0 }
  0xc2   :  { %v435_v3 = vadd.f32 %v434_v2, %v422_v1 }
  0xc4   :  { %438 = vst [vmem:[%s825_s3] sm:$0xff] %v435_v3 }
  0xc9   :  { %v436_v4 = vpop.f32.mrf.mxu0 }
  0xca   :  { %443 = vsyncpa [#allocation3], 1 }

</bundles_post_ra>
